<compile_context>
chip_gen: v6e
topology: v6e:2x2x1
jax: 0.10.0
libtpu: 0.0.40
codegen_flags: <defaults>
</compile_context>

<pallas_src>
import jax
import jax.numpy as jnp
from jax.experimental import pallas as pl
from jax.experimental.pallas import tpu as pltpu


D_IN = 28 * 28          # 784 (logical, also the kernel K — no padding needed)
D_H = 512
D_OUT = 10              # logical logits
D_OUT_PAD = 128         # lane-dense output tile


def _mlp_kernel(x_ref, w1_ref, b1_ref, w2_ref, b2_ref, w3_ref, b3_ref, o_ref):
    # x: (TILE_B, 784) f32 ; weights bf16 ; biases f32 ; output f32.
    x = x_ref[...].astype(jnp.bfloat16)                               # in-VMEM cast
    h1 = jnp.dot(x, w1_ref[...], preferred_element_type=jnp.float32) + b1_ref[...]
    h1 = jnp.maximum(h1, 0.0).astype(jnp.bfloat16)                    # ReLU
    h2 = jnp.dot(h1, w2_ref[...], preferred_element_type=jnp.float32) + b2_ref[...]
    h2 = jnp.maximum(h2, 0.0).astype(jnp.bfloat16)                    # ReLU
    logits = jnp.dot(h2, w3_ref[...], preferred_element_type=jnp.float32) + b3_ref[...]
    o_ref[...] = logits.astype(o_ref.dtype)                           # (TILE_B, 128)


def _choose_tile_b(n):
    """Batch tile: large enough to amortize per-step overhead, capped at 512,
    and preferring >= 2 grid steps (v7x has 2 TensorCores) when the batch allows."""
    n128 = pl.cdiv(n, 128) * 128
    tile = min(512, n128)
    if pl.cdiv(n128, tile) < 2 and n128 >= 256:
        tile = max(128, (n128 // 2) // 128 * 128)
    return tile


@jax.jit
def neural_network_forward(x_nchw, packed):
    """Forward pass of the PyTorch NeuralNetwork module.

    x_nchw: (N, 1, 28, 28) float32
    packed: dict of kernel-ready (transposed / padded / bf16) parameters
    returns logits (N, 10) float32
    """
    n = x_nchw.shape[0]
    x = x_nchw.reshape(n, D_IN)                       # nn.Flatten (metadata only)

    tile_b = _choose_tile_b(n)
    n_pad = pl.cdiv(n, tile_b) * tile_b
    if n_pad != n:                                    # ragged batch: zero-pad rows
        x = jnp.pad(x, ((0, n_pad - n), (0, 0)))

    w1t, b1 = packed["w1t"], packed["b1"]
    w2t, b2 = packed["w2t"], packed["b2"]
    w3t, b3 = packed["w3t"], packed["b3"]

    # Constant index_map -> parameters are DMA'd once and stay resident in VMEM.
    resident = lambda shape: pl.BlockSpec(shape, lambda i: (0, 0))

    out = pl.pallas_call(
        _mlp_kernel,
        out_shape=jax.ShapeDtypeStruct((n_pad, D_OUT_PAD), jnp.float32),
        grid_spec=pl.GridSpec(
            grid=(n_pad // tile_b,),
            in_specs=[
                pl.BlockSpec((tile_b, D_IN), lambda i: (i, 0)),   # x tile (f32)
                resident((D_IN, D_H)),                            # w1^T (784, 512)
                resident((1, D_H)),                               # b1
                resident((D_H, D_H)),                             # w2^T
                resident((1, D_H)),                               # b2
                resident((D_H, D_OUT_PAD)),                       # w3^T (N padded)
                resident((1, D_OUT_PAD)),                         # b3 (padded)
            ],
            out_specs=pl.BlockSpec((tile_b, D_OUT_PAD), lambda i: (i, 0)),
        ),
        compiler_params=pltpu.CompilerParams(
            dimension_semantics=("parallel",),         # megacore-shardable batch axis
            vmem_limit_bytes=32 * 1024 * 1024,         # headroom on v5e's 16 MiB default
        ),
    )(x, w1t, b1, w2t, b2, w3t, b3)

    # Strip batch padding and the lane padding of the logits.
    return out[:n, :D_OUT]


def init_params(key):
    """Torch-layout parameters: Linear(i, o) -> weight (o, i), bias (o,)."""
    def linear(key, fan_in, fan_out):
        kw, kb = jax.random.split(key)
        bound = 1.0 / jnp.sqrt(fan_in)
        w = jax.random.uniform(kw, (fan_out, fan_in), jnp.float32, -bound, bound)
        b = jax.random.uniform(kb, (fan_out,), jnp.float32, -bound, bound)
        return w, b

    k1, k2, k3 = jax.random.split(key, 3)
    w1, b1 = linear(k1, D_IN, D_H)
    w2, b2 = linear(k2, D_H, D_H)
    w3, b3 = linear(k3, D_H, D_OUT)
    return dict(w1=w1, b1=b1, w2=w2, b2=b2, w3=w3, b3=b3)


def pack_params(tp):
    """Transpose, zero-pad the output lane dim, and cast weights to bf16."""
    w1t = tp["w1"].T.astype(jnp.bfloat16)                                 # (784, 512)
    w2t = tp["w2"].T.astype(jnp.bfloat16)                                 # (512, 512)
    w3t = jnp.pad(tp["w3"].T, ((0, 0), (0, D_OUT_PAD - D_OUT))).astype(jnp.bfloat16)
    b1 = tp["b1"].reshape(1, D_H).astype(jnp.float32)
    b2 = tp["b2"].reshape(1, D_H).astype(jnp.float32)
    b3 = jnp.pad(tp["b3"], (0, D_OUT_PAD - D_OUT)).reshape(1, D_OUT_PAD).astype(jnp.float32)
    return dict(w1t=w1t, b1=b1, w2t=w2t, b2=b2, w3t=w3t, b3=b3)


def reference_forward(x_nchw, tp):
    """Pure-JAX reference mirroring the kernel's bf16-operand / f32-acc math."""
    x = x_nchw.reshape(x_nchw.shape[0], -1).astype(jnp.bfloat16)
    h1 = jnp.dot(x, tp["w1"].T.astype(jnp.bfloat16),
                 preferred_element_type=jnp.float32) + tp["b1"]
    h1 = jnp.maximum(h1, 0.0).astype(jnp.bfloat16)
    h2 = jnp.dot(h1, tp["w2"].T.astype(jnp.bfloat16),
                 preferred_element_type=jnp.float32) + tp["b2"]
    h2 = jnp.maximum(h2, 0.0).astype(jnp.bfloat16)
    return jnp.dot(h2, tp["w3"].T.astype(jnp.bfloat16),
                   preferred_element_type=jnp.float32) + tp["b3"]


if __name__ == "__main__":
    key = jax.random.PRNGKey(0)
    kx, kp = jax.random.split(key)

    batch = 8                                                   # small demo batch
    x = jax.random.normal(kx, (batch, 1, 28, 28), jnp.float32)  # NCHW like PyTorch
    tparams = init_params(kp)
    packed = pack_params(tparams)

    logits = neural_network_forward(x, packed)
    logits = jax.block_until_ready(logits)

    ref = reference_forward(x, tparams)
    assert logits.shape == (batch, D_OUT), logits.shape
    # bf16 operands / f32 accumulation, so compare against the bf16 reference.
    assert jnp.allclose(logits, ref, atol=2e-2, rtol=2e-2), "mismatch vs reference"

    print("KERNEL_OK")
</pallas_src>

<mosaic_0001>
module attributes {stable_mosaic.version = 11 : i64} {
  func.func @_mlp_kernel(%arg0: i32, %arg1: memref<128x784xf32, #tpu.memory_space<vmem>>, %arg2: memref<784x512xbf16, #tpu.memory_space<vmem>>, %arg3: memref<1x512xf32, #tpu.memory_space<vmem>>, %arg4: memref<512x512xbf16, #tpu.memory_space<vmem>>, %arg5: memref<1x512xf32, #tpu.memory_space<vmem>>, %arg6: memref<512x128xbf16, #tpu.memory_space<vmem>>, %arg7: memref<1x128xf32, #tpu.memory_space<vmem>>, %arg8: memref<128x128xf32, #tpu.memory_space<vmem>>) attributes {dimension_semantics = [#tpu.dimension_semantics<parallel>], iteration_bounds = array<i64: 1>, scalar_prefetch = 0 : i64, scratch_operands = 0 : i64, tpu.core_type = #tpu.core_type<tc>, window_params = [{transform_indices = @transform_0, window_bounds = array<i64: 128, 784>}, {pipeline_mode = #tpu.pipeline_mode<synchronous>, transform_indices = @transform_1, window_bounds = array<i64: 784, 512>}, {pipeline_mode = #tpu.pipeline_mode<synchronous>, transform_indices = @transform_2, window_bounds = array<i64: 1, 512>}, {pipeline_mode = #tpu.pipeline_mode<synchronous>, transform_indices = @transform_3, window_bounds = array<i64: 512, 512>}, {pipeline_mode = #tpu.pipeline_mode<synchronous>, transform_indices = @transform_4, window_bounds = array<i64: 1, 512>}, {pipeline_mode = #tpu.pipeline_mode<synchronous>, transform_indices = @transform_5, window_bounds = array<i64: 512, 128>}, {pipeline_mode = #tpu.pipeline_mode<synchronous>, transform_indices = @transform_6, window_bounds = array<i64: 1, 128>}, {transform_indices = @transform_7, window_bounds = array<i64: 128, 128>}]} {
    %c0 = arith.constant 0 : index
    %c0_0 = arith.constant 0 : index
    %0 = vector.load %arg1[%c0, %c0_0] : memref<128x784xf32, #tpu.memory_space<vmem>>, vector<128x784xf32>
    %1 = arith.truncf %0 : vector<128x784xf32> to vector<128x784xbf16>
    %c0_1 = arith.constant 0 : index
    %c0_2 = arith.constant 0 : index
    %2 = vector.load %arg2[%c0_1, %c0_2] : memref<784x512xbf16, #tpu.memory_space<vmem>>, vector<784x512xbf16>
    %cst = arith.constant dense<0.000000e+00> : vector<128x512xf32>
    %3 = tpu.matmul %1, %2, %cst {dimension_numbers = #tpu.dot_dimension_numbers<[1], [0], [0], [1], [0, 0, 1, 1], [], []>} : vector<128x784xbf16>, vector<784x512xbf16>, vector<128x512xf32> -> vector<128x512xf32>
    %c0_3 = arith.constant 0 : index
    %c0_4 = arith.constant 0 : index
    %4 = vector.load %arg3[%c0_3, %c0_4] : memref<1x512xf32, #tpu.memory_space<vmem>>, vector<1x512xf32>
    %5 = vector.broadcast %4 : vector<1x512xf32> to vector<128x512xf32>
    %6 = arith.addf %3, %5 : vector<128x512xf32>
    %cst_5 = arith.constant 0.000000e+00 : f32
    %7 = vector.broadcast %cst_5 : f32 to vector<128x512xf32>
    %8 = arith.maximumf %6, %7 : vector<128x512xf32>
    %9 = arith.truncf %8 : vector<128x512xf32> to vector<128x512xbf16>
    %c0_6 = arith.constant 0 : index
    %c0_7 = arith.constant 0 : index
    %10 = vector.load %arg4[%c0_6, %c0_7] : memref<512x512xbf16, #tpu.memory_space<vmem>>, vector<512x512xbf16>
    %cst_8 = arith.constant dense<0.000000e+00> : vector<128x512xf32>
    %11 = tpu.matmul %9, %10, %cst_8 {dimension_numbers = #tpu.dot_dimension_numbers<[1], [0], [0], [1], [0, 0, 1, 1], [], []>} : vector<128x512xbf16>, vector<512x512xbf16>, vector<128x512xf32> -> vector<128x512xf32>
    %c0_9 = arith.constant 0 : index
    %c0_10 = arith.constant 0 : index
    %12 = vector.load %arg5[%c0_9, %c0_10] : memref<1x512xf32, #tpu.memory_space<vmem>>, vector<1x512xf32>
    %13 = vector.broadcast %12 : vector<1x512xf32> to vector<128x512xf32>
    %14 = arith.addf %11, %13 : vector<128x512xf32>
    %cst_11 = arith.constant 0.000000e+00 : f32
    %15 = vector.broadcast %cst_11 : f32 to vector<128x512xf32>
    %16 = arith.maximumf %14, %15 : vector<128x512xf32>
    %17 = arith.truncf %16 : vector<128x512xf32> to vector<128x512xbf16>
    %c0_12 = arith.constant 0 : index
    %c0_13 = arith.constant 0 : index
    %18 = vector.load %arg6[%c0_12, %c0_13] : memref<512x128xbf16, #tpu.memory_space<vmem>>, vector<512x128xbf16>
    %cst_14 = arith.constant dense<0.000000e+00> : vector<128x128xf32>
    %19 = tpu.matmul %17, %18, %cst_14 {dimension_numbers = #tpu.dot_dimension_numbers<[1], [0], [0], [1], [0, 0, 1, 1], [], []>} : vector<128x512xbf16>, vector<512x128xbf16>, vector<128x128xf32> -> vector<128x128xf32>
    %c0_15 = arith.constant 0 : index
    %c0_16 = arith.constant 0 : index
    %20 = vector.load %arg7[%c0_15, %c0_16] : memref<1x128xf32, #tpu.memory_space<vmem>>, vector<1x128xf32>
    %21 = vector.broadcast %20 : vector<1x128xf32> to vector<128x128xf32>
    %22 = arith.addf %19, %21 : vector<128x128xf32>
    %c0_17 = arith.constant 0 : index
    %c0_18 = arith.constant 0 : index
    %23 = vector.load %arg8[%c0_17, %c0_18] : memref<128x128xf32, #tpu.memory_space<vmem>>, vector<128x128xf32>
    tpu.vector_store %arg8[%c0_17, %c0_18], %22 {strides = array<i32>} : memref<128x128xf32, #tpu.memory_space<vmem>>, vector<128x128xf32>,
    return
  }
  func.func @transform_0(%arg0: i32) -> (i32, i32) {
    %c0_i32 = arith.constant 0 : i32
    %c0_i32_0 = arith.constant 0 : i32
    return %arg0, %c0_i32 : i32, i32
  }
  func.func @transform_1(%arg0: i32) -> (i32, i32) {
    %c0_i32 = arith.constant 0 : i32
    %c0_i32_0 = arith.constant 0 : i32
    %c0_i32_1 = arith.constant 0 : i32
    return %c0_i32, %c0_i32_0 : i32, i32
  }
  func.func @transform_2(%arg0: i32) -> (i32, i32) {
    %c0_i32 = arith.constant 0 : i32
    %c0_i32_0 = arith.constant 0 : i32
    %c0_i32_1 = arith.constant 0 : i32
    return %c0_i32, %c0_i32_0 : i32, i32
  }
  func.func @transform_3(%arg0: i32) -> (i32, i32) {
    %c0_i32 = arith.constant 0 : i32
    %c0_i32_0 = arith.constant 0 : i32
    %c0_i32_1 = arith.constant 0 : i32
    return %c0_i32, %c0_i32_0 : i32, i32
  }
  func.func @transform_4(%arg0: i32) -> (i32, i32) {
    %c0_i32 = arith.constant 0 : i32
    %c0_i32_0 = arith.constant 0 : i32
    %c0_i32_1 = arith.constant 0 : i32
    return %c0_i32, %c0_i32_0 : i32, i32
  }
  func.func @transform_5(%arg0: i32) -> (i32, i32) {
    %c0_i32 = arith.constant 0 : i32
    %c0_i32_0 = arith.constant 0 : i32
    %c0_i32_1 = arith.constant 0 : i32
    return %c0_i32, %c0_i32_0 : i32, i32
  }
  func.func @transform_6(%arg0: i32) -> (i32, i32) {
    %c0_i32 = arith.constant 0 : i32
    %c0_i32_0 = arith.constant 0 : i32
    %c0_i32_1 = arith.constant 0 : i32
    return %c0_i32, %c0_i32_0 : i32, i32
  }
  func.func @transform_7(%arg0: i32) -> (i32, i32) {
    %c0_i32 = arith.constant 0 : i32
    %c0_i32_0 = arith.constant 0 : i32
    return %arg0, %c0_i32 : i32, i32
  }
}

</mosaic_0001>

<bundles_post_ra>
// kernel: neural_network_forward.1
= control target key start
LH: loop header
LB: loop body
LE: loop exit
PB: predicated region body
PF: predicated region fallthrough
CT: control target
= control target key end

     0   :  { %12 = vsyncpa [#allocation3], 0  ;;  %s7395_s0 = inlined_call_operand.vmem [shape: f32[128,784], index: 0, kind: input, shape index: {}]   ;;  %s7396_s1 = inlined_call_operand.vmem [shape: bf16[784,512], index: 1, kind: input, shape index: {}]   ;;  %s7397_s2 = inlined_call_operand.vmem [shape: f32[1,512], index: 2, kind: input, shape index: {}]   ;;  %s7398_s3 = inlined_call_operand.hbm [shape: bf16[512,512], index: 3, kind: input, shape index: {}]   ;;  %s7399_s4 = inlined_call_operand.vmem [shape: f32[1,512], index: 4, kind: input, shape index: {}]   ;;  %s7400_s5 = inlined_call_operand.hbm [shape: bf16[512,128], index: 5, kind: input, shape index: {}]   ;;  %s7401_s6 = inlined_call_operand.vmem [shape: f32[1,128], index: 6, kind: input, shape index: {}]   ;;  %s7402_s7 = inlined_call_operand.vmem [shape: f32[128,128], index: 7, kind: output, shape index: {}]  }
   0x1   :  { %13 = vsyncpa [#allocation5], 0  ;;  %s5334_s24 = smov [#allocation2]  }
   0x2   :  { %s25_s25 = sshll.u32 %s5334_s24, 4  ;;  %s26_s25 = int_to_ptr.vmem [resolvable:$true] %s25_s25 }
   0x3   :  { %s5298_s26 = scalar_lea.vmem %s26_s25, 16384  ;;  %p5303_p1 = scmp.lt.s32.totalorder %s26_s25, %s26_s25 }
   0x4   :  { %p5299_p0 = scmp.ne.s32.totalorder %s26_s25, %s5298_s26  ;;  %p5304_p2 = scmp.lt.s32.totalorder %s5298_s26, %s5298_s26 }
   0x6   :  { %p5305_p3 = por %p5304_p2, %p5303_p1 }
   0x8   :  { %p5306_p4 = pnand %p5305_p3, %p5299_p0 }
   0xa   :  { %5309 = shalt.err (!%p5306_p4)
}
   0xb   :  { %s5335_s27 = smov 256   ;;  %s5336_s28 = smov 16  }
   0xc   :  { %31 = dma.hbm_to_vmem [thread:$0]  %s7398_s3, 16384, %s26_s25, [#allocation3], %s5335_s27, %s5335_s27, %s5336_s28  }
   0xd   :  { %s5337_s8 = smov [#allocation4]  }
   0xe   :  { %s39_s9 = sshll.u32 %s5337_s8, 4  ;;  %s40_s9 = int_to_ptr.vmem [resolvable:$true] %s39_s9 }
   0xf   :  { %s5318_s10 = scalar_lea.vmem %s40_s9, 4096  ;;  %p5323_p6 = scmp.lt.s32.totalorder %s40_s9, %s40_s9 }
  0x10   :  { %p5319_p5 = scmp.ne.s32.totalorder %s40_s9, %s5318_s10  ;;  %p5324_p7 = scmp.lt.s32.totalorder %s5318_s10, %s5318_s10 }
  0x12   :  { %p5325_p8 = por %p5324_p7, %p5323_p6 }
  0x14   :  { %p5326_p9 = pnand %p5325_p8, %p5319_p5 }
  0x16   :  { %5329 = shalt.err (!%p5326_p9)
}
  0x17   :  { %s5338_s11 = smov 64   ;;  %s5339_s12 = smov 4  }
  0x18   :  { %45 = dma.hbm_to_vmem [thread:$0]  %s7400_s5, 4096, %s40_s9, [#allocation5], %s5338_s11, %s5338_s11, %s5339_s12  }
  0x19   :  { %5330 = dma.done.wait [#allocation3], 16384  }
  0x1a   :  { %5331 = vsyncadd [#allocation3], 4294950912 }
  0x1b   :  { %5332 = dma.done.wait [#allocation5], 4096  }
  0x1c   :  { %5333 = vsyncadd [#allocation5], 4294963200  ;;  %v4771_v0 = vld [vmem:[%s7396_s1 + $0xe4] ss:$16 sps:$4 sm:$0xff]   ;;  %v4775_v2 = vld [vmem:[%s7396_s1 + $0xe0] ss:$16 sps:$4 sm:$0xff]  }
  0x1d   :  { %v4773_v1 = vld [vmem:[%s7396_s1 + $0x2e4] ss:$16 sps:$4 sm:$0xff]   ;;  %1446 = vmatprep.subr.bf16.mxu0 %v4771_v0  ;;  %v4776_v3 = vld [vmem:[%s7396_s1 + $0x2e0] ss:$16 sps:$4 sm:$0xff]   ;;  %v56_v46 = vld [vmem:[%s7395_s0 + $0x8] sm:$0xff]  ;;  %vm1421_vm0 = vcmask 130048  }
  0x1e   :  { %1559 = vmatprep.subr.bf16.mxu1 %v4773_v1  ;;  %v4777_v4 = vld [vmem:[%s7396_s1 + $0xc4] ss:$16 sps:$4 sm:$0xff]   ;;  %1447 = vmatpush1.bf16.msra.mxu0 %v4775_v2  ;;  %v4781_v6 = vld [vmem:[%s7396_s1 + $0xc0] ss:$16 sps:$4 sm:$0xff]   ;;  %v58_v48 = vld [vmem:[%s7395_s0 + $0x18] sm:$0xff] }
  0x1f   :  { %1560 = vmatpush1.bf16.msra.mxu1 %v4776_v3  ;;  %v4779_v5 = vld [vmem:[%s7396_s1 + $0x2c4] ss:$16 sps:$4 sm:$0xff]   ;;  %1448 = vmatprep.subr.bf16.mxu0 %v4777_v4  ;;  %v4782_v7 = vld [vmem:[%s7396_s1 + $0x2c0] ss:$16 sps:$4 sm:$0xff]  }
  0x20   :  { %1561 = vmatprep.subr.bf16.mxu1 %v4779_v5  ;;  %v4783_v8 = vld [vmem:[%s7396_s1 + $0xa4] ss:$16 sps:$4 sm:$0xff]   ;;  %v4787_v10 = vld [vmem:[%s7396_s1 + $0xa0] ss:$16 sps:$4 sm:$0xff]  }
  0x21   :  { %v4785_v9 = vld [vmem:[%s7396_s1 + $0x2a4] ss:$16 sps:$4 sm:$0xff]   ;;  %v4788_v11 = vld [vmem:[%s7396_s1 + $0x2a0] ss:$16 sps:$4 sm:$0xff]  }
  0x22   :  { %1449 = vmatpush1.bf16.msra.mxu0 %v4781_v6  ;;  %v4789_v12 = vld [vmem:[%s7396_s1 + $0x84] ss:$16 sps:$4 sm:$0xff]   ;;  %v4793_v14 = vld [vmem:[%s7396_s1 + $0x80] ss:$16 sps:$4 sm:$0xff]  }
  0x23   :  { %1562 = vmatpush1.bf16.msra.mxu1 %v4782_v7  ;;  %1450 = vmatprep.subr.bf16.mxu0 %v4783_v8  ;;  %v4791_v13 = vld [vmem:[%s7396_s1 + $0x284] ss:$16 sps:$4 sm:$0xff]   ;;  %v4794_v15 = vld [vmem:[%s7396_s1 + $0x280] ss:$16 sps:$4 sm:$0xff]   ;;  %v62_v7 = vld [vmem:[%s7395_s0 + $0x38] sm:$0xff] }
  0x24   :  { %1563 = vmatprep.subr.bf16.mxu1 %v4785_v9  ;;  %v4795_v16 = vld [vmem:[%s7396_s1 + $0x64] ss:$16 sps:$4 sm:$0xff]   ;;  %v4799_v18 = vld [vmem:[%s7396_s1 + $0x60] ss:$16 sps:$4 sm:$0xff]   ;;  %v64_v9 = vld [vmem:[%s7395_s0 + $0x48] sm:$0xff] }
  0x25   :  { %v4797_v17 = vld [vmem:[%s7396_s1 + $0x264] ss:$16 sps:$4 sm:$0xff]   ;;  %v4800_v19 = vld [vmem:[%s7396_s1 + $0x260] ss:$16 sps:$4 sm:$0xff]  }
  0x26   :  { %1451 = vmatpush1.bf16.msra.mxu0 %v4787_v10  ;;  %v4801_v20 = vld [vmem:[%s7396_s1 + $0x44] ss:$16 sps:$4 sm:$0xff]   ;;  %v4805_v22 = vld [vmem:[%s7396_s1 + $0x40] ss:$16 sps:$4 sm:$0xff]  }
  0x27   :  { %1564 = vmatpush1.bf16.msra.mxu1 %v4788_v11  ;;  %1452 = vmatprep.subr.bf16.mxu0 %v4789_v12  ;;  %v4803_v21 = vld [vmem:[%s7396_s1 + $0x244] ss:$16 sps:$4 sm:$0xff]   ;;  %v4806_v23 = vld [vmem:[%s7396_s1 + $0x240] ss:$16 sps:$4 sm:$0xff]  }
  0x28   :  { %1565 = vmatprep.subr.bf16.mxu1 %v4791_v13  ;;  %v4807_v24 = vld [vmem:[%s7396_s1 + $0x24] ss:$16 sps:$4 sm:$0xff]   ;;  %v4811_v26 = vld [vmem:[%s7396_s1 + $0x20] ss:$16 sps:$4 sm:$0xff]   ;;  %v70_v13 = vld [vmem:[%s7395_s0 + $0x78] sm:$0xff] }
  0x29   :  { %v4809_v25 = vld [vmem:[%s7396_s1 + $0x224] ss:$16 sps:$4 sm:$0xff]   ;;  %v4812_v27 = vld [vmem:[%s7396_s1 + $0x220] ss:$16 sps:$4 sm:$0xff]  }
  0x2a   :  { %1453 = vmatpush1.bf16.msra.mxu0 %v4793_v14  ;;  %v4813_v28 = vld [vmem:[%s7396_s1 + $0x4] ss:$16 sps:$4 sm:$0xff]   ;;  %v4817_v30 = vld [vmem:[%s7396_s1] ss:$16 sps:$4 sm:$0xff]  }
  0x2b   :  { %1566 = vmatpush1.bf16.msra.mxu1 %v4794_v15  ;;  %1454 = vmatprep.subr.bf16.mxu0 %v4795_v16  ;;  %v4815_v29 = vld [vmem:[%s7396_s1 + $0x204] ss:$16 sps:$4 sm:$0xff]   ;;  %v4818_v31 = vld [vmem:[%s7396_s1 + $0x200] ss:$16 sps:$4 sm:$0xff]  }
  0x2c   :  { %1567 = vmatprep.subr.bf16.mxu1 %v4797_v17  ;;  %v4819_v32 = vld [vmem:[%s7396_s1 + $0x1e4] ss:$16 sps:$4 sm:$0xff]   ;;  %v4823_v34 = vld [vmem:[%s7396_s1 + $0x1e0] ss:$16 sps:$4 sm:$0xff]   ;;  %v72_v17 = vld [vmem:[%s7395_s0 + $0x88] sm:$0xff] }
  0x2d   :  { %v4821_v33 = vld [vmem:[%s7396_s1 + $0x3e4] ss:$16 sps:$4 sm:$0xff]   ;;  %v4824_v35 = vld [vmem:[%s7396_s1 + $0x3e0] ss:$16 sps:$4 sm:$0xff]  }
  0x2e   :  { %1455 = vmatpush1.bf16.msra.mxu0 %v4799_v18  ;;  %v4825_v36 = vld [vmem:[%s7396_s1 + $0x1c4] ss:$16 sps:$4 sm:$0xff]   ;;  %v4829_v38 = vld [vmem:[%s7396_s1 + $0x1c0] ss:$16 sps:$4 sm:$0xff]  }
  0x2f   :  { %1568 = vmatpush1.bf16.msra.mxu1 %v4800_v19  ;;  %1456 = vmatprep.subr.bf16.mxu0 %v4801_v20  ;;  %v4827_v37 = vld [vmem:[%s7396_s1 + $0x3c4] ss:$16 sps:$4 sm:$0xff]   ;;  %v4830_v39 = vld [vmem:[%s7396_s1 + $0x3c0] ss:$16 sps:$4 sm:$0xff]  }
  0x30   :  { %1569 = vmatprep.subr.bf16.mxu1 %v4803_v21  ;;  %v4831_v40 = vld [vmem:[%s7396_s1 + $0x1a4] ss:$16 sps:$4 sm:$0xff]   ;;  %v4835_v42 = vld [vmem:[%s7396_s1 + $0x1a0] ss:$16 sps:$4 sm:$0xff]  }
  0x31   :  { %v4833_v41 = vld [vmem:[%s7396_s1 + $0x3a4] ss:$16 sps:$4 sm:$0xff]   ;;  %v4836_v43 = vld [vmem:[%s7396_s1 + $0x3a0] ss:$16 sps:$4 sm:$0xff]  }
  0x32   :  { %1457 = vmatpush1.bf16.msra.mxu0 %v4805_v22  ;;  %v4837_v44 = vld [vmem:[%s7396_s1 + $0x184] ss:$16 sps:$4 sm:$0xff]   ;;  %v4841_v50 = vld [vmem:[%s7396_s1 + $0x180] ss:$16 sps:$4 sm:$0xff]  }
  0x33   :  { %1570 = vmatpush1.bf16.msra.mxu1 %v4806_v23  ;;  %1458 = vmatprep.subr.bf16.mxu0 %v4807_v24  ;;  %v4839_v45 = vld [vmem:[%s7396_s1 + $0x384] ss:$16 sps:$4 sm:$0xff]   ;;  %v4842_v51 = vld [vmem:[%s7396_s1 + $0x380] ss:$16 sps:$4 sm:$0xff]  }
  0x34   :  { %1571 = vmatprep.subr.bf16.mxu1 %v4809_v25  ;;  %v63_v47 = vld [vmem:[%s7395_s0 + $0x40] sm:$0xff]  ;;  %v65_v49 = vld [vmem:[%s7395_s0 + $0x50] sm:$0xff]  ;;  %v76_v25 = vld [vmem:[%s7395_s0 + $0xa8] sm:$0xff] }
  0x35   :  { %v4843_v52 = vld [vmem:[%s7396_s1 + $0x164] ss:$16 sps:$4 sm:$0xff]   ;;  %v5546_v53 = vpack.c.bf16 %v63_v47, %v56_v46  ;;  %v5548_v54 = vpack.c.bf16 %v65_v49, %v58_v48  ;;  %v4847_v56 = vld [vmem:[%s7396_s1 + $0x160] ss:$16 sps:$4 sm:$0xff]   ;;  %v100_v47 = vld [vmem:[%s7395_s0 + $0x168] sm:$0xff] }
  0x36   :  { %1459 = vmatpush1.bf16.msra.mxu0 %v4811_v26  ;;  %v4845_v55 = vld [vmem:[%s7396_s1 + $0x364] ss:$16 sps:$4 sm:$0xff]   ;;  %v4848_v57 = vld [vmem:[%s7396_s1 + $0x360] ss:$16 sps:$4 sm:$0xff]  }
  0x37   :  { %1572 = vmatpush1.bf16.msra.mxu1 %v4812_v27  ;;  %1460 = vmatprep.subr.bf16.mxu0 %v4813_v28  ;;  %v4849_v58 = vld [vmem:[%s7396_s1 + $0x144] ss:$16 sps:$4 sm:$0xff]   ;;  %v4853_v60 = vld [vmem:[%s7396_s1 + $0x140] ss:$16 sps:$4 sm:$0xff]   ;;  %v78_v27 = vld [vmem:[%s7395_s0 + $0xb8] sm:$0xff] }
  0x38   :  { %1573 = vmatprep.subr.bf16.mxu1 %v4815_v29  ;;  %1478 = vmatprep.mubr.bf16.mxu0 %v5546_v53  ;;  %v4851_v59 = vld [vmem:[%s7396_s1 + $0x344] ss:$16 sps:$4 sm:$0xff]   ;;  %v4854_v61 = vld [vmem:[%s7396_s1 + $0x340] ss:$16 sps:$4 sm:$0xff]   ;;  %v84_v29 = vld [vmem:[%s7395_s0 + $0xe8] sm:$0xff] }
  0x39   :  { %1591 = vmatprep.mubr.bf16.mxu1 %v5548_v54  ;;  %v4855_v62 = vld [vmem:[%s7396_s1 + $0x124] ss:$16 sps:$4 sm:$0xff]   ;;  %v4859_v0 = vld [vmem:[%s7396_s1 + $0x120] ss:$16 sps:$4 sm:$0xff]  }
  0x3a   :  { %1461 = vmatpush1.bf16.msra.mxu0 %v4817_v30  ;;  %v4857_v63 = vld [vmem:[%s7396_s1 + $0x324] ss:$16 sps:$4 sm:$0xff]   ;;  %v4860_v1 = vld [vmem:[%s7396_s1 + $0x320] ss:$16 sps:$4 sm:$0xff]  }
  0x3b   :  { %1574 = vmatpush1.bf16.msra.mxu1 %v4818_v31  ;;  %1462 = vmatprep.subr.bf16.mxu0 %v4819_v32  ;;  %v4861_v2 = vld [vmem:[%s7396_s1 + $0x104] ss:$16 sps:$4 sm:$0xff]   ;;  %v4865_v4 = vld [vmem:[%s7396_s1 + $0x100] ss:$16 sps:$4 sm:$0xff]   ;;  %v86_v31 = vld [vmem:[%s7395_s0 + $0xf8] sm:$0xff] }
  0x3c   :  { %1575 = vmatprep.subr.bf16.mxu1 %v4821_v33  ;;  %v4863_v3 = vld [vmem:[%s7396_s1 + $0x304] ss:$16 sps:$4 sm:$0xff]   ;;  %v4866_v5 = vld [vmem:[%s7396_s1 + $0x300] ss:$16 sps:$4 sm:$0xff]  }
  0x3d   :  { %v55_v6 = vld [vmem:[%s7395_s0] sm:$0xff]  ;;  %v57_v8 = vld [vmem:[%s7395_s0 + $0x10] sm:$0xff] }
  0x3e   :  { %1463 = vmatpush2.bf16.msra.mxu0 %v4823_v34  ;;  %v4869_v10 = vld [vmem:[%s7396_s1 + $0x4e4] ss:$16 sps:$4 sm:$0xff]   ;;  %v4867_v12 = vld [vmem:[%s7396_s1 + $0x4e0] ss:$16 sps:$4 sm:$0xff]   ;;  %v5624_v15 = vpack.c.bf16 %v62_v7, %v55_v6  ;;  %v5626_v16 = vpack.c.bf16 %v64_v9, %v57_v8 }
  0x3f   :  { %1576 = vmatpush2.bf16.msra.mxu1 %v4824_v35  ;;  %1464 = vmatprep.subr.bf16.mxu0 %v4825_v36  ;;  %v4872_v11 = vld [vmem:[%s7396_s1 + $0x604] ss:$16 sps:$4 sm:$0xff]   ;;  %v4870_v19 = vld [vmem:[%s7396_s1 + $0x600] ss:$16 sps:$4 sm:$0xff]  }
  0x40   :  { %1577 = vmatprep.subr.bf16.mxu1 %v4827_v37  ;;  %v77_v14 = vld [vmem:[%s7395_s0 + $0xb0] sm:$0xff]  ;;  %v79_v18 = vld [vmem:[%s7395_s0 + $0xc0] sm:$0xff] }
  0x41   :  { %v4875_v20 = vld [vmem:[%s7396_s1 + $0x4c4] ss:$16 sps:$4 sm:$0xff]   ;;  %v5640_v21 = vpack.c.bf16 %v77_v14, %v70_v13  ;;  %v4873_v22 = vld [vmem:[%s7396_s1 + $0x4c0] ss:$16 sps:$4 sm:$0xff]   ;;  %v5645_v23 = vpack.c.bf16 %v79_v18, %v72_v17  ;;  %v4923_v13 = vld [vmem:[%s7396_s1 + $0x2ec] ss:$16 sps:$4 sm:$0xff]  }
  0x42   :  { %1465 = vmatpush2.bf16.msra.mxu0 %v4829_v38  ;;  %v69_v24 = vld [vmem:[%s7395_s0 + $0x70] sm:$0xff]  ;;  %v71_v26 = vld [vmem:[%s7395_s0 + $0x80] sm:$0xff]  ;;  %v120_v14 = vld [vmem:[%s7395_s0 + $0x208] sm:$0xff] }
  0x43   :  { %1578 = vmatpush2.bf16.msra.mxu1 %v4830_v39  ;;  %1466 = vmatprep.subr.bf16.mxu0 %v4831_v40  ;;  %v4878_v28 = vld [vmem:[%s7396_s1 + $0x4a4] ss:$16 sps:$4 sm:$0xff]   ;;  %v5678_v33 = vpack.c.bf16 %v76_v25, %v69_v24  ;;  %v5680_v34 = vpack.c.bf16 %v78_v27, %v71_v26  ;;  %v4876_v35 = vld [vmem:[%s7396_s1 + $0x4a0] ss:$16 sps:$4 sm:$0xff]   ;;  %v126_v18 = vld [vmem:[%s7395_s0 + $0x238] sm:$0xff] }
  0x44   :  { %1579 = vmatprep.subr.bf16.mxu1 %v4833_v41  ;;  %v91_v30 = vld [vmem:[%s7395_s0 + $0x120] sm:$0xff]  ;;  %v93_v32 = vld [vmem:[%s7395_s0 + $0x130] sm:$0xff]  ;;  %v90_v41 = vld [vmem:[%s7395_s0 + $0x118] sm:$0xff] }
  0x45   :  { %v5685_v36 = vpack.c.bf16 %v91_v30, %v84_v29  ;;  %v4881_v37 = vld [vmem:[%s7396_s1 + $0x484] ss:$16 sps:$4 sm:$0xff]   ;;  %v5690_v38 = vpack.c.bf16 %v93_v32, %v86_v31  ;;  %v4879_v39 = vld [vmem:[%s7396_s1 + $0x480] ss:$16 sps:$4 sm:$0xff]   ;;  %v132_v32 = vld [vmem:[%s7395_s0 + $0x268] sm:$0xff] }
  0x46   :  { %1467 = vmatpush2.bf16.msra.mxu0 %v4835_v42  ;;  %v83_v40 = vld [vmem:[%s7395_s0 + $0xe0] sm:$0xff]  ;;  %v85_v42 = vld [vmem:[%s7395_s0 + $0xf0] sm:$0xff] }
  0x47   :  { %1580 = vmatpush2.bf16.msra.mxu1 %v4836_v43  ;;  %1468 = vmatprep.subr.bf16.mxu0 %v4837_v44  ;;  %v92_v43 = vld [vmem:[%s7395_s0 + $0x128] sm:$0xff]  ;;  %v4884_v44 = vld [vmem:[%s7396_s1 + $0x464] ss:$16 sps:$4 sm:$0xff]   ;;  %v5726_v49 = vpack.c.bf16 %v90_v41, %v83_v40  ;;  %v4891_v9 = vld [vmem:[%s7396_s1 + $0x400] ss:$16 sps:$4 sm:$0xff]  }
  0x48   :  { %1581 = vmatprep.subr.bf16.mxu1 %v4839_v45  ;;  %v98_v45 = vld [vmem:[%s7395_s0 + $0x158] sm:$0xff]  ;;  %v105_v46 = vld [vmem:[%s7395_s0 + $0x190] sm:$0xff]  ;;  %v107_v48 = vld [vmem:[%s7395_s0 + $0x1a0] sm:$0xff] }
  0x49   :  { %v4893_v7 = vld [vmem:[%s7396_s1 + $0x404] ss:$16 sps:$4 sm:$0xff]   ;;  %v4894_v26 = vld [vmem:[%s7396_s1 + $0x5e0] ss:$16 sps:$4 sm:$0xff]   ;;  %v140_v40 = vld [vmem:[%s7395_s0 + $0x2a8] sm:$0xff] }
  0x4a   :  { %1469 = vmatpush2.bf16.msra.mxu0 %v4841_v50  ;;  %v5728_v50 = vpack.c.bf16 %v92_v43, %v85_v42  ;;  %v4896_v17 = vld [vmem:[%s7396_s1 + $0x5e4] ss:$16 sps:$4 sm:$0xff]   ;;  %v4897_v30 = vld [vmem:[%s7396_s1 + $0x5c0] ss:$16 sps:$4 sm:$0xff]   ;;  %v142_v42 = vld [vmem:[%s7395_s0 + $0x2b8] sm:$0xff] }
  0x4b   :  { %1582 = vmatpush2.bf16.msra.mxu1 %v4842_v51  ;;  %1470 = vmatprep.subr.bf16.mxu0 %v4843_v52  ;;  %v4882_v51 = vld [vmem:[%s7396_s1 + $0x460] ss:$16 sps:$4 sm:$0xff]   ;;  %v5733_v52 = vpack.c.bf16 %v105_v46, %v98_v45 }
  0x4c   :  { %1583 = vmatprep.subr.bf16.mxu1 %v4845_v55  ;;  %v4887_v55 = vld [vmem:[%s7396_s1 + $0x444] ss:$16 sps:$4 sm:$0xff]   ;;  %v4900_v46 = vld [vmem:[%s7396_s1 + $0x5a0] ss:$16 sps:$4 sm:$0xff]  }
  0x4d   :  { %v125_v31 = vld [vmem:[%s7395_s0 + $0x230] sm:$0xff]  ;;  %v147_v41 = vld [vmem:[%s7395_s0 + $0x2e0] sm:$0xff] }
  0x4e   :  { %1471 = vmatpush2.bf16.msra.mxu0 %v4847_v56  ;;  %v5738_v56 = vpack.c.bf16 %v107_v48, %v100_v47  ;;  %v149_v43 = vld [vmem:[%s7395_s0 + $0x2f0] sm:$0xff]  ;;  %v5880_v47 = vpack.c.bf16 %v147_v41, %v140_v40  ;;  %v68_v41 = vld [vmem:[%s7395_s0 + $0x68] sm:$0xff] }
  0x4f   :  { %1584 = vmatpush2.bf16.msra.mxu1 %v4848_v57  ;;  %1472 = vmatprep.subr.bf16.mxu0 %v4849_v58  ;;  %v4885_v57 = vld [vmem:[%s7396_s1 + $0x440] ss:$16 sps:$4 sm:$0xff]   ;;  %v4905_v48 = vld [vmem:[%s7396_s1 + $0x584] ss:$16 sps:$4 sm:$0xff]  }
  0x50   :  { %1585 = vmatprep.subr.bf16.mxu1 %v4851_v59  ;;  %v97_v58 = vld [vmem:[%s7395_s0 + $0x150] sm:$0xff]  ;;  %v104_v59 = vld [vmem:[%s7395_s0 + $0x188] sm:$0xff] }
  0x51   :  { %v61_v40 = vld [vmem:[%s7395_s0 + $0x30] sm:$0xff] }
  0x52   :  { %1473 = vmatpush2.bf16.msra.mxu0 %v4853_v60  ;;  %v99_v60 = vld [vmem:[%s7395_s0 + $0x160] sm:$0xff] }
  0x53   :  { %1586 = vmatpush2.bf16.msra.mxu1 %v4854_v61  ;;  %1474 = vmatprep.subr.bf16.mxu0 %v4855_v62  ;;  %v106_v61 = vld [vmem:[%s7395_s0 + $0x198] sm:$0xff]  ;;  %v4890_v62 = vld [vmem:[%s7396_s1 + $0x424] ss:$16 sps:$4 sm:$0xff]  }
  0x54   :  { %1587 = vmatprep.subr.bf16.mxu1 %v4857_v63  ;;  %v112_v63 = vld [vmem:[%s7395_s0 + $0x1c8] sm:$0xff] }
  0x56   :  { %1475 = vmatpush2.bf16.msra.mxu0 %v4859_v0  ;;  %v119_v0 = vld [vmem:[%s7395_s0 + $0x200] sm:$0xff] }
  0x57   :  { %1588 = vmatpush2.bf16.msra.mxu1 %v4860_v1  ;;  %1476 = vmatprep.subr.bf16.mxu0 %v4861_v2  ;;  %v114_v1 = vld [vmem:[%s7395_s0 + $0x1d8] sm:$0xff]  ;;  %v121_v2 = vld [vmem:[%s7395_s0 + $0x210] sm:$0xff]  ;;  %v5781_v6 = vpack.c.bf16 %v119_v0, %v112_v63  ;;  %v156_v0 = vld [vmem:[%s7395_s0 + $0x328] sm:$0xff] }
  0x58   :  { %1589 = vmatprep.subr.bf16.mxu1 %v4863_v3  ;;  %v5774_v3 = vpack.c.bf16 %v104_v59, %v97_v58  ;;  %v5786_v8 = vpack.c.bf16 %v121_v2, %v114_v1  ;;  %v146_v58 = vld [vmem:[%s7395_s0 + $0x2d8] sm:$0xff]  ;;  %v141_v59 = vld [vmem:[%s7395_s0 + $0x2b0] sm:$0xff]  ;;  %v163_v1 = vld [vmem:[%s7395_s0 + $0x360] sm:$0xff] }
  0x59   :  { %v161_v63 = vld [vmem:[%s7395_s0 + $0x350] sm:$0xff] }
  0x5a   :  { %1477 = vmatpush2.bf16.msra.mxu0 %v4865_v4  ;;  %v5776_v4 = vpack.c.bf16 %v106_v61, %v99_v60  ;;  %v148_v60 = vld [vmem:[%s7395_s0 + $0x2e8] sm:$0xff]  ;;  %v4908_v61 = vld [vmem:[%s7396_s1 + $0x564] ss:$16 sps:$4 sm:$0xff]  }
  0x5b   :  { %1590 = vmatpush2.bf16.msra.mxu1 %v4866_v5  ;;  %1672 = vmatprep.subr.bf16.mxu0 %v4869_v10  ;;  %v4888_v5 = vld [vmem:[%s7396_s1 + $0x420] ss:$16 sps:$4 sm:$0xff]  }
  0x5c   :  { %1799 = vmatprep.subr.bf16.mxu1 %v4872_v11  ;;  %v111_v10 = vld [vmem:[%s7395_s0 + $0x1c0] sm:$0xff]  ;;  %v118_v11 = vld [vmem:[%s7395_s0 + $0x1f8] sm:$0xff] }
  0x5d   :  { %1479 = vmatmul.mubr.bf16.vlgmr.msra.gmra.mxu0 %v5624_v15  ;;  %v5825_v24 = vpack.c.bf16 %v118_v11, %v111_v10  ;;  %v4911_v10 = vld [vmem:[%s7396_s1 + $0x544] ss:$16 sps:$4 sm:$0xff]   ;;  %v5933_v11 = vpack.c.bf16 %v163_v1, %v156_v0  ;;  %v4927_v0 = vld [vmem:[%s7396_s1 + $0x2c8] ss:$16 sps:$4 sm:$0xff]  }
  0x5e   :  { %1592 = vmatmul.mubr.bf16.vlgmr.msra.gmra.mxu1 %v5626_v16  ;;  %1673 = vmatpush1.bf16.msra.mxu0 %v4867_v12  ;;  %v113_v12 = vld [vmem:[%s7395_s0 + $0x1d0] sm:$0xff] }
  0x5f   :  { %1800 = vmatpush1.bf16.msra.mxu1 %v4870_v19  ;;  %1674 = vmatprep.subr.bf16.mxu0 %v4875_v20  ;;  %v133_v19 = vld [vmem:[%s7395_s0 + $0x270] sm:$0xff]  ;;  %v128_v20 = vld [vmem:[%s7395_s0 + $0x248] sm:$0xff]  ;;  %v5827_v25 = vpack.c.bf16 %v120_v14, %v113_v12 }
  0x60   :  { %1488 = vmatprep.mubr.bf16.mxu0 %v5640_v21  ;;  %1601 = vmatprep.mubr.bf16.mxu1 %v5645_v23  ;;  %v5832_v27 = vpack.c.bf16 %v133_v19, %v126_v18  ;;  %v4909_v12 = vld [vmem:[%s7396_s1 + $0x540] ss:$16 sps:$4 sm:$0xff]   ;;  %v160_v14 = vld [vmem:[%s7395_s0 + $0x348] sm:$0xff]  ;;  %v162_v18 = vld [vmem:[%s7395_s0 + $0x358] sm:$0xff] }
  0x61   :  { %2011 = vmatprep.subr.bf16.mxu1 %v4923_v13  ;;  %v153_v13 = vld [vmem:[%s7395_s0 + $0x310] sm:$0xff] }
  0x62   :  { %1675 = vmatpush1.bf16.msra.mxu0 %v4873_v22  ;;  %v135_v22 = vld [vmem:[%s7395_s0 + $0x280] sm:$0xff]  ;;  %v73_v1 = vld [vmem:[%s7395_s0 + $0x90] sm:$0xff] }
  0x63   :  { %1676 = vmatprep.subr.bf16.mxu0 %v4878_v28  ;;  %v4899_v28 = vld [vmem:[%s7396_s1 + $0x5c4] ss:$16 sps:$4 sm:$0xff]   ;;  %v5837_v29 = vpack.c.bf16 %v135_v22, %v128_v20  ;;  %v60_v20 = vld [vmem:[%s7395_s0 + $0x28] sm:$0xff] }
  0x64   :  { %v4914_v19 = vld [vmem:[%s7396_s1 + $0x524] ss:$16 sps:$4 sm:$0xff]  }
  0x65   :  { %1489 = vmatmul.mubr.bf16.gmra.mxu0 %v5678_v33  ;;  %v67_v22 = vld [vmem:[%s7395_s0 + $0x60] sm:$0xff] }
  0x66   :  { %1602 = vmatmul.mubr.bf16.gmra.mxu1 %v5680_v34  ;;  %1677 = vmatpush1.bf16.msra.mxu0 %v4876_v35  ;;  %v127_v35 = vld [vmem:[%s7395_s0 + $0x240] sm:$0xff] }
  0x67   :  { %1498 = vmatprep.mubr.bf16.mxu0 %v5685_v36  ;;  %1678 = vmatprep.subr.bf16.mxu0 %v4881_v37  ;;  %v134_v37 = vld [vmem:[%s7395_s0 + $0x278] sm:$0xff] }
  0x68   :  { %1611 = vmatprep.mubr.bf16.mxu1 %v5690_v38  ;;  %v5875_v45 = vpack.c.bf16 %v134_v37, %v127_v35  ;;  %v4915_v35 = vld [vmem:[%s7396_s1 + $0x500] ss:$16 sps:$4 sm:$0xff]  }
  0x69   :  { %v59_v37 = vld [vmem:[%s7395_s0 + $0x20] sm:$0xff] }
  0x6a   :  { %1679 = vmatpush1.bf16.msra.mxu0 %v4879_v39  ;;  %v4902_v39 = vld [vmem:[%s7396_s1 + $0x5a4] ss:$16 sps:$4 sm:$0xff]  }
  0x6b   :  { %1680 = vmatprep.subr.bf16.mxu0 %v4884_v44  ;;  %v5873_v44 = vpack.c.bf16 %v132_v32, %v125_v31  ;;  %v5970_v31 = vpack.c.bf16 %v67_v22, %v60_v20  ;;  %v4917_v32 = vld [vmem:[%s7396_s1 + $0x504] ss:$16 sps:$4 sm:$0xff]   ;;  %v4930_v22 = vld [vmem:[%s7396_s1 + $0xa8] ss:$16 sps:$4 sm:$0xff]  }
  0x6c   :  { %v95_v20 = vld [vmem:[%s7395_s0 + $0x140] sm:$0xff] }
  0x6d   :  { %1499 = vmatmul.mubr.bf16.gmra.mxu0 %v5726_v49 }
  0x6e   :  { %1612 = vmatmul.mubr.bf16.gmra.mxu1 %v5728_v50  ;;  %1681 = vmatpush1.bf16.msra.mxu0 %v4882_v51  ;;  %v5885_v51 = vpack.c.bf16 %v149_v43, %v142_v42  ;;  %v7404_v42 = vmov 0   ;;  %v4920_v43 = vld [vmem:[%s7396_s1 + $0xec] ss:$16 sps:$4 sm:$0xff]  }
  0x6f   :  { %1508 = vmatprep.mubr.bf16.mxu0 %v5733_v52  ;;  %1682 = vmatprep.subr.bf16.mxu0 %v4887_v55  ;;  %v4903_v55 = vld [vmem:[%s7396_s1 + $0x580] ss:$16 sps:$4 sm:$0xff]  }
  0x70   :  { %1621 = vmatprep.mubr.bf16.mxu1 %v5738_v56 }
  0x72   :  { %1683 = vmatpush1.bf16.msra.mxu0 %v4885_v57  ;;  %v139_v57 = vld [vmem:[%s7395_s0 + $0x2a0] sm:$0xff] }
  0x73   :  { %1684 = vmatprep.subr.bf16.mxu0 %v4890_v62  ;;  %v154_v62 = vld [vmem:[%s7395_s0 + $0x318] sm:$0xff]  ;;  %v5921_v2 = vpack.c.bf16 %v146_v58, %v139_v57  ;;  %v6005_v57 = vpack.c.bf16 %v68_v41, %v61_v40  ;;  %v87_v41 = vld [vmem:[%s7395_s0 + $0x100] sm:$0xff] }
  0x74   :  { %v74_v58 = vld [vmem:[%s7395_s0 + $0x98] sm:$0xff] }
  0x75   :  { %1509 = vmatmul.mubr.bf16.gmra.mxu0 %v5774_v3 }
  0x76   :  { %1622 = vmatmul.mubr.bf16.gmra.mxu1 %v5776_v4  ;;  %1685 = vmatpush1.bf16.msra.mxu0 %v4888_v5  ;;  %v5923_v5 = vpack.c.bf16 %v148_v60, %v141_v59  ;;  %v81_v59 = vld [vmem:[%s7395_s0 + $0xd0] sm:$0xff]  ;;  %v4926_v60 = vld [vmem:[%s7396_s1 + $0xcc] ss:$16 sps:$4 sm:$0xff]  }
  0x77   :  { %1518 = vmatprep.mubr.bf16.mxu0 %v5781_v6  ;;  %1686 = vmatprep.subr.bf16.mxu0 %v4893_v7  ;;  %v4906_v7 = vld [vmem:[%s7396_s1 + $0x560] ss:$16 sps:$4 sm:$0xff]  }
  0x78   :  { %1631 = vmatprep.mubr.bf16.mxu1 %v5786_v8 }
  0x7a   :  { %1687 = vmatpush1.bf16.msra.mxu0 %v4891_v9  ;;  %v5928_v9 = vpack.c.bf16 %v161_v63, %v154_v62  ;;  %v4924_v62 = vld [vmem:[%s7396_s1 + $0xc8] ss:$16 sps:$4 sm:$0xff]   ;;  %v6022_v63 = vpack.c.bf16 %v81_v59, %v74_v58  ;;  %v4944_v58 = vld [vmem:[%s7396_s1 + $0x6c] ss:$16 sps:$4 sm:$0xff]  }
  0x7b   :  { %1688 = vmatprep.subr.bf16.mxu0 %v4896_v17  ;;  %v155_v17 = vld [vmem:[%s7395_s0 + $0x320] sm:$0xff]  ;;  %v4947_v59 = vld [vmem:[%s7396_s1 + $0x26c] ss:$16 sps:$4 sm:$0xff]  }
  0x7d   :  { %1519 = vmatmul.mubr.bf16.gmra.mxu0 %v5825_v24 }
  0x7e   :  { %1632 = vmatmul.mubr.bf16.gmra.mxu1 %v5827_v25  ;;  %1689 = vmatpush2.bf16.msra.mxu0 %v4894_v26  ;;  %v5963_v26 = vpack.c.bf16 %v160_v14, %v153_v13  ;;  %v4932_v13 = vld [vmem:[%s7396_s1 + $0xac] ss:$16 sps:$4 sm:$0xff]  }
  0x7f   :  { %1528 = vmatprep.mubr.bf16.mxu0 %v5832_v27  ;;  %1690 = vmatprep.subr.bf16.mxu0 %v4899_v28  ;;  %v5965_v28 = vpack.c.bf16 %v162_v18, %v155_v17  ;;  %v4935_v14 = vld [vmem:[%s7396_s1 + $0x2ac] ss:$16 sps:$4 sm:$0xff]  }
  0x80   :  { %1641 = vmatprep.mubr.bf16.mxu1 %v5837_v29  ;;  %v88_v17 = vld [vmem:[%s7395_s0 + $0x108] sm:$0xff] }
  0x81   :  { %v6078_v40 = vpack.c.bf16 %v95_v20, %v88_v17  ;;  %v101_v20 = vld [vmem:[%s7395_s0 + $0x170] sm:$0xff] }
  0x82   :  { %1691 = vmatpush2.bf16.msra.mxu0 %v4897_v30  ;;  %v4912_v30 = vld [vmem:[%s7396_s1 + $0x520] ss:$16 sps:$4 sm:$0xff]  }
  0x83   :  { %1692 = vmatprep.subr.bf16.mxu0 %v4902_v39  ;;  %v66_v39 = vld [vmem:[%s7395_s0 + $0x58] sm:$0xff] }
  0x85   :  { %1529 = vmatmul.mubr.bf16.gmra.mxu0 %v5873_v44 }
  0x86   :  { %1642 = vmatmul.mubr.bf16.gmra.mxu1 %v5875_v45  ;;  %1693 = vmatpush2.bf16.msra.mxu0 %v4900_v46  ;;  %v4918_v46 = vld [vmem:[%s7396_s1 + $0xe8] ss:$16 sps:$4 sm:$0xff]  }
  0x87   :  { %1538 = vmatprep.mubr.bf16.mxu0 %v5880_v47  ;;  %1694 = vmatprep.subr.bf16.mxu0 %v4905_v48  ;;  %v4921_v48 = vld [vmem:[%s7396_s1 + $0x2e8] ss:$16 sps:$4 sm:$0xff]  }
  0x88   :  { %1651 = vmatprep.mubr.bf16.mxu1 %v5885_v51 }
  0x8a   :  { %1695 = vmatpush2.bf16.msra.mxu0 %v4903_v55  ;;  %v6003_v55 = vpack.c.bf16 %v66_v39, %v59_v37  ;;  %v4936_v37 = vld [vmem:[%s7396_s1 + $0x88] ss:$16 sps:$4 sm:$0xff]  }
  0x8b   :  { %1696 = vmatprep.subr.bf16.mxu0 %v4908_v61  ;;  %v4929_v61 = vld [vmem:[%s7396_s1 + $0x2cc] ss:$16 sps:$4 sm:$0xff]   ;;  %v4939_v39 = vld [vmem:[%s7396_s1 + $0x288] ss:$16 sps:$4 sm:$0xff]  }
  0x8d   :  { %1539 = vmatmul.mubr.bf16.gmra.mxu0 %v5921_v2 }
  0x8e   :  { %1652 = vmatmul.mubr.bf16.gmra.mxu1 %v5923_v5  ;;  %1697 = vmatpush2.bf16.msra.mxu0 %v4906_v7  ;;  %v80_v7 = vld [vmem:[%s7395_s0 + $0xc8] sm:$0xff] }
  0x8f   :  { %1548 = vmatprep.mubr.bf16.mxu0 %v5928_v9  ;;  %1698 = vmatprep.subr.bf16.mxu0 %v4911_v10  ;;  %v75_v10 = vld [vmem:[%s7395_s0 + $0xa0] sm:$0xff]  ;;  %v6053_v18 = vpack.c.bf16 %v80_v7, %v73_v1  ;;  %v102_v1 = vld [vmem:[%s7395_s0 + $0x178] sm:$0xff]  ;;  %v109_v7 = vld [vmem:[%s7395_s0 + $0x1b0] sm:$0xff] }
  0x90   :  { %1661 = vmatprep.mubr.bf16.mxu1 %v5933_v11  ;;  %v6131_v17 = vpack.c.bf16 %v109_v7, %v102_v1  ;;  %v4963_v1 = vld [vmem:[%s7396_s1 + $0x208] ss:$16 sps:$4 sm:$0xff]  }
  0x92   :  { %1699 = vmatpush2.bf16.msra.mxu0 %v4909_v12  ;;  %v82_v12 = vld [vmem:[%s7395_s0 + $0xd8] sm:$0xff] }
  0x93   :  { %1700 = vmatprep.subr.bf16.mxu0 %v4914_v19  ;;  %v6055_v19 = vpack.c.bf16 %v82_v12, %v75_v10  ;;  %v4950_v10 = vld [vmem:[%s7396_s1 + $0x4c] ss:$16 sps:$4 sm:$0xff]  }
  0x94   :  { %v4953_v12 = vld [vmem:[%s7396_s1 + $0x24c] ss:$16 sps:$4 sm:$0xff]  }
  0x95   :  { %1549 = vmatmul.mubr.bf16.gmra.mxu0 %v5963_v26 }
  0x96   :  { %1662 = vmatmul.mubr.bf16.gmra.mxu1 %v5965_v28  ;;  %1701 = vmatpush2.bf16.msra.mxu0 %v4912_v30  ;;  %v4933_v30 = vld [vmem:[%s7396_s1 + $0x2a8] ss:$16 sps:$4 sm:$0xff]  }
  0x97   :  { %1704 = vmatprep.mubr.bf16.mxu0 %v5970_v31  ;;  %1702 = vmatprep.subr.bf16.mxu0 %v4917_v32  ;;  %v4938_v32 = vld [vmem:[%s7396_s1 + $0x8c] ss:$16 sps:$4 sm:$0xff]  }
  0x98   :  { %1817 = vmatprep.mubr.bf16.mxu1 %v7404_v42 }
  0x9a   :  { %1703 = vmatpush2.bf16.msra.mxu0 %v4915_v35  ;;  %v4941_v35 = vld [vmem:[%s7396_s1 + $0x28c] ss:$16 sps:$4 sm:$0xff]  }
  0x9b   :  { %1898 = vmatprep.subr.bf16.mxu0 %v4920_v43  ;;  %v94_v43 = vld [vmem:[%s7395_s0 + $0x138] sm:$0xff] }
  0x9d   :  { %1705 = vmatmul.mubr.bf16.vlgmr.msra.gmra.mxu0 %v6003_v55 }
  0x9e   :  { %4459 = vmatmul.mubr.msk.bf16.vlgmr.msra.gmra.mxu1 %vm1421_vm0, %v6005_v57  ;;  %1899 = vmatpush1.bf16.msra.mxu0 %v4918_v46  ;;  %v89_v46 = vld [vmem:[%s7395_s0 + $0x110] sm:$0xff] }
  0x9f   :  { %2012 = vmatpush1.bf16.msra.mxu1 %v4921_v48  ;;  %1900 = vmatprep.subr.bf16.mxu0 %v4926_v60  ;;  %v96_v48 = vld [vmem:[%s7395_s0 + $0x148] sm:$0xff] }
  0xa0   :  { %2013 = vmatprep.subr.bf16.mxu1 %v4929_v61  ;;  %1714 = vmatprep.mubr.bf16.mxu0 %v6022_v63  ;;  %v4942_v60 = vld [vmem:[%s7396_s1 + $0x68] ss:$16 sps:$4 sm:$0xff]  }
  0xa1   :  { %1827 = vmatprep.mubr.bf16.mxu1 %v7404_v42  ;;  %v4945_v61 = vld [vmem:[%s7396_s1 + $0x268] ss:$16 sps:$4 sm:$0xff]  }
  0xa2   :  { %1901 = vmatpush1.bf16.msra.mxu0 %v4924_v62  ;;  %v6109_v62 = vpack.c.bf16 %v94_v43, %v87_v41  ;;  %v4957_v41 = vld [vmem:[%s7396_s1 + $0x228] ss:$16 sps:$4 sm:$0xff]  }
  0xa3   :  { %2014 = vmatpush1.bf16.msra.mxu1 %v4927_v0  ;;  %1902 = vmatprep.subr.bf16.mxu0 %v4932_v13  ;;  %v6111_v0 = vpack.c.bf16 %v96_v48, %v89_v46  ;;  %v4948_v13 = vld [vmem:[%s7396_s1 + $0x48] ss:$16 sps:$4 sm:$0xff]  }
  0xa4   :  { %2015 = vmatprep.subr.bf16.mxu1 %v4935_v14  ;;  %v4951_v14 = vld [vmem:[%s7396_s1 + $0x248] ss:$16 sps:$4 sm:$0xff]  }
  0xa5   :  { %1715 = vmatmul.mubr.bf16.gmra.mxu0 %v6053_v18  ;;  %v116_v48 = vld [vmem:[%s7395_s0 + $0x1e8] sm:$0xff] }
  0xa6   :  { %4460 = vmatmul.mubr.msk.bf16.gmra.mxu1 %vm1421_vm0, %v6055_v19  ;;  %1903 = vmatpush1.bf16.msra.mxu0 %v4930_v22  ;;  %v108_v22 = vld [vmem:[%s7395_s0 + $0x1a8] sm:$0xff] }
  0xa7   :  { %2016 = vmatpush1.bf16.msra.mxu1 %v4933_v30  ;;  %1904 = vmatprep.subr.bf16.mxu0 %v4938_v32  ;;  %v103_v30 = vld [vmem:[%s7395_s0 + $0x180] sm:$0xff]  ;;  %v110_v32 = vld [vmem:[%s7395_s0 + $0x1b8] sm:$0xff]  ;;  %v6162_v43 = vpack.c.bf16 %v108_v22, %v101_v20 }
  0xa8   :  { %2017 = vmatprep.subr.bf16.mxu1 %v4941_v35  ;;  %1724 = vmatprep.mubr.bf16.mxu0 %v6078_v40  ;;  %v4956_v35 = vld [vmem:[%s7396_s1 + $0x2c] ss:$16 sps:$4 sm:$0xff]   ;;  %v6164_v46 = vpack.c.bf16 %v110_v32, %v103_v30  ;;  %v4966_v30 = vld [vmem:[%s7396_s1 + $0x1e8] ss:$16 sps:$4 sm:$0xff]  }
  0xa9   :  { %1837 = vmatprep.mubr.bf16.mxu1 %v7404_v42  ;;  %v4968_v20 = vld [vmem:[%s7396_s1 + $0x1ec] ss:$16 sps:$4 sm:$0xff]   ;;  %v4969_v32 = vld [vmem:[%s7396_s1 + $0x3e8] ss:$16 sps:$4 sm:$0xff]  }
  0xaa   :  { %1905 = vmatpush1.bf16.msra.mxu0 %v4936_v37  ;;  %v4959_v37 = vld [vmem:[%s7396_s1 + $0x22c] ss:$16 sps:$4 sm:$0xff]  }
  0xab   :  { %2018 = vmatpush1.bf16.msra.mxu1 %v4939_v39  ;;  %1906 = vmatprep.subr.bf16.mxu0 %v4944_v58  ;;  %v4954_v39 = vld [vmem:[%s7396_s1 + $0x28] ss:$16 sps:$4 sm:$0xff]   ;;  %v123_v58 = vld [vmem:[%s7395_s0 + $0x220] sm:$0xff]  ;;  %v4971_v22 = vld [vmem:[%s7396_s1 + $0x3ec] ss:$16 sps:$4 sm:$0xff]  }
  0xac   :  { %2019 = vmatprep.subr.bf16.mxu1 %v4947_v59  ;;  %v4962_v59 = vld [vmem:[%s7396_s1 + $0xc] ss:$16 sps:$4 sm:$0xff]   ;;  %v6184_v7 = vpack.c.bf16 %v123_v58, %v116_v48 }
  0xad   :  { %1725 = vmatmul.mubr.bf16.gmra.mxu0 %v6109_v62  ;;  %v4974_v48 = vld [vmem:[%s7396_s1 + $0x1cc] ss:$16 sps:$4 sm:$0xff]  }
  0xae   :  { %4461 = vmatmul.mubr.msk.bf16.gmra.mxu1 %vm1421_vm0, %v6111_v0  ;;  %1907 = vmatpush1.bf16.msra.mxu0 %v4942_v60  ;;  %v4965_v60 = vld [vmem:[%s7396_s1 + $0x20c] ss:$16 sps:$4 sm:$0xff]  }
  0xaf   :  { %2020 = vmatpush1.bf16.msra.mxu1 %v4945_v61  ;;  %1908 = vmatprep.subr.bf16.mxu0 %v4950_v10  ;;  %v4960_v61 = vld [vmem:[%s7396_s1 + $0x8] ss:$16 sps:$4 sm:$0xff]   ;;  %v115_v10 = vld [vmem:[%s7395_s0 + $0x1e0] sm:$0xff]  ;;  %v4977_v58 = vld [vmem:[%s7396_s1 + $0x3cc] ss:$16 sps:$4 sm:$0xff]  }
  0xb0   :  { %2021 = vmatprep.subr.bf16.mxu1 %v4953_v12  ;;  %1734 = vmatprep.mubr.bf16.mxu0 %v6131_v17  ;;  %v122_v12 = vld [vmem:[%s7395_s0 + $0x218] sm:$0xff] }
  0xb1   :  { %1847 = vmatprep.mubr.bf16.mxu1 %v7404_v42 }
  0xb2   :  { %1909 = vmatpush1.bf16.msra.mxu0 %v4948_v13  ;;  %v117_v13 = vld [vmem:[%s7395_s0 + $0x1f0] sm:$0xff] }
  0xb3   :  { %2022 = vmatpush1.bf16.msra.mxu1 %v4951_v14  ;;  %1910 = vmatprep.subr.bf16.mxu0 %v4956_v35  ;;  %v124_v14 = vld [vmem:[%s7395_s0 + $0x228] sm:$0xff]  ;;  %v6215_v35 = vpack.c.bf16 %v122_v12, %v115_v10  ;;  %v131_v12 = vld [vmem:[%s7395_s0 + $0x260] sm:$0xff] }
  0xb4   :  { %2023 = vmatprep.subr.bf16.mxu1 %v4959_v37  ;;  %v6217_v37 = vpack.c.bf16 %v124_v14, %v117_v13  ;;  %v136_v10 = vld [vmem:[%s7395_s0 + $0x288] sm:$0xff]  ;;  %v138_v13 = vld [vmem:[%s7395_s0 + $0x298] sm:$0xff] }
  0xb5   :  { %1735 = vmatmul.mubr.bf16.gmra.mxu0 %v6162_v43  ;;  %v4980_v14 = vld [vmem:[%s7396_s1 + $0x1ac] ss:$16 sps:$4 sm:$0xff]  }
  0xb6   :  { %4462 = vmatmul.mubr.msk.bf16.gmra.mxu1 %vm1421_vm0, %v6164_v46  ;;  %1911 = vmatpush1.bf16.msra.mxu0 %v4954_v39  ;;  %v130_v39 = vld [vmem:[%s7395_s0 + $0x258] sm:$0xff] }
  0xb7   :  { %2024 = vmatpush1.bf16.msra.mxu1 %v4957_v41  ;;  %1912 = vmatprep.subr.bf16.mxu0 %v4962_v59  ;;  %v137_v41 = vld [vmem:[%s7395_s0 + $0x290] sm:$0xff]  ;;  %v4972_v59 = vld [vmem:[%s7396_s1 + $0x1c8] ss:$16 sps:$4 sm:$0xff]  }
  0xb8   :  { %2025 = vmatprep.subr.bf16.mxu1 %v4965_v60  ;;  %1744 = vmatprep.mubr.bf16.mxu0 %v6184_v7  ;;  %v4975_v60 = vld [vmem:[%s7396_s1 + $0x3c8] ss:$16 sps:$4 sm:$0xff]  }
  0xb9   :  { %1857 = vmatprep.mubr.bf16.mxu1 %v7404_v42 }
  0xba   :  { %1913 = vmatpush1.bf16.msra.mxu0 %v4960_v61  ;;  %v6237_v61 = vpack.c.bf16 %v137_v41, %v130_v39  ;;  %v144_v39 = vld [vmem:[%s7395_s0 + $0x2c8] sm:$0xff]  ;;  %v151_v41 = vld [vmem:[%s7395_s0 + $0x300] sm:$0xff] }
  0xbb   :  { %2026 = vmatpush1.bf16.msra.mxu1 %v4963_v1  ;;  %1914 = vmatprep.subr.bf16.mxu0 %v4968_v20  ;;  %v129_v1 = vld [vmem:[%s7395_s0 + $0x250] sm:$0xff]  ;;  %v4983_v20 = vld [vmem:[%s7396_s1 + $0x3ac] ss:$16 sps:$4 sm:$0xff]  }
  0xbc   :  { %2027 = vmatprep.subr.bf16.mxu1 %v4971_v22  ;;  %v4978_v22 = vld [vmem:[%s7396_s1 + $0x1a8] ss:$16 sps:$4 sm:$0xff]  }
  0xbd   :  { %1745 = vmatmul.mubr.bf16.gmra.mxu0 %v6215_v35 }
  0xbe   :  { %4463 = vmatmul.mubr.msk.bf16.gmra.mxu1 %vm1421_vm0, %v6217_v37  ;;  %1915 = vmatpush2.bf16.msra.mxu0 %v4966_v30  ;;  %v6265_v30 = vpack.c.bf16 %v136_v10, %v129_v1  ;;  %v4989_v1 = vld [vmem:[%s7396_s1 + $0x38c] ss:$16 sps:$4 sm:$0xff]   ;;  %v4984_v10 = vld [vmem:[%s7396_s1 + $0x188] ss:$16 sps:$4 sm:$0xff]  }
  0xbf   :  { %2028 = vmatpush2.bf16.msra.mxu1 %v4969_v32  ;;  %1916 = vmatprep.subr.bf16.mxu0 %v4974_v48  ;;  %v6267_v32 = vpack.c.bf16 %v138_v13, %v131_v12  ;;  %v4981_v48 = vld [vmem:[%s7396_s1 + $0x3a8] ss:$16 sps:$4 sm:$0xff]   ;;  %v143_v12 = vld [vmem:[%s7395_s0 + $0x2c0] sm:$0xff] }
  0xc0   :  { %2029 = vmatprep.subr.bf16.mxu1 %v4977_v58  ;;  %1754 = vmatprep.mubr.bf16.mxu0 %v6237_v61  ;;  %7418 = vst [vmem:[#allocation8_spill] sm:$0xff] %v6265_v30  ;;  %v4986_v58 = vld [vmem:[%s7396_s1 + $0x18c] ss:$16 sps:$4 sm:$0xff]  }
  0xc1   :  { %1867 = vmatprep.mubr.bf16.mxu1 %v7404_v42  ;;  %7419 = vst [vmem:[#allocation9_spill] sm:$0xff] %v6267_v32  ;;  %v150_v13 = vld [vmem:[%s7395_s0 + $0x2f8] sm:$0xff] }
  0xc2   :  { %1917 = vmatpush2.bf16.msra.mxu0 %v4972_v59  ;;  %v4987_v59 = vld [vmem:[%s7396_s1 + $0x388] ss:$16 sps:$4 sm:$0xff]  }
  0xc3   :  { %2030 = vmatpush2.bf16.msra.mxu1 %v4975_v60  ;;  %1918 = vmatprep.subr.bf16.mxu0 %v4980_v14  ;;  %v6290_v60 = vpack.c.bf16 %v151_v41, %v144_v39  ;;  %v145_v14 = vld [vmem:[%s7395_s0 + $0x2d0] sm:$0xff]  ;;  %v4992_v39 = vld [vmem:[%s7396_s1 + $0x16c] ss:$16 sps:$4 sm:$0xff]  }
  0xc4   :  { %2031 = vmatprep.subr.bf16.mxu1 %v4983_v20  ;;  %v152_v20 = vld [vmem:[%s7395_s0 + $0x308] sm:$0xff] }
  0xc5   :  { %7420 = vst [vmem:[#allocation10_spill] sm:$0xff] %v6290_v60  ;;  %1755 = vmatmul.mubr.bf16.gmra.mxu0 %v6265_v30  ;;  %v4995_v41 = vld [vmem:[%s7396_s1 + $0x36c] ss:$16 sps:$4 sm:$0xff]   ;;  %v5008_v30 = vld [vmem:[%s7396_s1 + $0x108] ss:$16 sps:$4 sm:$0xff]  }
  0xc6   :  { %4464 = vmatmul.mubr.msk.bf16.gmra.mxu1 %vm1421_vm0, %v6267_v32  ;;  %1919 = vmatpush2.bf16.msra.mxu0 %v4978_v22  ;;  %v4990_v22 = vld [vmem:[%s7396_s1 + $0x168] ss:$16 sps:$4 sm:$0xff]   ;;  %v165_v32 = vld [vmem:[%s7395_s0 + $0x370] sm:$0xff] }
  0xc7   :  { %2032 = vmatpush2.bf16.msra.mxu1 %v4981_v48  ;;  %1920 = vmatprep.subr.bf16.mxu0 %v4986_v58  ;;  %v158_v48 = vld [vmem:[%s7395_s0 + $0x338] sm:$0xff]  ;;  %v6321_v58 = vpack.c.bf16 %v150_v13, %v143_v12 }
  0xc8   :  { %2033 = vmatprep.subr.bf16.mxu1 %v4989_v1  ;;  %1764 = vmatprep.mubr.bf16.mxu0 %v6290_v60  ;;  %v6323_v1 = vpack.c.bf16 %v152_v20, %v145_v14  ;;  %v4998_v60 = vld [vmem:[%s7396_s1 + $0x14c] ss:$16 sps:$4 sm:$0xff]   ;;  %v4996_v13 = vld [vmem:[%s7396_s1 + $0x148] ss:$16 sps:$4 sm:$0xff]   ;;  %v157_v14 = vld [vmem:[%s7395_s0 + $0x330] sm:$0xff] }
  0xc9   :  { %1877 = vmatprep.mubr.bf16.mxu1 %v7404_v42  ;;  %7421 = vst [vmem:[#allocation11_spill] sm:$0xff] %v6321_v58  ;;  %v4993_v42 = vld [vmem:[%s7396_s1 + $0x368] ss:$16 sps:$4 sm:$0xff]   ;;  %v5001_v12 = vld [vmem:[%s7396_s1 + $0x34c] ss:$16 sps:$4 sm:$0xff]  }
  0xca   :  { %7422 = vst [vmem:[#allocation12_spill] sm:$0xff] %v6323_v1  ;;  %1921 = vmatpush2.bf16.msra.mxu0 %v4984_v10  ;;  %v4999_v10 = vld [vmem:[%s7396_s1 + $0x348] ss:$16 sps:$4 sm:$0xff]  }
  0xcb   :  { %2034 = vmatpush2.bf16.msra.mxu1 %v4987_v59  ;;  %1922 = vmatprep.subr.bf16.mxu0 %v4992_v39  ;;  %v6343_v59 = vpack.c.bf16 %v165_v32, %v158_v48  ;;  %v164_v20 = vld [vmem:[%s7395_s0 + $0x368] sm:$0xff]  ;;  %v159_v39 = vld [vmem:[%s7395_s0 + $0x340] sm:$0xff]  ;;  %v166_v32 = vld [vmem:[%s7395_s0 + $0x378] sm:$0xff] }
  0xcc   :  { %2035 = vmatprep.subr.bf16.mxu1 %v4995_v41  ;;  %v5004_v41 = vld [vmem:[%s7396_s1 + $0x12c] ss:$16 sps:$4 sm:$0xff]  }
  0xcd   :  { %7423 = vst [vmem:[#allocation13_spill] sm:$0xff] %v6343_v59  ;;  %1765 = vmatmul.mubr.bf16.gmra.mxu0 %v6321_v58  ;;  %v5007_v48 = vld [vmem:[%s7396_s1 + $0x32c] ss:$16 sps:$4 sm:$0xff]   ;;  %v7424_v58 = vmov 0  }
  0xce   :  { %4465 = vmatmul.mubr.msk.bf16.gmra.mxu1 %vm1421_vm0, %v6323_v1  ;;  %1923 = vmatpush2.bf16.msra.mxu0 %v4990_v22  ;;  %v5002_v1 = vld [vmem:[%s7396_s1 + $0x128] ss:$16 sps:$4 sm:$0xff]   ;;  %v6374_v22 = vpack.c.bf16 %v164_v20, %v157_v14 }
  0xcf   :  { %2036 = vmatpush2.bf16.msra.mxu1 %v4993_v42  ;;  %1924 = vmatprep.subr.bf16.mxu0 %v4998_v60  ;;  %v5005_v42 = vld [vmem:[%s7396_s1 + $0x328] ss:$16 sps:$4 sm:$0xff]   ;;  %v6376_v60 = vpack.c.bf16 %v166_v32, %v159_v39 }
  0xd0   :  { %2037 = vmatprep.subr.bf16.mxu1 %v5001_v12  ;;  %1774 = vmatprep.mubr.bf16.mxu0 %v6343_v59  ;;  %v5010_v12 = vld [vmem:[%s7396_s1 + $0x10c] ss:$16 sps:$4 sm:$0xff]   ;;  %v5011_v14 = vld [vmem:[%s7396_s1 + $0x308] ss:$16 sps:$4 sm:$0xff]  }
  0xd1   :  { %1887 = vmatprep.mubr.bf16.mxu1 %v7424_v58  ;;  %v5013_v59 = vld [vmem:[%s7396_s1 + $0x30c] ss:$16 sps:$4 sm:$0xff]   ;;  %v5014_v20 = vld [vmem:[%s7396_s1 + $0x4e8] ss:$16 sps:$4 sm:$0xff]  }
  0xd2   :  { %1925 = vmatpush2.bf16.msra.mxu0 %v4996_v13  ;;  %v5016_v13 = vld [vmem:[%s7396_s1 + $0x4ec] ss:$16 sps:$4 sm:$0xff]   ;;  %v5017_v39 = vld [vmem:[%s7396_s1 + $0x608] ss:$16 sps:$4 sm:$0xff]  }
  0xd3   :  { %2038 = vmatpush2.bf16.msra.mxu1 %v4999_v10  ;;  %1926 = vmatprep.subr.bf16.mxu0 %v5004_v41  ;;  %v5019_v10 = vld [vmem:[%s7396_s1 + $0x60c] ss:$16 sps:$4 sm:$0xff]   ;;  %v5067_v41 = vld [vmem:[#allocation2 + $0xe4] ss:$16 sps:$4 sm:$0xff]  }
  0xd4   :  { %2039 = vmatprep.subr.bf16.mxu1 %v5007_v48  ;;  %v5065_v48 = vld [vmem:[#allocation2 + $0xe0] ss:$16 sps:$4 sm:$0xff]  }
  0xd5   :  { %1775 = vmatmul.mubr.bf16.gmra.mxu0 %v6374_v22 }
  0xd6   :  { %4466 = vmatmul.mubr.msk.bf16.gmra.mxu1 %vm1421_vm0, %v6376_v60  ;;  %1927 = vmatpush2.bf16.msra.mxu0 %v5002_v1  ;;  %v5022_v1 = vld [vmem:[%s7396_s1 + $0x4cc] ss:$16 sps:$4 sm:$0xff]  }
  0xd7   :  { %2040 = vmatpush2.bf16.msra.mxu1 %v5005_v42  ;;  %1928 = vmatprep.subr.bf16.mxu0 %v5010_v12  ;;  %v5070_v42 = vld [vmem:[#allocation2 + $0xc4] ss:$16 sps:$4 sm:$0xff]  }
  0xd8   :  { %2041 = vmatprep.subr.bf16.mxu1 %v5013_v59  ;;  %1930 = vmatprep.mubr.bf16.mxu0 %v5546_v53  ;;  %v5020_v53 = vld [vmem:[%s7396_s1 + $0x4c8] ss:$16 sps:$4 sm:$0xff]  }
  0xd9   :  { %2043 = vmatprep.mubr.bf16.mxu1 %v5548_v54  ;;  %v5025_v54 = vld [vmem:[%s7396_s1 + $0x4ac] ss:$16 sps:$4 sm:$0xff]   ;;  %v5041_v59 = vld [vmem:[%s7396_s1 + $0x5e8] ss:$16 sps:$4 sm:$0xff]  }
  0xda   :  { %1929 = vmatpush2.bf16.msra.mxu0 %v5008_v30  ;;  %v5023_v30 = vld [vmem:[%s7396_s1 + $0x4a8] ss:$16 sps:$4 sm:$0xff]  }
  0xdb   :  { %2042 = vmatpush2.bf16.msra.mxu1 %v5011_v14  ;;  %2124 = vmatprep.subr.bf16.mxu0 %v5016_v13 }
  0xdc   :  { %2251 = vmatprep.subr.bf16.mxu1 %v5019_v10 }
  0xdd   :  { %1931 = vmatmul.mubr.bf16.vlgmr.msra.gmra.mxu0 %v5624_v15  ;;  %v5028_v15 = vld [vmem:[%s7396_s1 + $0x48c] ss:$16 sps:$4 sm:$0xff]  }
  0xde   :  { %2044 = vmatmul.mubr.bf16.vlgmr.msra.gmra.mxu1 %v5626_v16  ;;  %2125 = vmatpush1.bf16.msra.mxu0 %v5014_v20  ;;  %v5026_v16 = vld [vmem:[%s7396_s1 + $0x488] ss:$16 sps:$4 sm:$0xff]  }
  0xdf   :  { %2252 = vmatpush1.bf16.msra.mxu1 %v5017_v39  ;;  %2126 = vmatprep.subr.bf16.mxu0 %v5022_v1  ;;  %v5068_v39 = vld [vmem:[#allocation2 + $0xc0] ss:$16 sps:$4 sm:$0xff]  }
  0xe0   :  { %1940 = vmatprep.mubr.bf16.mxu0 %v5640_v21  ;;  %2053 = vmatprep.mubr.bf16.mxu1 %v5645_v23  ;;  %v5031_v21 = vld [vmem:[%s7396_s1 + $0x46c] ss:$16 sps:$4 sm:$0xff]   ;;  %v5029_v23 = vld [vmem:[%s7396_s1 + $0x468] ss:$16 sps:$4 sm:$0xff]  }
  0xe2   :  { %2127 = vmatpush1.bf16.msra.mxu0 %v5020_v53 }
  0xe3   :  { %2128 = vmatprep.subr.bf16.mxu0 %v5025_v54  ;;  %v5073_v54 = vld [vmem:[#allocation2 + $0xa4] ss:$16 sps:$4 sm:$0xff]  }
  0xe5   :  { %1941 = vmatmul.mubr.bf16.gmra.mxu0 %v5678_v33  ;;  %v5034_v33 = vld [vmem:[%s7396_s1 + $0x44c] ss:$16 sps:$4 sm:$0xff]  }
  0xe6   :  { %2054 = vmatmul.mubr.bf16.gmra.mxu1 %v5680_v34  ;;  %2129 = vmatpush1.bf16.msra.mxu0 %v5023_v30  ;;  %v5032_v34 = vld [vmem:[%s7396_s1 + $0x448] ss:$16 sps:$4 sm:$0xff]  }
  0xe7   :  { %1950 = vmatprep.mubr.bf16.mxu0 %v5685_v36  ;;  %2130 = vmatprep.subr.bf16.mxu0 %v5028_v15  ;;  %v5037_v36 = vld [vmem:[%s7396_s1 + $0x42c] ss:$16 sps:$4 sm:$0xff]  }
  0xe8   :  { %2063 = vmatprep.mubr.bf16.mxu1 %v5690_v38  ;;  %v5035_v38 = vld [vmem:[%s7396_s1 + $0x428] ss:$16 sps:$4 sm:$0xff]  }
  0xea   :  { %2131 = vmatpush1.bf16.msra.mxu0 %v5026_v16  ;;  %v5071_v16 = vld [vmem:[#allocation2 + $0xa0] ss:$16 sps:$4 sm:$0xff]  }
  0xeb   :  { %2132 = vmatprep.subr.bf16.mxu0 %v5031_v21  ;;  %v5076_v21 = vld [vmem:[#allocation2 + $0x84] ss:$16 sps:$4 sm:$0xff]  }
  0xed   :  { %1951 = vmatmul.mubr.bf16.gmra.mxu0 %v5726_v49  ;;  %v5040_v49 = vld [vmem:[%s7396_s1 + $0x40c] ss:$16 sps:$4 sm:$0xff]  }
  0xee   :  { %2064 = vmatmul.mubr.bf16.gmra.mxu1 %v5728_v50  ;;  %2133 = vmatpush1.bf16.msra.mxu0 %v5029_v23  ;;  %v5038_v50 = vld [vmem:[%s7396_s1 + $0x408] ss:$16 sps:$4 sm:$0xff]  }
  0xef   :  { %1960 = vmatprep.mubr.bf16.mxu0 %v5733_v52  ;;  %2134 = vmatprep.subr.bf16.mxu0 %v5034_v33  ;;  %v421_v52 = vlaneseq }
  0xf0   :  { %2073 = vmatprep.mubr.bf16.mxu1 %v5738_v56  ;;  %v5043_v56 = vld [vmem:[%s7396_s1 + $0x5ec] ss:$16 sps:$4 sm:$0xff]  }
  0xf1   :  { %v6471_v32 = vshrl.u32 %v421_v52, 7 }
  0xf2   :  { %2135 = vmatpush1.bf16.msra.mxu0 %v5032_v34 }
  0xf3   :  { %2136 = vmatprep.subr.bf16.mxu0 %v5037_v36  ;;  %7425 = vst [vmem:[#allocation14_spill] sm:$0xff] %v6471_v32 }
  0xf5   :  { %1961 = vmatmul.mubr.bf16.gmra.mxu0 %v5774_v3  ;;  %v5046_v3 = vld [vmem:[%s7396_s1 + $0x5cc] ss:$16 sps:$4 sm:$0xff]  }
  0xf6   :  { %2074 = vmatmul.mubr.bf16.gmra.mxu1 %v5776_v4  ;;  %2137 = vmatpush1.bf16.msra.mxu0 %v5035_v38  ;;  %v5044_v4 = vld [vmem:[%s7396_s1 + $0x5c8] ss:$16 sps:$4 sm:$0xff]  }
  0xf7   :  { %1970 = vmatprep.mubr.bf16.mxu0 %v5781_v6  ;;  %2138 = vmatprep.subr.bf16.mxu0 %v5040_v49  ;;  %v5049_v6 = vld [vmem:[%s7396_s1 + $0x5ac] ss:$16 sps:$4 sm:$0xff]   ;;  %v5074_v49 = vld [vmem:[#allocation2 + $0x80] ss:$16 sps:$4 sm:$0xff]  }
  0xf8   :  { %2083 = vmatprep.mubr.bf16.mxu1 %v5786_v8  ;;  %v5047_v8 = vld [vmem:[%s7396_s1 + $0x5a8] ss:$16 sps:$4 sm:$0xff]  }
  0xfa   :  { %2139 = vmatpush1.bf16.msra.mxu0 %v5038_v50 }
  0xfb   :  { %2140 = vmatprep.subr.bf16.mxu0 %v5043_v56  ;;  %v5079_v56 = vld [vmem:[#allocation2 + $0x64] ss:$16 sps:$4 sm:$0xff]  }
  0xfd   :  { %1971 = vmatmul.mubr.bf16.gmra.mxu0 %v5825_v24  ;;  %v5052_v24 = vld [vmem:[%s7396_s1 + $0x58c] ss:$16 sps:$4 sm:$0xff]  }
  0xfe   :  { %2084 = vmatmul.mubr.bf16.gmra.mxu1 %v5827_v25  ;;  %2141 = vmatpush2.bf16.msra.mxu0 %v5041_v59  ;;  %v5050_v25 = vld [vmem:[%s7396_s1 + $0x588] ss:$16 sps:$4 sm:$0xff]  }
  0xff   :  { %1980 = vmatprep.mubr.bf16.mxu0 %v5832_v27  ;;  %2142 = vmatprep.subr.bf16.mxu0 %v5046_v3  ;;  %v5055_v27 = vld [vmem:[%s7396_s1 + $0x56c] ss:$16 sps:$4 sm:$0xff]  }
 0x100   :  { %2093 = vmatprep.mubr.bf16.mxu1 %v5837_v29  ;;  %v5053_v29 = vld [vmem:[%s7396_s1 + $0x568] ss:$16 sps:$4 sm:$0xff]  }
 0x102   :  { %2143 = vmatpush2.bf16.msra.mxu0 %v5044_v4  ;;  %v5077_v4 = vld [vmem:[#allocation2 + $0x60] ss:$16 sps:$4 sm:$0xff]  }
 0x103   :  { %2144 = vmatprep.subr.bf16.mxu0 %v5049_v6  ;;  %v5163_v6 = vld [vmem:[#allocation2 + $0x2e4] ss:$16 sps:$4 sm:$0xff]  }
 0x104   :  { %3349 = vmatprep.subr.bf16.mxu1 %v5163_v6  ;;  %v5094_v6 = vld [vmem:[#allocation2 + $0x1c4] ss:$16 sps:$4 sm:$0xff]  }
 0x105   :  { %1981 = vmatmul.mubr.bf16.gmra.mxu0 %v5873_v44  ;;  %v5058_v44 = vld [vmem:[%s7396_s1 + $0x54c] ss:$16 sps:$4 sm:$0xff]  }
 0x106   :  { %2094 = vmatmul.mubr.bf16.gmra.mxu1 %v5875_v45  ;;  %2145 = vmatpush2.bf16.msra.mxu0 %v5047_v8  ;;  %v5056_v45 = vld [vmem:[%s7396_s1 + $0x548] ss:$16 sps:$4 sm:$0xff]   ;;  %v5082_v8 = vld [vmem:[#allocation2 + $0x44] ss:$16 sps:$4 sm:$0xff]  }
 0x107   :  { %1990 = vmatprep.mubr.bf16.mxu0 %v5880_v47  ;;  %2146 = vmatprep.subr.bf16.mxu0 %v5052_v24  ;;  %v5061_v47 = vld [vmem:[%s7396_s1 + $0x52c] ss:$16 sps:$4 sm:$0xff]   ;;  %v5161_v24 = vld [vmem:[#allocation2 + $0x2e0] ss:$16 sps:$4 sm:$0xff]  }
 0x108   :  { %2103 = vmatprep.mubr.bf16.mxu1 %v5885_v51  ;;  %v5059_v51 = vld [vmem:[%s7396_s1 + $0x528] ss:$16 sps:$4 sm:$0xff]  }
 0x10a   :  { %2147 = vmatpush2.bf16.msra.mxu0 %v5050_v25 }
 0x10b   :  { %2148 = vmatprep.subr.bf16.mxu0 %v5055_v27 }
 0x10d   :  { %1991 = vmatmul.mubr.bf16.gmra.mxu0 %v5921_v2  ;;  %v5064_v2 = vld [vmem:[%s7396_s1 + $0x50c] ss:$16 sps:$4 sm:$0xff]  }
 0x10e   :  { %2104 = vmatmul.mubr.bf16.gmra.mxu1 %v5923_v5  ;;  %2149 = vmatpush2.bf16.msra.mxu0 %v5053_v29  ;;  %v5062_v5 = vld [vmem:[%s7396_s1 + $0x508] ss:$16 sps:$4 sm:$0xff]  }
 0x10f   :  { %2000 = vmatprep.mubr.bf16.mxu0 %v5928_v9  ;;  %2150 = vmatprep.subr.bf16.mxu0 %v5058_v44  ;;  %v7411_v9 = vsub.s32 0, %v6471_v32 }
 0x110   :  { %2113 = vmatprep.mubr.bf16.mxu1 %v5933_v11  ;;  %v419_v11 = vld [vmem:[%s7397_s2] sm:$0xf] }
 0x112   :  { %2151 = vmatpush2.bf16.msra.mxu0 %v5056_v45 }
 0x113   :  { %2152 = vmatprep.subr.bf16.mxu0 %v5061_v47  ;;  %v5080_v47 = vld [vmem:[#allocation2 + $0x40] ss:$16 sps:$4 sm:$0xff]  }
 0x115   :  { %2001 = vmatmul.mubr.bf16.gmra.mxu0 %v5963_v26  ;;  %v7412_v26 = vsub.s32 1, %v6471_v32 }
 0x116   :  { %2114 = vmatmul.mubr.bf16.gmra.mxu1 %v5965_v28  ;;  %2153 = vmatpush2.bf16.msra.mxu0 %v5059_v51  ;;  %v6538_v28 = vrot.slane %v419_v11, %v7411_v9  ;;  %v5166_v51 = vld [vmem:[#allocation2 + $0x2c4] ss:$16 sps:$4 sm:$0xff]  }
 0x117   :  { %2156 = vmatprep.mubr.bf16.mxu0 %v5970_v31  ;;  %2154 = vmatprep.subr.bf16.mxu0 %v5064_v2  ;;  %v6542_v31 = vrot.slane %v419_v11, %v7412_v26 }
 0x118   :  { %2269 = vmatprep.mubr.bf16.mxu1 %v7424_v58 }
 0x11a   :  { %2155 = vmatpush2.bf16.msra.mxu0 %v5062_v5 }
 0x11b   :  { %3236 = vmatprep.subr.bf16.mxu0 %v5067_v41 }
 0x11d   :  { %v1480_v12 = vpop.f32.mrf.mxu0  ;;  %2157 = vmatmul.mubr.bf16.vlgmr.msra.gmra.mxu0 %v6003_v55 }
 0x11e   :  { %v1593_v14 = vpop.f32.mrf.mxu1  ;;  %4467 = vmatmul.mubr.msk.bf16.vlgmr.msra.gmra.mxu1 %vm1421_vm0, %v6005_v57  ;;  %v1481_v13 = vadd.f32 %v1480_v12, %v6538_v28  ;;  %2166 = vmatprep.mubr.bf16.mxu0 %v6022_v63  ;;  %v5083_v12 = vld [vmem:[#allocation2 + $0x20] ss:$16 sps:$4 sm:$0xff]  }
 0x11f   :  { %2279 = vmatprep.mubr.bf16.mxu1 %v7424_v58  ;;  %v1482_v10 = vpop.f32.mrf.mxu0  ;;  %3237 = vmatpush1.bf16.msra.mxu0 %v5065_v48 }
 0x120   :  { %v1595_v20 = vpop.f32.mrf.mxu1  ;;  %v6550_v1 = vadd.f32 %v1593_v14, %v1481_v13  ;;  %v1483_v53 = vadd.f32 %v1482_v10, %v6542_v31  ;;  %3238 = vmatprep.subr.bf16.mxu0 %v5070_v42  ;;  %3350 = vmatpush1.bf16.msra.mxu1 %v5161_v24  ;;  %v5169_v14 = vld [vmem:[#allocation2 + $0x2a4] ss:$16 sps:$4 sm:$0xff]   ;;  %v5167_v10 = vld [vmem:[#allocation2 + $0x2a0] ss:$16 sps:$4 sm:$0xff]  }
 0x121   :  { %v6553_v55 = vpop.f32.mrf.mxu0  ;;  %3351 = vmatprep.subr.bf16.mxu1 %v5166_v51  ;;  %v5088_v13 = vld [vmem:[#allocation2 + $0x4] ss:$16 sps:$4 sm:$0xff]  }
 0x122   :  { %v6555_v30 = vpop.f32.mrf.mxu1  ;;  %v6557_v57 = vadd.f32 %v1595_v20, %v1483_v53 }
 0x123   :  { %v6559_v15 = vpop.f32.mrf.mxu0  ;;  %3239 = vmatpush1.bf16.msra.mxu0 %v5068_v39 }
 0x124   :  { %v6561_v63 = vpop.f32.mrf.mxu1  ;;  %3240 = vmatprep.subr.bf16.mxu0 %v5073_v54 }
 0x125   :  { %v1490_v23 = vpop.f32.mrf.mxu0  ;;  %2167 = vmatmul.mubr.bf16.gmra.mxu0 %v6053_v18 }
 0x126   :  { %v1603_v33 = vpop.f32.mrf.mxu1  ;;  %4468 = vmatmul.mubr.msk.bf16.gmra.mxu1 %vm1421_vm0, %v6055_v19  ;;  %v1491_v34 = vadd.f32 %v1490_v23, %v6538_v28  ;;  %2176 = vmatprep.mubr.bf16.mxu0 %v6078_v40  ;;  %v5172_v23 = vld [vmem:[#allocation2 + $0x284] ss:$16 sps:$4 sm:$0xff]  }
 0x127   :  { %2289 = vmatprep.mubr.bf16.mxu1 %v7424_v58  ;;  %v1492_v36 = vpop.f32.mrf.mxu0  ;;  %3241 = vmatpush1.bf16.msra.mxu0 %v5071_v16 }
 0x128   :  { %v1605_v38 = vpop.f32.mrf.mxu1  ;;  %v6569_v50 = vadd.f32 %v1603_v33, %v1491_v34  ;;  %v1493_v52 = vadd.f32 %v1492_v36, %v6542_v31  ;;  %3242 = vmatprep.subr.bf16.mxu0 %v5076_v21  ;;  %v5086_v21 = vld [vmem:[#allocation2] ss:$16 sps:$4 sm:$0xff]  }
 0x129   :  { %v6572_v18 = vpop.f32.mrf.mxu0 }
 0x12a   :  { %v6574_v59 = vpop.f32.mrf.mxu1  ;;  %v6576_v19 = vadd.f32 %v1605_v38, %v1493_v52  ;;  %v1495_v32 = vadd.f32 %v6572_v18, %v6538_v28 }
 0x12b   :  { %v6578_v3 = vpop.f32.mrf.mxu0  ;;  %3243 = vmatpush1.bf16.msra.mxu0 %v5074_v49 }
 0x12c   :  { %v6580_v40 = vpop.f32.mrf.mxu1  ;;  %3244 = vmatprep.subr.bf16.mxu0 %v5079_v56  ;;  %v5089_v56 = vld [vmem:[#allocation2 + $0x1e0] ss:$16 sps:$4 sm:$0xff]  }
 0x12d   :  { %v1500_v25 = vpop.f32.mrf.mxu0  ;;  %2177 = vmatmul.mubr.bf16.gmra.mxu0 %v6109_v62  ;;  %v5085_v62 = vld [vmem:[#allocation2 + $0x24] ss:$16 sps:$4 sm:$0xff]  }
 0x12e   :  { %v1613_v27 = vpop.f32.mrf.mxu1  ;;  %4469 = vmatmul.mubr.msk.bf16.gmra.mxu1 %vm1421_vm0, %v6111_v0  ;;  %v1501_v29 = vadd.f32 %v1500_v25, %v6538_v28  ;;  %2186 = vmatprep.mubr.bf16.mxu0 %v6131_v17  ;;  %v5164_v0 = vld [vmem:[#allocation2 + $0x2c0] ss:$16 sps:$4 sm:$0xff]  }
 0x12f   :  { %2299 = vmatprep.mubr.bf16.mxu1 %v7424_v58  ;;  %v1502_v44 = vpop.f32.mrf.mxu0  ;;  %3245 = vmatpush1.bf16.msra.mxu0 %v5077_v4  ;;  %v5175_v4 = vld [vmem:[#allocation2 + $0x264] ss:$16 sps:$4 sm:$0xff]  }
 0x130   :  { %v1615_v45 = vpop.f32.mrf.mxu1  ;;  %v6588_v2 = vadd.f32 %v1613_v27, %v1501_v29  ;;  %v1503_v5 = vadd.f32 %v1502_v44, %v6542_v31  ;;  %3246 = vmatprep.subr.bf16.mxu0 %v5082_v8  ;;  %3352 = vmatpush1.bf16.msra.mxu1 %v5164_v0  ;;  %v5173_v8 = vld [vmem:[#allocation2 + $0x260] ss:$16 sps:$4 sm:$0xff]  }
 0x131   :  { %v6591_v11 = vpop.f32.mrf.mxu0  ;;  %3353 = vmatprep.subr.bf16.mxu1 %v5169_v14 }
 0x132   :  { %v6593_v41 = vpop.f32.mrf.mxu1  ;;  %v6595_v17 = vadd.f32 %v1615_v45, %v1503_v5  ;;  %v5092_v45 = vld [vmem:[#allocation2 + $0x1c0] ss:$16 sps:$4 sm:$0xff]  }
 0x133   :  { %v6597_v48 = vpop.f32.mrf.mxu0  ;;  %3247 = vmatpush1.bf16.msra.mxu0 %v5080_v47  ;;  %v5178_v47 = vld [vmem:[#allocation2 + $0x244] ss:$16 sps:$4 sm:$0xff]  }
 0x134   :  { %v6599_v42 = vpop.f32.mrf.mxu1  ;;  %3248 = vmatprep.subr.bf16.mxu0 %v5085_v62  ;;  %3354 = vmatpush1.bf16.msra.mxu1 %v5167_v10  ;;  %v5181_v10 = vld [vmem:[#allocation2 + $0x224] ss:$16 sps:$4 sm:$0xff]  }
 0x135   :  { %v1510_v20 = vpop.f32.mrf.mxu0  ;;  %2187 = vmatmul.mubr.bf16.gmra.mxu0 %v6162_v43  ;;  %v5091_v43 = vld [vmem:[#allocation2 + $0x1e4] ss:$16 sps:$4 sm:$0xff]   ;;  %3355 = vmatprep.subr.bf16.mxu1 %v5172_v23 }
 0x136   :  { %v1623_v39 = vpop.f32.mrf.mxu1  ;;  %4470 = vmatmul.mubr.msk.bf16.gmra.mxu1 %vm1421_vm0, %v6164_v46  ;;  %v1511_v53 = vadd.f32 %v1510_v20, %v6538_v28  ;;  %2196 = vmatprep.mubr.bf16.mxu0 %v6184_v7  ;;  %v5170_v46 = vld [vmem:[#allocation2 + $0x280] ss:$16 sps:$4 sm:$0xff]   ;;  %v5100_v20 = vld [vmem:[#allocation2 + $0x184] ss:$16 sps:$4 sm:$0xff]  }
 0x137   :  { %2309 = vmatprep.mubr.bf16.mxu1 %v7424_v58  ;;  %v1512_v54 = vpop.f32.mrf.mxu0  ;;  %3249 = vmatpush1.bf16.msra.mxu0 %v5083_v12 }
 0x138   :  { %v1625_v16 = vpop.f32.mrf.mxu1  ;;  %v6607_v33 = vadd.f32 %v1623_v39, %v1511_v53  ;;  %v1513_v34 = vadd.f32 %v1512_v54, %v6542_v31  ;;  %3250 = vmatprep.subr.bf16.mxu0 %v5088_v13  ;;  %3356 = vmatpush1.bf16.msra.mxu1 %v5170_v46  ;;  %v5095_v13 = vld [vmem:[#allocation2 + $0x1a0] ss:$16 sps:$4 sm:$0xff]  }
 0x139   :  { %v6610_v36 = vpop.f32.mrf.mxu0  ;;  %3357 = vmatprep.subr.bf16.mxu1 %v5175_v4  ;;  %v5179_v39 = vld [vmem:[#allocation2 + $0x220] ss:$16 sps:$4 sm:$0xff]   ;;  %v5184_v4 = vld [vmem:[#allocation2 + $0x204] ss:$16 sps:$4 sm:$0xff]  }
 0x13a   :  { %v6612_v38 = vpop.f32.mrf.mxu1  ;;  %v6614_v7 = vadd.f32 %v1625_v16, %v1513_v34  ;;  %v7426_v16 = vld [vmem:[#allocation8_spill] sm:$0xff]  ;;  %v7428_v34 = vld [vmem:[#allocation10_spill] sm:$0xff] }
 0x13b   :  { %v6616_v49 = vpop.f32.mrf.mxu0  ;;  %3251 = vmatpush1.bf16.msra.mxu0 %v5086_v21  ;;  %v7427_v21 = vld [vmem:[#allocation9_spill] sm:$0xff] }
 0x13c   :  { %v6618_v52 = vpop.f32.mrf.mxu1  ;;  %3252 = vmatprep.subr.bf16.mxu0 %v5091_v43  ;;  %3358 = vmatpush1.bf16.msra.mxu1 %v5173_v8 }
 0x13d   :  { %v1520_v24 = vpop.f32.mrf.mxu0  ;;  %2197 = vmatmul.mubr.bf16.gmra.mxu0 %v6215_v35  ;;  %v5097_v35 = vld [vmem:[#allocation2 + $0x1a4] ss:$16 sps:$4 sm:$0xff]   ;;  %3359 = vmatprep.subr.bf16.mxu1 %v5178_v47 }
 0x13e   :  { %v1633_v25 = vpop.f32.mrf.mxu1  ;;  %4471 = vmatmul.mubr.msk.bf16.gmra.mxu1 %vm1421_vm0, %v6217_v37  ;;  %v1521_v27 = vadd.f32 %v1520_v24, %v6538_v28  ;;  %2206 = vmatprep.mubr.bf16.mxu0 %v6237_v61  ;;  %v5176_v37 = vld [vmem:[#allocation2 + $0x240] ss:$16 sps:$4 sm:$0xff]   ;;  %v5103_v24 = vld [vmem:[#allocation2 + $0x164] ss:$16 sps:$4 sm:$0xff]  }
 0x13f   :  { %2319 = vmatprep.mubr.bf16.mxu1 %v7424_v58  ;;  %v1522_v29 = vpop.f32.mrf.mxu0  ;;  %3253 = vmatpush2.bf16.msra.mxu0 %v5089_v56  ;;  %v5098_v56 = vld [vmem:[#allocation2 + $0x180] ss:$16 sps:$4 sm:$0xff]  }
 0x140   :  { %v1635_v44 = vpop.f32.mrf.mxu1  ;;  %v6626_v51 = vadd.f32 %v1633_v25, %v1521_v27  ;;  %v1523_v5 = vadd.f32 %v1522_v29, %v6542_v31  ;;  %3254 = vmatprep.subr.bf16.mxu0 %v5094_v6  ;;  %3360 = vmatpush1.bf16.msra.mxu1 %v5176_v37  ;;  %v5182_v25 = vld [vmem:[#allocation2 + $0x200] ss:$16 sps:$4 sm:$0xff]   ;;  %v5106_v37 = vld [vmem:[#allocation2 + $0x144] ss:$16 sps:$4 sm:$0xff]  }
 0x141   :  { %v6629_v62 = vpop.f32.mrf.mxu0  ;;  %3361 = vmatprep.subr.bf16.mxu1 %v5181_v10 }
 0x142   :  { %v6631_v0 = vpop.f32.mrf.mxu1  ;;  %v6633_v61 = vadd.f32 %v1635_v44, %v1523_v5  ;;  %v5101_v5 = vld [vmem:[#allocation2 + $0x160] ss:$16 sps:$4 sm:$0xff]  }
 0x143   :  { %v6635_v12 = vpop.f32.mrf.mxu0  ;;  %3255 = vmatpush2.bf16.msra.mxu0 %v5092_v45 }
 0x144   :  { %v6637_v14 = vpop.f32.mrf.mxu1  ;;  %3256 = vmatprep.subr.bf16.mxu0 %v5097_v35  ;;  %3362 = vmatpush1.bf16.msra.mxu1 %v5179_v39  ;;  %v5187_v35 = vld [vmem:[#allocation2 + $0x3e4] ss:$16 sps:$4 sm:$0xff]   ;;  %v7429_v39 = vld [vmem:[#allocation11_spill] sm:$0xff] }
 0x145   :  { %v1530_v53 = vpop.f32.mrf.mxu0  ;;  %2207 = vmatmul.mubr.bf16.gmra.mxu0 %v7426_v16  ;;  %3363 = vmatprep.subr.bf16.mxu1 %v5184_v4  ;;  %v7431_v16 = vld [vmem:[#allocation13_spill] sm:$0xff]  ;;  %v5109_v4 = vld [vmem:[#allocation2 + $0x124] ss:$16 sps:$4 sm:$0xff]  }
 0x146   :  { %v1643_v54 = vpop.f32.mrf.mxu1  ;;  %4472 = vmatmul.mubr.msk.bf16.gmra.mxu1 %vm1421_vm0, %v7427_v21  ;;  %v1531_v23 = vadd.f32 %v1530_v53, %v6538_v28  ;;  %2216 = vmatprep.mubr.bf16.mxu0 %v7428_v34  ;;  %v7430_v53 = vld [vmem:[#allocation12_spill] sm:$0xff] }
 0x147   :  { %2329 = vmatprep.mubr.bf16.mxu1 %v7424_v58  ;;  %v1532_v43 = vpop.f32.mrf.mxu0  ;;  %3257 = vmatpush2.bf16.msra.mxu0 %v5095_v13  ;;  %v5185_v13 = vld [vmem:[#allocation2 + $0x3e0] ss:$16 sps:$4 sm:$0xff]  }
 0x148   :  { %v1645_v46 = vpop.f32.mrf.mxu1  ;;  %v6645_v6 = vadd.f32 %v1643_v54, %v1531_v23  ;;  %v1533_v8 = vadd.f32 %v1532_v43, %v6542_v31  ;;  %3258 = vmatprep.subr.bf16.mxu0 %v5100_v20  ;;  %3364 = vmatpush1.bf16.msra.mxu1 %v5182_v25  ;;  %v5104_v34 = vld [vmem:[#allocation2 + $0x140] ss:$16 sps:$4 sm:$0xff]   ;;  %v5190_v43 = vld [vmem:[#allocation2 + $0x3c4] ss:$16 sps:$4 sm:$0xff]  }
 0x149   :  { %v6648_v27 = vpop.f32.mrf.mxu0  ;;  %3365 = vmatprep.subr.bf16.mxu1 %v5187_v35  ;;  %v5107_v35 = vld [vmem:[#allocation2 + $0x120] ss:$16 sps:$4 sm:$0xff]  }
 0x14a   :  { %v6650_v29 = vpop.f32.mrf.mxu1  ;;  %v6652_v44 = vadd.f32 %v1645_v46, %v1533_v8  ;;  %v5188_v8 = vld [vmem:[#allocation2 + $0x3c0] ss:$16 sps:$4 sm:$0xff]  }
 0x14b   :  { %v6654_v45 = vpop.f32.mrf.mxu0  ;;  %3259 = vmatpush2.bf16.msra.mxu0 %v5098_v56 }
 0x14c   :  { %v6656_v47 = vpop.f32.mrf.mxu1  ;;  %3260 = vmatprep.subr.bf16.mxu0 %v5103_v24  ;;  %3366 = vmatpush2.bf16.msra.mxu1 %v5185_v13 }
 0x14d   :  { %v1540_v10 = vpop.f32.mrf.mxu0  ;;  %2217 = vmatmul.mubr.bf16.gmra.mxu0 %v7429_v39  ;;  %3367 = vmatprep.subr.bf16.mxu1 %v5190_v43  ;;  %v5112_v39 = vld [vmem:[#allocation2 + $0x104] ss:$16 sps:$4 sm:$0xff]  }
 0x14e   :  { %v1653_v20 = vpop.f32.mrf.mxu1  ;;  %4473 = vmatmul.mubr.msk.bf16.gmra.mxu1 %vm1421_vm0, %v7430_v53  ;;  %v1541_v54 = vadd.f32 %v1540_v10, %v6538_v28  ;;  %2226 = vmatprep.mubr.bf16.mxu0 %v7431_v16 }
 0x14f   :  { %2339 = vmatprep.mubr.bf16.mxu1 %v7424_v58  ;;  %v1542_v21 = vpop.f32.mrf.mxu0  ;;  %3261 = vmatpush2.bf16.msra.mxu0 %v5101_v5 }
 0x150   :  { %v1655_v23 = vpop.f32.mrf.mxu1  ;;  %v6664_v46 = vadd.f32 %v1653_v20, %v1541_v54  ;;  %v1543_v56 = vadd.f32 %v1542_v21, %v6542_v31  ;;  %3262 = vmatprep.subr.bf16.mxu0 %v5106_v37  ;;  %v5193_v20 = vld [vmem:[#allocation2 + $0x3a4] ss:$16 sps:$4 sm:$0xff]   ;;  %3368 = vmatpush2.bf16.msra.mxu1 %v5188_v8  ;;  %v5191_v37 = vld [vmem:[#allocation2 + $0x3a0] ss:$16 sps:$4 sm:$0xff]  }
 0x151   :  { %v6667_v24 = vpop.f32.mrf.mxu0  ;;  %3369 = vmatprep.subr.bf16.mxu1 %v5193_v20  ;;  %v5194_v8 = vld [vmem:[#allocation2 + $0x380] ss:$16 sps:$4 sm:$0xff]  }
 0x152   :  { %v6669_v25 = vpop.f32.mrf.mxu1  ;;  %v6671_v58 = vadd.f32 %v1655_v23, %v1543_v56  ;;  %v5110_v23 = vld [vmem:[#allocation2 + $0x100] ss:$16 sps:$4 sm:$0xff]  }
 0x153   :  { %v6673_v10 = vpop.f32.mrf.mxu0  ;;  %3263 = vmatpush2.bf16.msra.mxu0 %v5104_v34  ;;  %v5196_v34 = vld [vmem:[#allocation2 + $0x384] ss:$16 sps:$4 sm:$0xff]  }
 0x154   :  { %v6675_v5 = vpop.f32.mrf.mxu1  ;;  %3264 = vmatprep.subr.bf16.mxu0 %v5109_v4  ;;  %v5115_v4 = vld [vmem:[#allocation2 + $0xec] ss:$16 sps:$4 sm:$0xff]   ;;  %3370 = vmatpush2.bf16.msra.mxu1 %v5191_v37 }
 0x155   :  { %v1550_v13 = vpop.f32.mrf.mxu0  ;;  %2227 = vmatmul.mubr.bf16.gmra.mxu0 %v6374_v22  ;;  %3371 = vmatprep.subr.bf16.mxu1 %v5196_v34 }
 0x156   :  { %v1663_v53 = vpop.f32.mrf.mxu1  ;;  %4474 = vmatmul.mubr.msk.bf16.gmra.mxu1 %vm1421_vm0, %v6376_v60  ;;  %v1551_v54 = vadd.f32 %v1550_v13, %v6538_v28  ;;  %v5199_v13 = vld [vmem:[#allocation2 + $0x364] ss:$16 sps:$4 sm:$0xff]  }
 0x157   :  { %v1552_v16 = vpop.f32.mrf.mxu0  ;;  %3265 = vmatpush2.bf16.msra.mxu0 %v5107_v35 }
 0x158   :  { %v1665_v21 = vpop.f32.mrf.mxu1  ;;  %v6681_v43 = vadd.f32 %v1663_v53, %v1551_v54  ;;  %v1553_v56 = vadd.f32 %v1552_v16, %v6542_v31  ;;  %3266 = vmatprep.subr.bf16.mxu0 %v5112_v39  ;;  %v1485_v53 = vadd.f32 %v6553_v55, %v6538_v28  ;;  %3372 = vmatpush2.bf16.msra.mxu1 %v5194_v8  ;;  %v5197_v39 = vld [vmem:[#allocation2 + $0x360] ss:$16 sps:$4 sm:$0xff]  }
 0x159   :  { %v6684_v22 = vpop.f32.mrf.mxu0  ;;  %3373 = vmatprep.subr.bf16.mxu1 %v5199_v13  ;;  %v1487_v16 = vadd.f32 %v6559_v15, %v6542_v31  ;;  %v5205_v15 = vld [vmem:[#allocation2 + $0x324] ss:$16 sps:$4 sm:$0xff]  }
 0x15a   :  { %7432 = vst [vmem:[#allocation8_spill] sm:$0xff] %v6681_v43  ;;  %7433 = vst [vmem:[#allocation9_spill] sm:$0xff] %v6684_v22  ;;  %v6686_v9 = vpop.f32.mrf.mxu1  ;;  %v6688_v60 = vadd.f32 %v1665_v21, %v1553_v56  ;;  %v5202_v56 = vld [vmem:[#allocation2 + $0x344] ss:$16 sps:$4 sm:$0xff]   ;;  %v1598_v26 = vadd.f32 %v6555_v30, %v1485_v53  ;;  %v1608_v22 = vadd.f32 %v6574_v59, %v1495_v32 }
 0x15b   :  { %7434 = vst [vmem:[#allocation10_spill] sm:$0xff] %v6686_v9  ;;  %v6690_v20 = vpop.f32.mrf.mxu0  ;;  %3267 = vmatpush2.bf16.msra.mxu0 %v5110_v23  ;;  %v1600_v43 = vadd.f32 %v6561_v63, %v1487_v16  ;;  %v1505_v32 = vadd.f32 %v6591_v11, %v6538_v28  ;;  %v1507_v11 = vadd.f32 %v6597_v48, %v6542_v31 }
 0x15c   :  { %7435 = vst [vmem:[#allocation11_spill] sm:$0xff] %v6688_v60  ;;  %7436 = vst [vmem:[#allocation12_spill] sm:$0xff] %v6690_v20  ;;  %v6692_v35 = vpop.f32.mrf.mxu1  ;;  %3462 = vmatprep.subr.bf16.mxu0 %v5115_v4  ;;  %3374 = vmatpush2.bf16.msra.mxu1 %v5197_v39 }
 0x15d   :  { %7437 = vst [vmem:[#allocation13_spill] sm:$0xff] %v6692_v35  ;;  %v1706_v37 = vpop.f32.mrf.mxu0  ;;  %v5200_v35 = vld [vmem:[#allocation2 + $0x340] ss:$16 sps:$4 sm:$0xff]   ;;  %3375 = vmatprep.subr.bf16.mxu1 %v5202_v56  ;;  %v1620_v48 = vadd.f32 %v6599_v42, %v1507_v11 }
 0x15e   :  { %v1819_v54 = vpop.f32.mrf.mxu1  ;;  %v1707_v55 = vadd.f32 %v1706_v37, %v6550_v1  ;;  %v1497_v37 = vadd.f32 %v6578_v3, %v6542_v31 }
 0x15f   :  { %v1708_v21 = vpop.f32.mrf.mxu0 }
 0x160   :  { %v1821_v34 = vpop.f32.mrf.mxu1  ;;  %v1709_v23 = vadd.f32 %v1708_v21, %v6557_v57  ;;  %3376 = vmatpush2.bf16.msra.mxu1 %v5200_v35  ;;  %v5203_v57 = vld [vmem:[#allocation2 + $0x320] ss:$16 sps:$4 sm:$0xff]   ;;  %v1820_v39 = vadd.f32 %v1819_v54, %v1707_v55 }
 0x161   :  { %v1710_v4 = vpop.f32.mrf.mxu0  ;;  %3377 = vmatprep.subr.bf16.mxu1 %v5205_v15  ;;  %v5118_v15 = vld [vmem:[#allocation2 + $0xcc] ss:$16 sps:$4 sm:$0xff]  }
 0x162   :  { %v1823_v8 = vpop.f32.mrf.mxu1  ;;  %v1711_v13 = vadd.f32 %v1710_v4, %v1598_v26  ;;  %v1822_v20 = vadd.f32 %v1821_v34, %v1709_v23  ;;  %v5208_v4 = vld [vmem:[#allocation2 + $0x304] ss:$16 sps:$4 sm:$0xff]   ;;  %v2350_v35 = vmax.f32 %v1820_v39, 0.0 }
 0x163   :  { %v1712_v60 = vpop.f32.mrf.mxu0 }
 0x164   :  { %v1825_v9 = vpop.f32.mrf.mxu1  ;;  %v1824_v30 = vadd.f32 %v1823_v8, %v1711_v13  ;;  %v1713_v53 = vadd.f32 %v1712_v60, %v1600_v43  ;;  %v2351_v18 = vmax.f32 %v1822_v20, 0.0  ;;  %3378 = vmatpush2.bf16.msra.mxu1 %v5203_v57  ;;  %v5206_v60 = vld [vmem:[#allocation2 + $0x300] ss:$16 sps:$4 sm:$0xff]   ;;  %v5113_v13 = vld [vmem:[#allocation2 + $0xe8] ss:$16 sps:$4 sm:$0xff]  }
 0x165   :  { %v1716_v21 = vpop.f32.mrf.mxu0  ;;  %3379 = vmatprep.subr.bf16.mxu1 %v5208_v4  ;;  %v1618_v4 = vadd.f32 %v6593_v41, %v1505_v32  ;;  %v5124_v32 = vld [vmem:[#allocation2 + $0x8c] ss:$16 sps:$4 sm:$0xff]  }
 0x166   :  { %v1829_v1 = vpop.f32.mrf.mxu1  ;;  %v1826_v63 = vadd.f32 %v1825_v9, %v1713_v53  ;;  %v2354_v26 = vmax.f32 %v1824_v30, 0.0  ;;  %v1717_v54 = vadd.f32 %v1716_v21, %v6569_v50  ;;  %v1610_v9 = vadd.f32 %v6580_v40, %v1497_v37  ;;  %v5211_v30 = vld [vmem:[#allocation2 + $0x2ec] ss:$16 sps:$4 sm:$0xff]   ;;  %v5116_v37 = vld [vmem:[#allocation2 + $0xc8] ss:$16 sps:$4 sm:$0xff]  }
 0x167   :  { %v1718_v16 = vpop.f32.mrf.mxu0 }
 0x168   :  { %v1831_v56 = vpop.f32.mrf.mxu1  ;;  %v2355_v34 = vmax.f32 %v1826_v63, 0.0  ;;  %v1719_v43 = vadd.f32 %v1718_v16, %v6576_v19  ;;  %v6714_v59 = vpack.c.bf16 %v2354_v26, %v2350_v35  ;;  %3380 = vmatpush2.bf16.msra.mxu1 %v5206_v60  ;;  %v1830_v40 = vadd.f32 %v1829_v1, %v1717_v54 }
 0x169   :  { %v1720_v23 = vpop.f32.mrf.mxu0  ;;  %3575 = vmatprep.subr.bf16.mxu1 %v5211_v30 }
 0x16a   :  { %v1833_v55 = vpop.f32.mrf.mxu1  ;;  %v1721_v3 = vadd.f32 %v1720_v23, %v1608_v22  ;;  %v6710_v8 = vpack.c.bf16 %v2355_v34, %v2351_v18  ;;  %v1832_v53 = vadd.f32 %v1831_v56, %v1719_v43  ;;  %v5121_v56 = vld [vmem:[#allocation2 + $0xac] ss:$16 sps:$4 sm:$0xff]   ;;  %v2358_v43 = vmax.f32 %v1830_v40, 0.0 }
 0x16b   :  { %v1722_v19 = vpop.f32.mrf.mxu0 }
 0x16c   :  { %v1835_v20 = vpop.f32.mrf.mxu1  ;;  %v1834_v50 = vadd.f32 %v1833_v55, %v1721_v3  ;;  %v1723_v57 = vadd.f32 %v1722_v19, %v1610_v9  ;;  %3268 = vmatprep.mubr.bf16.mxu0 %v6710_v8  ;;  %v2359_v18 = vmax.f32 %v1832_v53, 0.0  ;;  %v5119_v9 = vld [vmem:[#allocation2 + $0xa8] ss:$16 sps:$4 sm:$0xff]   ;;  %v1517_v53 = vadd.f32 %v6616_v49, %v6542_v31 }
 0x16d   :  { %v1726_v22 = vpop.f32.mrf.mxu0  ;;  %3269 = vmatmul.mubr.bf16.vlgmr.msra.gmra.mxu0 %v6714_v59 }
 0x16e   :  { %v1839_v39 = vpop.f32.mrf.mxu1  ;;  %v1836_v21 = vadd.f32 %v1835_v20, %v1723_v57  ;;  %3463 = vmatpush1.bf16.msra.mxu0 %v5113_v13  ;;  %v2362_v63 = vmax.f32 %v1834_v50, 0.0  ;;  %v1727_v60 = vadd.f32 %v1726_v22, %v6588_v2  ;;  %v5122_v57 = vld [vmem:[#allocation2 + $0x88] ss:$16 sps:$4 sm:$0xff]   ;;  %v1630_v49 = vadd.f32 %v6618_v52, %v1517_v53 }
 0x16f   :  { %v1728_v26 = vpop.f32.mrf.mxu0  ;;  %3464 = vmatprep.subr.bf16.mxu0 %v5118_v15 }
 0x170   :  { %v1841_v16 = vpop.f32.mrf.mxu1  ;;  %v2363_v1 = vmax.f32 %v1836_v21, 0.0  ;;  %v1729_v34 = vadd.f32 %v1728_v26, %v6595_v17  ;;  %v6726_v3 = vpack.c.bf16 %v2362_v63, %v2358_v43  ;;  %v1515_v17 = vadd.f32 %v6610_v36, %v6538_v28  ;;  %v5127_v36 = vld [vmem:[#allocation2 + $0x6c] ss:$16 sps:$4 sm:$0xff]  }
 0x171   :  { %v1730_v35 = vpop.f32.mrf.mxu0  ;;  %v1840_v42 = vadd.f32 %v1839_v39, %v1727_v60 }
 0x172   :  { %v1843_v54 = vpop.f32.mrf.mxu1  ;;  %v1731_v23 = vadd.f32 %v1730_v35, %v1618_v4  ;;  %3465 = vmatpush1.bf16.msra.mxu0 %v5116_v37  ;;  %v6724_v55 = vpack.c.bf16 %v2363_v1, %v2359_v18  ;;  %v1842_v19 = vadd.f32 %v1841_v16, %v1729_v34  ;;  %v1628_v21 = vadd.f32 %v6612_v38, %v1515_v17  ;;  %v5125_v34 = vld [vmem:[#allocation2 + $0x68] ss:$16 sps:$4 sm:$0xff]   ;;  %v5130_v35 = vld [vmem:[#allocation2 + $0x4c] ss:$16 sps:$4 sm:$0xff]  }
 0x173   :  { %v1732_v13 = vpop.f32.mrf.mxu0  ;;  %3466 = vmatprep.subr.bf16.mxu0 %v5121_v56  ;;  %v2366_v26 = vmax.f32 %v1840_v42, 0.0 }
 0x174   :  { %v1845_v41 = vpop.f32.mrf.mxu1  ;;  %v1844_v2 = vadd.f32 %v1843_v54, %v1731_v23  ;;  %v1733_v20 = vadd.f32 %v1732_v13, %v1620_v48  ;;  %3278 = vmatprep.mubr.bf16.mxu0 %v6724_v55  ;;  %v2367_v37 = vmax.f32 %v1842_v19, 0.0  ;;  %v1527_v13 = vadd.f32 %v6635_v12, %v6542_v31 }
 0x175   :  { %v1736_v15 = vpop.f32.mrf.mxu0  ;;  %3279 = vmatmul.mubr.bf16.gmra.mxu0 %v6726_v3 }
 0x176   :  { %v1849_v30 = vpop.f32.mrf.mxu1  ;;  %v1846_v50 = vadd.f32 %v1845_v41, %v1733_v20  ;;  %3467 = vmatpush1.bf16.msra.mxu0 %v5119_v9  ;;  %v2370_v40 = vmax.f32 %v1844_v2, 0.0  ;;  %v1737_v16 = vadd.f32 %v1736_v15, %v6607_v33  ;;  %v1640_v12 = vadd.f32 %v6637_v14, %v1527_v13 }
 0x177   :  { %v1738_v22 = vpop.f32.mrf.mxu0  ;;  %3468 = vmatprep.subr.bf16.mxu0 %v5124_v32  ;;  %v5128_v32 = vld [vmem:[#allocation2 + $0x48] ss:$16 sps:$4 sm:$0xff]  }
 0x178   :  { %v1851_v11 = vpop.f32.mrf.mxu1  ;;  %v2371_v63 = vmax.f32 %v1846_v50, 0.0  ;;  %v1739_v39 = vadd.f32 %v1738_v22, %v6614_v7  ;;  %v6740_v43 = vpack.c.bf16 %v2370_v40, %v2366_v26  ;;  %v1525_v7 = vadd.f32 %v6629_v62, %v6538_v28  ;;  %v5133_v62 = vld [vmem:[#allocation2 + $0x2c] ss:$16 sps:$4 sm:$0xff]  }
 0x179   :  { %v1740_v56 = vpop.f32.mrf.mxu0  ;;  %v1850_v52 = vadd.f32 %v1849_v30, %v1737_v16 }
 0x17a   :  { %v1853_v4 = vpop.f32.mrf.mxu1  ;;  %v1741_v18 = vadd.f32 %v1740_v56, %v1628_v21  ;;  %3469 = vmatpush1.bf16.msra.mxu0 %v5122_v57  ;;  %v6738_v1 = vpack.c.bf16 %v2371_v63, %v2367_v37  ;;  %v1852_v54 = vadd.f32 %v1851_v11, %v1739_v39  ;;  %v1638_v20 = vadd.f32 %v6631_v0, %v1525_v7  ;;  %v5136_v63 = vld [vmem:[#allocation2 + $0xc] ss:$16 sps:$4 sm:$0xff]  }
 0x17b   :  { %v1742_v60 = vpop.f32.mrf.mxu0  ;;  %3470 = vmatprep.subr.bf16.mxu0 %v5127_v36  ;;  %v2374_v53 = vmax.f32 %v1850_v52, 0.0  ;;  %v5131_v36 = vld [vmem:[#allocation2 + $0x28] ss:$16 sps:$4 sm:$0xff]  }
 0x17c   :  { %v1855_v38 = vpop.f32.mrf.mxu1  ;;  %v1854_v33 = vadd.f32 %v1853_v4, %v1741_v18  ;;  %v1743_v48 = vadd.f32 %v1742_v60, %v1630_v49  ;;  %3288 = vmatprep.mubr.bf16.mxu0 %v6738_v1  ;;  %v2375_v42 = vmax.f32 %v1852_v54, 0.0  ;;  %v1537_v4 = vadd.f32 %v6654_v45, %v6542_v31  ;;  %v5134_v18 = vld [vmem:[#allocation2 + $0x8] ss:$16 sps:$4 sm:$0xff]  }
 0x17d   :  { %v1746_v23 = vpop.f32.mrf.mxu0  ;;  %3289 = vmatmul.mubr.bf16.gmra.mxu0 %v6740_v43 }
 0x17e   :  { %v1859_v9 = vpop.f32.mrf.mxu1  ;;  %v1856_v41 = vadd.f32 %v1855_v38, %v1743_v48  ;;  %3471 = vmatpush1.bf16.msra.mxu0 %v5125_v34  ;;  %v2378_v17 = vmax.f32 %v1854_v33, 0.0  ;;  %v1747_v50 = vadd.f32 %v1746_v23, %v6626_v51  ;;  %v1650_v45 = vadd.f32 %v6656_v47, %v1537_v4 }
 0x17f   :  { %v1748_v19 = vpop.f32.mrf.mxu0  ;;  %3472 = vmatprep.subr.bf16.mxu0 %v5130_v35 }
 0x180   :  { %v1861_v2 = vpop.f32.mrf.mxu1  ;;  %v2379_v15 = vmax.f32 %v1856_v41, 0.0  ;;  %v1749_v30 = vadd.f32 %v1748_v19, %v6633_v61  ;;  %v6754_v21 = vpack.c.bf16 %v2378_v17, %v2374_v53  ;;  %v1535_v61 = vadd.f32 %v6648_v27, %v6538_v28  ;;  %v5139_v27 = vld [vmem:[#allocation2 + $0x1ec] ss:$16 sps:$4 sm:$0xff]  }
 0x181   :  { %v1750_v57 = vpop.f32.mrf.mxu0  ;;  %v1860_v14 = vadd.f32 %v1859_v9, %v1747_v50  ;;  %v5140_v50 = vld [vmem:[#allocation2 + $0x1c8] ss:$16 sps:$4 sm:$0xff]  }
 0x182   :  { %v1863_v40 = vpop.f32.mrf.mxu1  ;;  %v1751_v22 = vadd.f32 %v1750_v57, %v1638_v20  ;;  %3473 = vmatpush1.bf16.msra.mxu0 %v5128_v32  ;;  %v6752_v11 = vpack.c.bf16 %v2379_v15, %v2375_v42  ;;  %v1862_v39 = vadd.f32 %v1861_v2, %v1749_v30  ;;  %v1648_v35 = vadd.f32 %v6650_v29, %v1535_v61  ;;  %v5137_v32 = vld [vmem:[#allocation2 + $0x1e8] ss:$16 sps:$4 sm:$0xff]   ;;  %v5142_v2 = vld [vmem:[#allocation2 + $0x1cc] ss:$16 sps:$4 sm:$0xff]  }
 0x183   :  { %v1752_v37 = vpop.f32.mrf.mxu0  ;;  %3474 = vmatprep.subr.bf16.mxu0 %v5133_v62  ;;  %v2382_v48 = vmax.f32 %v1860_v14, 0.0  ;;  %v1547_v30 = vadd.f32 %v6673_v10, %v6542_v31 }
 0x184   :  { %v1865_v0 = vpop.f32.mrf.mxu1  ;;  %v1864_v51 = vadd.f32 %v1863_v40, %v1751_v22  ;;  %v1753_v26 = vadd.f32 %v1752_v37, %v1640_v12  ;;  %3298 = vmatprep.mubr.bf16.mxu0 %v6752_v11  ;;  %v2383_v7 = vmax.f32 %v1862_v39, 0.0 }
 0x185   :  { %v1756_v16 = vpop.f32.mrf.mxu0  ;;  %3299 = vmatmul.mubr.bf16.gmra.mxu0 %v6754_v21  ;;  %v1660_v10 = vadd.f32 %v6675_v5, %v1547_v30 }
 0x186   :  { %v1869_v56 = vpop.f32.mrf.mxu1  ;;  %v1866_v49 = vadd.f32 %v1865_v0, %v1753_v26  ;;  %3475 = vmatpush1.bf16.msra.mxu0 %v5131_v36  ;;  %v2386_v34 = vmax.f32 %v1864_v51, 0.0  ;;  %v1757_v52 = vadd.f32 %v1756_v16, %v6645_v6  ;;  %v5143_v16 = vld [vmem:[#allocation2 + $0x1a8] ss:$16 sps:$4 sm:$0xff]  }
 0x187   :  { %v1758_v60 = vpop.f32.mrf.mxu0  ;;  %3476 = vmatprep.subr.bf16.mxu0 %v5136_v63 }
 0x188   :  { %v1871_v38 = vpop.f32.mrf.mxu1  ;;  %v2387_v54 = vmax.f32 %v1866_v49, 0.0  ;;  %v1759_v33 = vadd.f32 %v1758_v60, %v6652_v44  ;;  %v6768_v17 = vpack.c.bf16 %v2386_v34, %v2382_v48  ;;  %v1545_v44 = vadd.f32 %v6667_v24, %v6538_v28  ;;  %v5145_v24 = vld [vmem:[#allocation2 + $0x1ac] ss:$16 sps:$4 sm:$0xff]   ;;  %v7440_v48 = vld [vmem:[#allocation14_spill] sm:$0xff] }
 0x189   :  { %v1760_v23 = vpop.f32.mrf.mxu0  ;;  %v1870_v47 = vadd.f32 %v1869_v56, %v1757_v52  ;;  %v5148_v49 = vld [vmem:[#allocation2 + $0x18c] ss:$16 sps:$4 sm:$0xff]   ;;  %v7415_v52 = vsub.s32 2, %v7440_v48 }
 0x18a   :  { %v1873_v9 = vpop.f32.mrf.mxu1  ;;  %v1761_v13 = vadd.f32 %v1760_v23, %v1648_v35  ;;  %3477 = vmatpush1.bf16.msra.mxu0 %v5134_v18  ;;  %v6766_v41 = vpack.c.bf16 %v2387_v54, %v2383_v7  ;;  %v1872_v62 = vadd.f32 %v1871_v38, %v1759_v33  ;;  %v1658_v22 = vadd.f32 %v6669_v25, %v1545_v44  ;;  %v7439_v35 = vld [vmem:[#allocation12_spill] sm:$0xff]  ;;  %v5146_v33 = vld [vmem:[#allocation2 + $0x188] ss:$16 sps:$4 sm:$0xff]  }
 0x18b   :  { %v1762_v19 = vpop.f32.mrf.mxu0  ;;  %3478 = vmatprep.subr.bf16.mxu0 %v5139_v27  ;;  %v2390_v63 = vmax.f32 %v1870_v47, 0.0  ;;  %v1557_v7 = vadd.f32 %v7439_v35, %v6542_v31  ;;  %v7442_v44 = vld [vmem:[#allocation11_spill] sm:$0xff]  ;;  %v7443_v31 = vld [vmem:[#allocation8_spill] sm:$0xff] }
 0x18c   :  { %v1875_v29 = vpop.f32.mrf.mxu1  ;;  %v1874_v6 = vadd.f32 %v1873_v9, %v1761_v13  ;;  %v1763_v20 = vadd.f32 %v1762_v19, %v1650_v45  ;;  %3308 = vmatprep.mubr.bf16.mxu0 %v6766_v41  ;;  %v2391_v36 = vmax.f32 %v1872_v62, 0.0  ;;  %v5151_v45 = vld [vmem:[#allocation2 + $0x16c] ss:$16 sps:$4 sm:$0xff]   ;;  %v7416_v13 = vsub.s32 3, %v7440_v48 }
 0x18d   :  { %v1766_v42 = vpop.f32.mrf.mxu0  ;;  %3309 = vmatmul.mubr.bf16.gmra.mxu0 %v6768_v17 }
 0x18e   :  { %v1879_v15 = vpop.f32.mrf.mxu1  ;;  %v1876_v53 = vadd.f32 %v1875_v29, %v1763_v20  ;;  %3479 = vmatpush2.bf16.msra.mxu0 %v5137_v32  ;;  %v2394_v57 = vmax.f32 %v1874_v6, 0.0  ;;  %v1767_v61 = vadd.f32 %v1766_v42, %v6664_v46  ;;  %v7441_v32 = vld [vmem:[#allocation10_spill] sm:$0xff] }
 0x18f   :  { %v1768_v40 = vpop.f32.mrf.mxu0  ;;  %3480 = vmatprep.subr.bf16.mxu0 %v5142_v2 }
 0x190   :  { %v1881_v12 = vpop.f32.mrf.mxu1  ;;  %v2395_v37 = vmax.f32 %v1876_v53, 0.0  ;;  %v1769_v0 = vadd.f32 %v1768_v40, %v6671_v58  ;;  %v6782_v56 = vpack.c.bf16 %v2394_v57, %v2390_v63  ;;  %v7438_v58 = vld [vmem:[#allocation9_spill] sm:$0xff]  ;;  %v1880_v5 = vadd.f32 %v1879_v15, %v1767_v61  ;;  %v5289_v57 = vld [vmem:[%s7397_s2] sm:$0xf] }
 0x191   :  { %v1770_v39 = vpop.f32.mrf.mxu0  ;;  %v1555_v18 = vadd.f32 %v7438_v58, %v6538_v28  ;;  %v7444_v15 = vld [vmem:[#allocation13_spill] sm:$0xff]  ;;  %v6803_v40 = vrot.slane %v5289_v57, %v7415_v52 }
 0x192   :  { %v1883_v51 = vpop.f32.mrf.mxu1  ;;  %v1771_v26 = vadd.f32 %v1770_v39, %v1658_v22  ;;  %3481 = vmatpush2.bf16.msra.mxu0 %v5140_v50  ;;  %v6780_v14 = vpack.c.bf16 %v2395_v37, %v2391_v36  ;;  %v1882_v34 = vadd.f32 %v1881_v12, %v1769_v0  ;;  %v2398_v6 = vmax.f32 %v1880_v5, 0.0  ;;  %v5149_v12 = vld [vmem:[#allocation2 + $0x168] ss:$16 sps:$4 sm:$0xff]   ;;  %v5154_v37 = vld [vmem:[#allocation2 + $0x14c] ss:$16 sps:$4 sm:$0xff]  }
 0x193   :  { %v1772_v4 = vpop.f32.mrf.mxu0  ;;  %3482 = vmatprep.subr.bf16.mxu0 %v5145_v24  ;;  %v1668_v19 = vadd.f32 %v7441_v32, %v1555_v18  ;;  %v1670_v30 = vadd.f32 %v7444_v15, %v1557_v7  ;;  %v6810_v39 = vrot.slane %v5289_v57, %v7416_v13  ;;  %v5160_v32 = vld [vmem:[#allocation2 + $0x10c] ss:$16 sps:$4 sm:$0xff]  }
 0x194   :  { %v1885_v25 = vpop.f32.mrf.mxu1  ;;  %v1884_v46 = vadd.f32 %v1883_v51, %v1771_v26  ;;  %v1773_v60 = vadd.f32 %v1772_v4, %v1660_v10  ;;  %3318 = vmatprep.mubr.bf16.mxu0 %v6780_v14  ;;  %v2399_v29 = vmax.f32 %v1882_v34, 0.0  ;;  %v5157_v34 = vld [vmem:[#allocation2 + $0x12c] ss:$16 sps:$4 sm:$0xff]  }
 0x195   :  { %v1776_v38 = vpop.f32.mrf.mxu0  ;;  %3319 = vmatmul.mubr.bf16.gmra.mxu0 %v6782_v56 }
 0x196   :  { %v1889_v27 = vpop.f32.mrf.mxu1  ;;  %v1886_v54 = vadd.f32 %v1885_v25, %v1773_v60  ;;  %3483 = vmatpush2.bf16.msra.mxu0 %v5143_v16  ;;  %v2402_v23 = vmax.f32 %v1884_v46, 0.0  ;;  %v1777_v20 = vadd.f32 %v1776_v38, %v7443_v31  ;;  %v5152_v25 = vld [vmem:[#allocation2 + $0x148] ss:$16 sps:$4 sm:$0xff]  }
 0x197   :  { %v1778_v28 = vpop.f32.mrf.mxu0  ;;  %3484 = vmatprep.subr.bf16.mxu0 %v5148_v49 }
 0x198   :  { %v1891_v9 = vpop.f32.mrf.mxu1  ;;  %v2403_v2 = vmax.f32 %v1886_v54, 0.0  ;;  %v1779_v62 = vadd.f32 %v1778_v28, %v7442_v44  ;;  %v6805_v24 = vpack.c.bf16 %v2402_v23, %v2398_v6  ;;  %v1890_v51 = vadd.f32 %v1889_v27, %v1777_v20  ;;  %v5155_v23 = vld [vmem:[#allocation2 + $0x128] ss:$16 sps:$4 sm:$0xff]  }
 0x199   :  { %v1780_v47 = vpop.f32.mrf.mxu0  ;;  %v5158_v44 = vld [vmem:[#allocation2 + $0x108] ss:$16 sps:$4 sm:$0xff]  }
 0x19a   :  { %v1893_v42 = vpop.f32.mrf.mxu1  ;;  %v1781_v53 = vadd.f32 %v1780_v47, %v1668_v19  ;;  %3485 = vmatpush2.bf16.msra.mxu0 %v5146_v33  ;;  %v6796_v50 = vpack.c.bf16 %v2403_v2, %v2399_v29  ;;  %v1892_v0 = vadd.f32 %v1891_v9, %v1779_v62  ;;  %v2406_v27 = vmax.f32 %v1890_v51, 0.0 }
 0x19b   :  { %v1782_v22 = vpop.f32.mrf.mxu0  ;;  %3486 = vmatprep.subr.bf16.mxu0 %v5151_v45 }
 0x19c   :  { %v1895_v36 = vpop.f32.mrf.mxu1  ;;  %v1894_v63 = vadd.f32 %v1893_v42, %v1781_v53  ;;  %v1783_v61 = vadd.f32 %v1782_v22, %v1670_v30  ;;  %3328 = vmatprep.mubr.bf16.mxu0 %v6796_v50  ;;  %v2407_v46 = vmax.f32 %v1892_v0, 0.0 }
 0x19d   :  { %v1932_v10 = vpop.f32.mrf.mxu0  ;;  %3329 = vmatmul.mubr.bf16.gmra.mxu0 %v6805_v24 }
 0x19e   :  { %v2045_v26 = vpop.f32.mrf.mxu1  ;;  %v1896_v16 = vadd.f32 %v1895_v36, %v1783_v61  ;;  %v1933_v4 = vadd.f32 %v1932_v10, %v6803_v40  ;;  %3487 = vmatpush2.bf16.msra.mxu0 %v5149_v12  ;;  %v2410_v49 = vmax.f32 %v1894_v63, 0.0 }
 0x19f   :  { %v1934_v58 = vpop.f32.mrf.mxu0  ;;  %3488 = vmatprep.subr.bf16.mxu0 %v5154_v37 }
 0x1a0   :  { %v2047_v18 = vpop.f32.mrf.mxu1  ;;  %v2411_v60 = vmax.f32 %v1896_v16, 0.0  ;;  %v6814_v5 = vadd.f32 %v2045_v26, %v1933_v4  ;;  %v1935_v38 = vadd.f32 %v1934_v58, %v6810_v39  ;;  %v6825_v28 = vpack.c.bf16 %v2410_v49, %v2406_v27 }
 0x1a1   :  { %v6817_v35 = vpop.f32.mrf.mxu0 }
 0x1a2   :  { %v6819_v7 = vpop.f32.mrf.mxu1  ;;  %v6821_v54 = vadd.f32 %v2047_v18, %v1935_v38  ;;  %3489 = vmatpush2.bf16.msra.mxu0 %v5152_v25  ;;  %v6823_v33 = vpack.c.bf16 %v2411_v60, %v2407_v46 }
 0x1a3   :  { %v6827_v9 = vpop.f32.mrf.mxu0  ;;  %3490 = vmatprep.subr.bf16.mxu0 %v5157_v34 }
 0x1a4   :  { %v6829_v45 = vpop.f32.mrf.mxu1  ;;  %3338 = vmatprep.mubr.bf16.mxu0 %v6823_v33 }
 0x1a5   :  { %v1942_v19 = vpop.f32.mrf.mxu0  ;;  %3339 = vmatmul.mubr.bf16.gmra.mxu0 %v6825_v28 }
 0x1a6   :  { %v2055_v29 = vpop.f32.mrf.mxu1  ;;  %v1943_v2 = vadd.f32 %v1942_v19, %v6803_v40  ;;  %3491 = vmatpush2.bf16.msra.mxu0 %v5155_v23  ;;  %3494 = vmatprep.mubr.bf16.mxu0 %v6710_v8 }
 0x1a7   :  { %v1944_v62 = vpop.f32.mrf.mxu0  ;;  %3492 = vmatprep.subr.bf16.mxu0 %v5160_v32 }
 0x1a8   :  { %v2057_v6 = vpop.f32.mrf.mxu1  ;;  %v6835_v31 = vadd.f32 %v2055_v29, %v1943_v2  ;;  %v1945_v20 = vadd.f32 %v1944_v62, %v6810_v39 }
 0x1a9   :  { %v6838_v47 = vpop.f32.mrf.mxu0 }
 0x1aa   :  { %v6840_v42 = vpop.f32.mrf.mxu1  ;;  %v6842_v15 = vadd.f32 %v2057_v6, %v1945_v20  ;;  %3493 = vmatpush2.bf16.msra.mxu0 %v5158_v44 }
 0x1ab   :  { %v6844_v30 = vpop.f32.mrf.mxu0 }
 0x1ac   :  { %v6846_v53 = vpop.f32.mrf.mxu1 }
 0x1ad   :  { %v1952_v8 = vpop.f32.mrf.mxu0  ;;  %3495 = vmatmul.mubr.bf16.vlgmr.msra.gmra.mxu0 %v6714_v59 }
 0x1ae   :  { %v2065_v57 = vpop.f32.mrf.mxu1  ;;  %v1953_v12 = vadd.f32 %v1952_v8, %v6803_v40  ;;  %3504 = vmatprep.mubr.bf16.mxu0 %v6724_v55 }
 0x1af   :  { %v1954_v22 = vpop.f32.mrf.mxu0 }
 0x1b0   :  { %v2067_v36 = vpop.f32.mrf.mxu1  ;;  %v6851_v37 = vadd.f32 %v2065_v57, %v1953_v12  ;;  %v1955_v0 = vadd.f32 %v1954_v22, %v6810_v39 }
 0x1b1   :  { %v6854_v63 = vpop.f32.mrf.mxu0 }
 0x1b2   :  { %v6856_v61 = vpop.f32.mrf.mxu1  ;;  %v6858_v51 = vadd.f32 %v2067_v36, %v1955_v0 }
 0x1b3   :  { %v6860_v10 = vpop.f32.mrf.mxu0 }
 0x1b4   :  { %v6862_v26 = vpop.f32.mrf.mxu1 }
 0x1b5   :  { %v1962_v59 = vpop.f32.mrf.mxu0  ;;  %3505 = vmatmul.mubr.bf16.gmra.mxu0 %v6726_v3 }
 0x1b6   :  { %v2075_v16 = vpop.f32.mrf.mxu1  ;;  %v1963_v55 = vadd.f32 %v1962_v59, %v6803_v40  ;;  %3514 = vmatprep.mubr.bf16.mxu0 %v6738_v1 }
 0x1b7   :  { %v1964_v4 = vpop.f32.mrf.mxu0 }
 0x1b8   :  { %v2077_v25 = vpop.f32.mrf.mxu1  ;;  %v6867_v49 = vadd.f32 %v2075_v16, %v1963_v55  ;;  %v1965_v58 = vadd.f32 %v1964_v4, %v6810_v39 }
 0x1b9   :  { %v6870_v18 = vpop.f32.mrf.mxu0 }
 0x1ba   :  { %v6872_v34 = vpop.f32.mrf.mxu1  ;;  %v6874_v46 = vadd.f32 %v2077_v25, %v1965_v58 }
 0x1bb   :  { %v6876_v60 = vpop.f32.mrf.mxu0 }
 0x1bc   :  { %v6878_v38 = vpop.f32.mrf.mxu1 }
 0x1bd   :  { %v1972_v3 = vpop.f32.mrf.mxu0  ;;  %3515 = vmatmul.mubr.bf16.gmra.mxu0 %v6740_v43 }
 0x1be   :  { %v2085_v27 = vpop.f32.mrf.mxu1  ;;  %v1973_v1 = vadd.f32 %v1972_v3, %v6803_v40  ;;  %3524 = vmatprep.mubr.bf16.mxu0 %v6752_v11 }
 0x1bf   :  { %v1974_v23 = vpop.f32.mrf.mxu0 }
 0x1c0   :  { %v2087_v32 = vpop.f32.mrf.mxu1  ;;  %v6883_v19 = vadd.f32 %v2085_v27, %v1973_v1  ;;  %v1975_v29 = vadd.f32 %v1974_v23, %v6810_v39 }
 0x1c1   :  { %v6886_v2 = vpop.f32.mrf.mxu0 }
 0x1c2   :  { %v6888_v44 = vpop.f32.mrf.mxu1  ;;  %v6890_v62 = vadd.f32 %v2087_v32, %v1975_v29 }
 0x1c3   :  { %v6892_v6 = vpop.f32.mrf.mxu0 }
 0x1c4   :  { %v6894_v20 = vpop.f32.mrf.mxu1 }
 0x1c5   :  { %v1982_v43 = vpop.f32.mrf.mxu0  ;;  %3525 = vmatmul.mubr.bf16.gmra.mxu0 %v6754_v21 }
 0x1c6   :  { %v2095_v8 = vpop.f32.mrf.mxu1  ;;  %v1983_v11 = vadd.f32 %v1982_v43, %v6803_v40  ;;  %3534 = vmatprep.mubr.bf16.mxu0 %v6766_v41 }
 0x1c7   :  { %v1984_v57 = vpop.f32.mrf.mxu0 }
 0x1c8   :  { %v2097_v12 = vpop.f32.mrf.mxu1  ;;  %v6899_v22 = vadd.f32 %v2095_v8, %v1983_v11  ;;  %v1985_v36 = vadd.f32 %v1984_v57, %v6810_v39 }
 0x1c9   :  { %v6902_v0 = vpop.f32.mrf.mxu0 }
 0x1ca   :  { %v6904_v59 = vpop.f32.mrf.mxu1  ;;  %v6906_v16 = vadd.f32 %v2097_v12, %v1985_v36 }
 0x1cb   :  { %v6908_v55 = vpop.f32.mrf.mxu0 }
 0x1cc   :  { %v6910_v4 = vpop.f32.mrf.mxu1 }
 0x1cd   :  { %v1992_v21 = vpop.f32.mrf.mxu0  ;;  %3535 = vmatmul.mubr.bf16.gmra.mxu0 %v6768_v17 }
 0x1ce   :  { %v2105_v25 = vpop.f32.mrf.mxu1  ;;  %v1993_v41 = vadd.f32 %v1992_v21, %v6803_v40  ;;  %3544 = vmatprep.mubr.bf16.mxu0 %v6780_v14 }
 0x1cf   :  { %v1994_v58 = vpop.f32.mrf.mxu0 }
 0x1d0   :  { %v2107_v3 = vpop.f32.mrf.mxu1  ;;  %v6915_v27 = vadd.f32 %v2105_v25, %v1993_v41  ;;  %v1995_v1 = vadd.f32 %v1994_v58, %v6810_v39 }
 0x1d1   :  { %v6918_v23 = vpop.f32.mrf.mxu0 }
 0x1d2   :  { %v6920_v32 = vpop.f32.mrf.mxu1  ;;  %v6922_v29 = vadd.f32 %v2107_v3, %v1995_v1 }
 0x1d3   :  { %v6924_v43 = vpop.f32.mrf.mxu0 }
 0x1d4   :  { %v6926_v8 = vpop.f32.mrf.mxu1 }
 0x1d5   :  { %v2002_v17 = vpop.f32.mrf.mxu0  ;;  %3545 = vmatmul.mubr.bf16.gmra.mxu0 %v6782_v56  ;;  %v1937_v56 = vadd.f32 %v6817_v35, %v6803_v40 }
 0x1d6   :  { %v2115_v11 = vpop.f32.mrf.mxu1  ;;  %v2003_v14 = vadd.f32 %v2002_v17, %v6803_v40  ;;  %3554 = vmatprep.mubr.bf16.mxu0 %v6796_v50 }
 0x1d7   :  { %v2004_v57 = vpop.f32.mrf.mxu0 }
 0x1d8   :  { %v2117_v12 = vpop.f32.mrf.mxu1  ;;  %v6931_v36 = vadd.f32 %v2115_v11, %v2003_v14  ;;  %v2005_v21 = vadd.f32 %v2004_v57, %v6810_v39  ;;  %v1939_v11 = vadd.f32 %v6827_v9, %v6810_v39  ;;  %v1947_v9 = vadd.f32 %v6838_v47, %v6803_v40 }
 0x1d9   :  { %v6934_v25 = vpop.f32.mrf.mxu0 }
 0x1da   :  { %7445 = vst [vmem:[#allocation9_spill] sm:$0xff] %v6931_v36  ;;  %7446 = vst [vmem:[#allocation12_spill] sm:$0xff] %v6934_v25  ;;  %v6936_v41 = vpop.f32.mrf.mxu1  ;;  %v6938_v58 = vadd.f32 %v2117_v12, %v2005_v21  ;;  %v2050_v12 = vadd.f32 %v6819_v7, %v1937_v56  ;;  %v2052_v35 = vadd.f32 %v6829_v45, %v1939_v11 }
 0x1db   :  { %7447 = vst [vmem:[#allocation10_spill] sm:$0xff] %v6936_v41  ;;  %v6940_v3 = vpop.f32.mrf.mxu0 }
 0x1dc   :  { %7448 = vst [vmem:[#allocation11_spill] sm:$0xff] %v6938_v58  ;;  %7449 = vst [vmem:[#allocation8_spill] sm:$0xff] %v6940_v3  ;;  %v6942_v1 = vpop.f32.mrf.mxu1 }
 0x1dd   :  { %7450 = vst [vmem:[#allocation13_spill] sm:$0xff] %v6942_v1  ;;  %v2158_v50 = vpop.f32.mrf.mxu0  ;;  %3555 = vmatmul.mubr.bf16.gmra.mxu0 %v6805_v24 }
 0x1de   :  { %v2271_v17 = vpop.f32.mrf.mxu1  ;;  %3564 = vmatprep.mubr.bf16.mxu0 %v6823_v33  ;;  %v2159_v52 = vadd.f32 %v2158_v50, %v6814_v5  ;;  %v1949_v5 = vadd.f32 %v6844_v30, %v6810_v39  ;;  %v2060_v50 = vadd.f32 %v6840_v42, %v1947_v9  ;;  %v5209_v30 = vld [vmem:[#allocation2 + $0x2e8] ss:$16 sps:$4 sm:$0xff]   ;;  %v5214_v42 = vld [vmem:[#allocation2 + $0x2cc] ss:$16 sps:$4 sm:$0xff]  }
 0x1df   :  { %v2160_v14 = vpop.f32.mrf.mxu0 }
 0x1e0   :  { %v2273_v57 = vpop.f32.mrf.mxu1  ;;  %v2161_v21 = vadd.f32 %v2160_v14, %v6821_v54  ;;  %v2272_v3 = vadd.f32 %v2271_v17, %v2159_v52 }
 0x1e1   :  { %v2162_v13 = vpop.f32.mrf.mxu0 }
 0x1e2   :  { %v2275_v48 = vpop.f32.mrf.mxu1  ;;  %v2163_v1 = vadd.f32 %v2162_v13, %v2050_v12  ;;  %v2274_v58 = vadd.f32 %v2273_v57, %v2161_v21 }
 0x1e3   :  { %v2164_v36 = vpop.f32.mrf.mxu0 }
 0x1e4   :  { %v2277_v24 = vpop.f32.mrf.mxu1  ;;  %v2276_v33 = vadd.f32 %v2275_v48, %v2163_v1  ;;  %v2165_v41 = vadd.f32 %v2164_v36, %v2052_v35  ;;  %v2353_v11 = vmax.f32 %v2274_v58, 0.0  ;;  %v2352_v48 = vmax.f32 %v2272_v3, 0.0 }
 0x1e5   :  { %v2168_v25 = vpop.f32.mrf.mxu0  ;;  %3565 = vmatmul.mubr.bf16.gmra.mxu0 %v6825_v28  ;;  %v2062_v28 = vadd.f32 %v6846_v53, %v1949_v5  ;;  %v1957_v58 = vadd.f32 %v6854_v63, %v6803_v40  ;;  %v5217_v63 = vld [vmem:[#allocation2 + $0x2ac] ss:$16 sps:$4 sm:$0xff]  }
 0x1e6   :  { %v2281_v7 = vpop.f32.mrf.mxu1  ;;  %v2278_v54 = vadd.f32 %v2277_v24, %v2165_v41  ;;  %v2356_v56 = vmax.f32 %v2276_v33, 0.0  ;;  %v2169_v52 = vadd.f32 %v2168_v25, %v6835_v31  ;;  %v1959_v24 = vadd.f32 %v6860_v10, %v6810_v39  ;;  %v5212_v33 = vld [vmem:[#allocation2 + $0x2c8] ss:$16 sps:$4 sm:$0xff]  }
 0x1e7   :  { %v2170_v45 = vpop.f32.mrf.mxu0 }
 0x1e8   :  { %v2283_v13 = vpop.f32.mrf.mxu1  ;;  %v2357_v14 = vmax.f32 %v2278_v54, 0.0  ;;  %v2171_v47 = vadd.f32 %v2170_v45, %v6842_v15  ;;  %v6965_v41 = vpack.c.bf16 %v2356_v56, %v2352_v48  ;;  %v2282_v31 = vadd.f32 %v2281_v7, %v2169_v52 }
 0x1e9   :  { %v2172_v36 = vpop.f32.mrf.mxu0  ;;  %v2070_v45 = vadd.f32 %v6856_v61, %v1957_v58  ;;  %v2072_v10 = vadd.f32 %v6862_v26, %v1959_v24 }
 0x1ea   :  { %v2285_v1 = vpop.f32.mrf.mxu1  ;;  %v2173_v17 = vadd.f32 %v2172_v36, %v2060_v50  ;;  %v6963_v57 = vpack.c.bf16 %v2357_v14, %v2353_v11  ;;  %v2284_v15 = vadd.f32 %v2283_v13, %v2171_v47  ;;  %v2360_v11 = vmax.f32 %v2282_v31, 0.0 }
 0x1eb   :  { %v2174_v12 = vpop.f32.mrf.mxu0 }
 0x1ec   :  { %v2287_v21 = vpop.f32.mrf.mxu1  ;;  %v2286_v3 = vadd.f32 %v2285_v1, %v2173_v17  ;;  %v2175_v35 = vadd.f32 %v2174_v12, %v2062_v28  ;;  %3381 = vmatprep.mubr.bf16.mxu1 %v6963_v57  ;;  %v2361_v13 = vmax.f32 %v2284_v15, 0.0  ;;  %v5215_v1 = vld [vmem:[#allocation2 + $0x2a8] ss:$16 sps:$4 sm:$0xff]   ;;  %v1969_v15 = vadd.f32 %v6876_v60, %v6810_v39 }
 0x1ed   :  { %v2178_v25 = vpop.f32.mrf.mxu0  ;;  %3382 = vmatmul.mubr.bf16.vlgmr.msra.gmra.mxu1 %v6965_v41 }
 0x1ee   :  { %v2291_v53 = vpop.f32.mrf.mxu1  ;;  %v2288_v9 = vadd.f32 %v2287_v21, %v2175_v35  ;;  %3576 = vmatpush1.bf16.msra.mxu1 %v5209_v30  ;;  %v2364_v5 = vmax.f32 %v2286_v3, 0.0  ;;  %v2179_v14 = vadd.f32 %v2178_v25, %v6851_v37  ;;  %v5220_v30 = vld [vmem:[#allocation2 + $0x28c] ss:$16 sps:$4 sm:$0xff]   ;;  %v5218_v35 = vld [vmem:[#allocation2 + $0x288] ss:$16 sps:$4 sm:$0xff]   ;;  %v2082_v60 = vadd.f32 %v6878_v38, %v1969_v15 }
 0x1ef   :  { %v2180_v54 = vpop.f32.mrf.mxu0  ;;  %3577 = vmatprep.subr.bf16.mxu1 %v5214_v42 }
 0x1f0   :  { %v2293_v56 = vpop.f32.mrf.mxu1  ;;  %v2365_v50 = vmax.f32 %v2288_v9, 0.0  ;;  %v2181_v7 = vadd.f32 %v2180_v54, %v6858_v51  ;;  %v6979_v28 = vpack.c.bf16 %v2364_v5, %v2360_v11  ;;  %v1967_v51 = vadd.f32 %v6870_v18, %v6803_v40  ;;  %v5223_v18 = vld [vmem:[#allocation2 + $0x26c] ss:$16 sps:$4 sm:$0xff]  }
 0x1f1   :  { %v2182_v47 = vpop.f32.mrf.mxu0  ;;  %v2292_v26 = vadd.f32 %v2291_v53, %v2179_v14 }
 0x1f2   :  { %v2295_v48 = vpop.f32.mrf.mxu1  ;;  %v2183_v52 = vadd.f32 %v2182_v47, %v2070_v45  ;;  %3578 = vmatpush1.bf16.msra.mxu1 %v5212_v33  ;;  %v6977_v36 = vpack.c.bf16 %v2365_v50, %v2361_v13  ;;  %v2294_v12 = vadd.f32 %v2293_v56, %v2181_v7  ;;  %v2080_v9 = vadd.f32 %v6872_v34, %v1967_v51  ;;  %v5221_v7 = vld [vmem:[#allocation2 + $0x268] ss:$16 sps:$4 sm:$0xff]   ;;  %v5226_v47 = vld [vmem:[#allocation2 + $0x24c] ss:$16 sps:$4 sm:$0xff]  }
 0x1f3   :  { %v2184_v17 = vpop.f32.mrf.mxu0  ;;  %3579 = vmatprep.subr.bf16.mxu1 %v5217_v63  ;;  %v2368_v54 = vmax.f32 %v2292_v26, 0.0 }
 0x1f4   :  { %v2297_v61 = vpop.f32.mrf.mxu1  ;;  %v2296_v37 = vadd.f32 %v2295_v48, %v2183_v52  ;;  %v2185_v21 = vadd.f32 %v2184_v17, %v2072_v10  ;;  %3391 = vmatprep.mubr.bf16.mxu1 %v6977_v36  ;;  %v2369_v33 = vmax.f32 %v2294_v12, 0.0  ;;  %v1979_v17 = vadd.f32 %v6892_v6, %v6810_v39 }
 0x1f5   :  { %v2188_v42 = vpop.f32.mrf.mxu0  ;;  %3392 = vmatmul.mubr.bf16.gmra.mxu1 %v6979_v28 }
 0x1f6   :  { %v2301_v58 = vpop.f32.mrf.mxu1  ;;  %v2298_v3 = vadd.f32 %v2297_v61, %v2185_v21  ;;  %3580 = vmatpush1.bf16.msra.mxu1 %v5215_v1  ;;  %v2372_v31 = vmax.f32 %v2296_v37, 0.0  ;;  %v2189_v56 = vadd.f32 %v2188_v42, %v6867_v49  ;;  %v2092_v6 = vadd.f32 %v6894_v20, %v1979_v17 }
 0x1f7   :  { %v2190_v25 = vpop.f32.mrf.mxu0  ;;  %3581 = vmatprep.subr.bf16.mxu1 %v5220_v30  ;;  %v5224_v30 = vld [vmem:[#allocation2 + $0x248] ss:$16 sps:$4 sm:$0xff]  }
 0x1f8   :  { %v2303_v24 = vpop.f32.mrf.mxu1  ;;  %v2373_v5 = vmax.f32 %v2298_v3, 0.0  ;;  %v2191_v53 = vadd.f32 %v2190_v25, %v6874_v46  ;;  %v6993_v11 = vpack.c.bf16 %v2372_v31, %v2368_v54  ;;  %v1977_v46 = vadd.f32 %v6886_v2, %v6803_v40  ;;  %v5229_v2 = vld [vmem:[#allocation2 + $0x22c] ss:$16 sps:$4 sm:$0xff]  }
 0x1f9   :  { %v2192_v63 = vpop.f32.mrf.mxu0  ;;  %v2302_v38 = vadd.f32 %v2301_v58, %v2189_v56 }
 0x1fa   :  { %v2305_v45 = vpop.f32.mrf.mxu1  ;;  %v2193_v13 = vadd.f32 %v2192_v63, %v2080_v9  ;;  %3582 = vmatpush1.bf16.msra.mxu1 %v5218_v35  ;;  %v6991_v50 = vpack.c.bf16 %v2373_v5, %v2369_v33  ;;  %v2304_v48 = vadd.f32 %v2303_v24, %v2191_v53  ;;  %v2090_v21 = vadd.f32 %v6888_v44, %v1977_v46  ;;  %v5232_v5 = vld [vmem:[#allocation2 + $0x20c] ss:$16 sps:$4 sm:$0xff]  }
 0x1fb   :  { %v2194_v14 = vpop.f32.mrf.mxu0  ;;  %3583 = vmatprep.subr.bf16.mxu1 %v5223_v18  ;;  %v2376_v15 = vmax.f32 %v2302_v38, 0.0  ;;  %v5227_v18 = vld [vmem:[#allocation2 + $0x228] ss:$16 sps:$4 sm:$0xff]  }
 0x1fc   :  { %v2307_v34 = vpop.f32.mrf.mxu1  ;;  %v2306_v49 = vadd.f32 %v2305_v45, %v2193_v13  ;;  %v2195_v10 = vadd.f32 %v2194_v14, %v2082_v60  ;;  %3401 = vmatprep.mubr.bf16.mxu1 %v6991_v50  ;;  %v2377_v26 = vmax.f32 %v2304_v48, 0.0  ;;  %v1989_v45 = vadd.f32 %v6908_v55, %v6810_v39  ;;  %v5230_v13 = vld [vmem:[#allocation2 + $0x208] ss:$16 sps:$4 sm:$0xff]  }
 0x1fd   :  { %v2198_v52 = vpop.f32.mrf.mxu0  ;;  %3402 = vmatmul.mubr.bf16.gmra.mxu1 %v6993_v11 }
 0x1fe   :  { %v2311_v1 = vpop.f32.mrf.mxu1  ;;  %v2308_v61 = vadd.f32 %v2307_v34, %v2195_v10  ;;  %3584 = vmatpush1.bf16.msra.mxu1 %v5221_v7  ;;  %v2380_v51 = vmax.f32 %v2306_v49, 0.0  ;;  %v2199_v3 = vadd.f32 %v2198_v52, %v6883_v19  ;;  %v2102_v55 = vadd.f32 %v6910_v4, %v1989_v45 }
 0x1ff   :  { %v2200_v12 = vpop.f32.mrf.mxu0  ;;  %3585 = vmatprep.subr.bf16.mxu1 %v5226_v47 }
 0x200   :  { %v2313_v37 = vpop.f32.mrf.mxu1  ;;  %v2381_v42 = vmax.f32 %v2308_v61, 0.0  ;;  %v2201_v58 = vadd.f32 %v2200_v12, %v6890_v62  ;;  %v7007_v9 = vpack.c.bf16 %v2380_v51, %v2376_v15  ;;  %v1987_v62 = vadd.f32 %v6902_v0, %v6803_v40  ;;  %v5235_v0 = vld [vmem:[#allocation2 + $0x3ec] ss:$16 sps:$4 sm:$0xff]  }
 0x201   :  { %v2202_v35 = vpop.f32.mrf.mxu0  ;;  %v2312_v20 = vadd.f32 %v2311_v1, %v2199_v3  ;;  %v5236_v3 = vld [vmem:[#allocation2 + $0x3c8] ss:$16 sps:$4 sm:$0xff]  }
 0x202   :  { %v2315_v31 = vpop.f32.mrf.mxu1  ;;  %v2203_v25 = vadd.f32 %v2202_v35, %v2090_v21  ;;  %3586 = vmatpush1.bf16.msra.mxu1 %v5224_v30  ;;  %v7005_v24 = vpack.c.bf16 %v2381_v42, %v2377_v26  ;;  %v2314_v53 = vadd.f32 %v2313_v37, %v2201_v58  ;;  %v2100_v47 = vadd.f32 %v6904_v59, %v1987_v62  ;;  %v5233_v30 = vld [vmem:[#allocation2 + $0x3e8] ss:$16 sps:$4 sm:$0xff]   ;;  %v5238_v37 = vld [vmem:[#allocation2 + $0x3cc] ss:$16 sps:$4 sm:$0xff]  }
 0x203   :  { %v2204_v33 = vpop.f32.mrf.mxu0  ;;  %3587 = vmatprep.subr.bf16.mxu1 %v5229_v2  ;;  %v2384_v10 = vmax.f32 %v2312_v20, 0.0  ;;  %v1999_v58 = vadd.f32 %v6924_v43, %v6810_v39 }
 0x204   :  { %v2317_v44 = vpop.f32.mrf.mxu1  ;;  %v2316_v19 = vadd.f32 %v2315_v31, %v2203_v25  ;;  %v2205_v54 = vadd.f32 %v2204_v33, %v2092_v6  ;;  %3411 = vmatprep.mubr.bf16.mxu1 %v7005_v24  ;;  %v2385_v46 = vmax.f32 %v2314_v53, 0.0 }
 0x205   :  { %v2208_v56 = vpop.f32.mrf.mxu0  ;;  %3412 = vmatmul.mubr.bf16.gmra.mxu1 %v7007_v9  ;;  %v2112_v43 = vadd.f32 %v6926_v8, %v1999_v58 }
 0x206   :  { %v2321_v63 = vpop.f32.mrf.mxu1  ;;  %v2318_v60 = vadd.f32 %v2317_v44, %v2205_v54  ;;  %3588 = vmatpush1.bf16.msra.mxu1 %v5227_v18  ;;  %v2388_v7 = vmax.f32 %v2316_v19, 0.0  ;;  %v2209_v38 = vadd.f32 %v2208_v56, %v6899_v22  ;;  %v5239_v56 = vld [vmem:[#allocation2 + $0x3a8] ss:$16 sps:$4 sm:$0xff]  }
 0x207   :  { %v2210_v14 = vpop.f32.mrf.mxu0  ;;  %3589 = vmatprep.subr.bf16.mxu1 %v5232_v5 }
 0x208   :  { %v2323_v34 = vpop.f32.mrf.mxu1  ;;  %v2389_v48 = vmax.f32 %v2318_v60, 0.0  ;;  %v2211_v49 = vadd.f32 %v2210_v14, %v6906_v16  ;;  %v7021_v51 = vpack.c.bf16 %v2388_v7, %v2384_v10  ;;  %v1997_v16 = vadd.f32 %v6918_v23, %v6803_v40  ;;  %v5241_v23 = vld [vmem:[#allocation2 + $0x3ac] ss:$16 sps:$4 sm:$0xff]  }
 0x209   :  { %v2212_v52 = vpop.f32.mrf.mxu0  ;;  %v2322_v4 = vadd.f32 %v2321_v63, %v2209_v38  ;;  %v5244_v60 = vld [vmem:[#allocation2 + $0x38c] ss:$16 sps:$4 sm:$0xff]  }
 0x20a   :  { %v2325_v1 = vpop.f32.mrf.mxu1  ;;  %v7019_v17 = vpack.c.bf16 %v2389_v48, %v2385_v46  ;;  %v2213_v61 = vadd.f32 %v2212_v52, %v2100_v47  ;;  %3590 = vmatpush1.bf16.msra.mxu1 %v5230_v13  ;;  %v2324_v2 = vadd.f32 %v2323_v34, %v2211_v49  ;;  %v2110_v25 = vadd.f32 %v6920_v32, %v1997_v16  ;;  %v7452_v47 = vld [vmem:[#allocation8_spill] sm:$0xff]  ;;  %v5242_v49 = vld [vmem:[#allocation2 + $0x388] ss:$16 sps:$4 sm:$0xff]  }
 0x20b   :  { %v2214_v12 = vpop.f32.mrf.mxu0  ;;  %3591 = vmatprep.subr.bf16.mxu1 %v5235_v0  ;;  %v2392_v5 = vmax.f32 %v2322_v4, 0.0  ;;  %v2009_v46 = vadd.f32 %v7452_v47, %v6810_v39  ;;  %v7455_v16 = vld [vmem:[#allocation9_spill] sm:$0xff]  ;;  %v5257_v39 = vld [vmem:[#allocation4 + $0x78] sm:$0xff]  }
 0x20c   :  { %v2327_v59 = vpop.f32.mrf.mxu1  ;;  %v2326_v22 = vadd.f32 %v2325_v1, %v2213_v61  ;;  %v2215_v21 = vadd.f32 %v2214_v12, %v2102_v55  ;;  %3421 = vmatprep.mubr.bf16.mxu1 %v7019_v17  ;;  %v2393_v18 = vmax.f32 %v2324_v2, 0.0  ;;  %v7453_v1 = vld [vmem:[#allocation10_spill] sm:$0xff]  ;;  %v7454_v12 = vld [vmem:[#allocation11_spill] sm:$0xff]  ;;  %v7456_v4 = vld [vmem:[#allocation13_spill] sm:$0xff]  ;;  %4636 = vmatprep.subr.bf16.mxu0 %v5257_v39 }
 0x20d   :  { %v2218_v26 = vpop.f32.mrf.mxu0  ;;  %3422 = vmatmul.mubr.bf16.gmra.mxu1 %v7021_v51  ;;  %v5265_v47 = vld [vmem:[#allocation4 + $0x58] sm:$0xff]  }
 0x20e   :  { %v2331_v42 = vpop.f32.mrf.mxu1  ;;  %v2328_v15 = vadd.f32 %v2327_v59, %v2215_v21  ;;  %3592 = vmatpush2.bf16.msra.mxu1 %v5233_v30  ;;  %v2396_v35 = vmax.f32 %v2326_v22, 0.0  ;;  %v2219_v62 = vadd.f32 %v2218_v26, %v6915_v27  ;;  %v2122_v26 = vadd.f32 %v7456_v4, %v2009_v46  ;;  %v5266_v46 = vld [vmem:[#allocation4 + $0x18] sm:$0xff]  }
 0x20f   :  { %v2220_v31 = vpop.f32.mrf.mxu0  ;;  %3593 = vmatprep.subr.bf16.mxu1 %v5238_v37  ;;  %v5281_v39 = vld [vmem:[#allocation4 + $0xd8] sm:$0xff]  }
 0x210   :  { %v2333_v6 = vpop.f32.mrf.mxu1  ;;  %v2397_v33 = vmax.f32 %v2328_v15, 0.0  ;;  %v2221_v44 = vadd.f32 %v2220_v31, %v6922_v29  ;;  %v7035_v63 = vpack.c.bf16 %v2396_v35, %v2392_v5  ;;  %v7451_v29 = vld [vmem:[#allocation12_spill] sm:$0xff]  ;;  %v2332_v8 = vadd.f32 %v2331_v42, %v2219_v62  ;;  %v5245_v15 = vld [vmem:[#allocation2 + $0x368] ss:$16 sps:$4 sm:$0xff]   ;;  %v5259_v5 = vld [vmem:[#allocation4 + $0x70] sm:$0xff]  }
 0x211   :  { %v2222_v53 = vpop.f32.mrf.mxu0  ;;  %v2007_v13 = vadd.f32 %v7451_v29, %v6803_v40  ;;  %v5247_v40 = vld [vmem:[#allocation2 + $0x36c] ss:$16 sps:$4 sm:$0xff]  }
 0x212   :  { %v2335_v19 = vpop.f32.mrf.mxu1  ;;  %v7033_v54 = vpack.c.bf16 %v2397_v33, %v2393_v18  ;;  %v2223_v20 = vadd.f32 %v2222_v53, %v2110_v25  ;;  %3594 = vmatpush2.bf16.msra.mxu1 %v5236_v3  ;;  %v2334_v7 = vadd.f32 %v2333_v6, %v2221_v44  ;;  %v2400_v37 = vmax.f32 %v2332_v8, 0.0  ;;  %v5258_v3 = vld [vmem:[#allocation4 + $0x38] sm:$0xff]   ;;  %v5263_v8 = vld [vmem:[#allocation4 + $0x60] sm:$0xff]  }
 0x213   :  { %v2224_v45 = vpop.f32.mrf.mxu0  ;;  %3595 = vmatprep.subr.bf16.mxu1 %v5241_v23  ;;  %v2120_v55 = vadd.f32 %v7453_v1, %v2007_v13  ;;  %v5250_v6 = vld [vmem:[#allocation2 + $0x34c] ss:$16 sps:$4 sm:$0xff]   ;;  %4637 = vmatpush3.bf16.msra.mxu0 %v5258_v3  ;;  %v5248_v53 = vld [vmem:[#allocation2 + $0x348] ss:$16 sps:$4 sm:$0xff]   ;;  %v5271_v1 = vld [vmem:[#allocation4 + $0x40] sm:$0xff]  }
 0x214   :  { %v2337_v32 = vpop.f32.mrf.mxu1  ;;  %v2336_v27 = vadd.f32 %v2335_v19, %v2223_v20  ;;  %v2225_v14 = vadd.f32 %v2224_v45, %v2112_v43  ;;  %3431 = vmatprep.mubr.bf16.mxu1 %v7033_v54  ;;  %v2401_v61 = vmax.f32 %v2334_v7, 0.0  ;;  %v5260_v19 = vld [vmem:[#allocation4 + $0x30] sm:$0xff]   ;;  %v5253_v20 = vld [vmem:[#allocation2 + $0x32c] ss:$16 sps:$4 sm:$0xff]   ;;  %4638 = vmatprep.subr.bf16.mxu0 %v5259_v5  ;;  %v5251_v13 = vld [vmem:[#allocation2 + $0x328] ss:$16 sps:$4 sm:$0xff]  }
 0x215   :  { %v2228_v34 = vpop.f32.mrf.mxu0  ;;  %3432 = vmatmul.mubr.bf16.gmra.mxu1 %v7035_v63  ;;  %v5262_v7 = vld [vmem:[#allocation4 + $0x28] sm:$0xff]   ;;  %v5282_v4 = vld [vmem:[#allocation4 + $0x98] sm:$0xff]  }
 0x216   :  { %v2341_v0 = vpop.f32.mrf.mxu1  ;;  %v2338_v48 = vadd.f32 %v2337_v32, %v2225_v14  ;;  %3596 = vmatpush2.bf16.msra.mxu1 %v5239_v56  ;;  %v2404_v10 = vmax.f32 %v2336_v27, 0.0  ;;  %v2229_v2 = vadd.f32 %v2228_v34, %v7455_v16  ;;  %v5256_v14 = vld [vmem:[#allocation2 + $0x30c] ss:$16 sps:$4 sm:$0xff]   ;;  %v5254_v34 = vld [vmem:[#allocation2 + $0x308] ss:$16 sps:$4 sm:$0xff]  }
 0x217   :  { %v2230_v38 = vpop.f32.mrf.mxu0  ;;  %3597 = vmatprep.subr.bf16.mxu1 %v5244_v60  ;;  %4639 = vmatpush3.bf16.msra.mxu0 %v5260_v19  ;;  %v5261_v60 = vld [vmem:[#allocation4 + $0x68] sm:$0xff]  }
 0x218   :  { %v2343_v52 = vpop.f32.mrf.mxu1  ;;  %v2405_v30 = vmax.f32 %v2338_v48, 0.0  ;;  %v2231_v59 = vadd.f32 %v2230_v38, %v7454_v12  ;;  %v7049_v35 = vpack.c.bf16 %v2404_v10, %v2400_v37  ;;  %v2342_v33 = vadd.f32 %v2341_v0, %v2229_v2  ;;  %4640 = vmatprep.subr.bf16.mxu0 %v5261_v60  ;;  %v5264_v0 = vld [vmem:[#allocation4 + $0x20] sm:$0xff]   ;;  %v5268_v10 = vld [vmem:[#allocation4 + $0x10] sm:$0xff]   ;;  %v5274_v12 = vld [vmem:[#allocation4 + $0xb8] sm:$0xff]  }
 0x219   :  { %v2232_v22 = vpop.f32.mrf.mxu0  ;;  %v5276_v37 = vld [vmem:[#allocation4 + $0xb0] sm:$0xff]   ;;  %v5277_v16 = vld [vmem:[#allocation4 + $0xe8] sm:$0xff]  }
 0x21a   :  { %v2345_v21 = vpop.f32.mrf.mxu1  ;;  %v7047_v42 = vpack.c.bf16 %v2405_v30, %v2401_v61  ;;  %v2233_v58 = vadd.f32 %v2232_v22, %v2120_v55  ;;  %3598 = vmatpush2.bf16.msra.mxu1 %v5242_v49  ;;  %v2344_v23 = vadd.f32 %v2343_v52, %v2231_v59  ;;  %v2408_v32 = vmax.f32 %v2342_v33, 0.0  ;;  %v5267_v49 = vld [vmem:[#allocation4 + $0x50] sm:$0xff]   ;;  %v5270_v52 = vld [vmem:[#allocation4 + $0x8] sm:$0xff]   ;;  %v5273_v30 = vld [vmem:[#allocation4 + $0xf8] sm:$0xff]  }
 0x21b   :  { %v2234_v31 = vpop.f32.mrf.mxu0  ;;  %3599 = vmatprep.subr.bf16.mxu1 %v5247_v40  ;;  %4641 = vmatpush3.bf16.msra.mxu0 %v5262_v7  ;;  %v5275_v59 = vld [vmem:[#allocation4 + $0xf0] sm:$0xff]   ;;  %v5278_v2 = vld [vmem:[#allocation4 + $0xa8] sm:$0xff]   ;;  %v5279_v22 = vld [vmem:[#allocation4 + $0xe0] sm:$0xff]  }
 0x21c   :  { %v2346_v25 = vadd.f32 %v2345_v21, %v2233_v58  ;;  %v2235_v18 = vadd.f32 %v2234_v31, %v2122_v26  ;;  %3441 = vmatprep.mubr.bf16.mxu1 %v7047_v42  ;;  %v2347_v44 = vpop.f32.mrf.mxu1  ;;  %v2409_v56 = vmax.f32 %v2344_v23, 0.0  ;;  %4642 = vmatprep.subr.bf16.mxu0 %v5263_v8  ;;  %v5280_v21 = vld [vmem:[#allocation4 + $0xa0] sm:$0xff]   ;;  %v5284_v58 = vld [vmem:[#allocation4 + $0x90] sm:$0xff]   ;;  %v5286_v31 = vld [vmem:[#allocation4 + $0x88] sm:$0xff]  }
 0x21d   :  { %3442 = vmatmul.mubr.bf16.gmra.mxu1 %v7049_v35  ;;  %v5287_v23 = vld [vmem:[#allocation4 + $0xc0] sm:$0xff]   ;;  %v7457_v7 = vld [vmem:[#allocation14_spill] sm:$0xff] }
 0x21e   :  { %v2348_v62 = vadd.f32 %v2347_v44, %v2235_v18  ;;  %3600 = vmatpush2.bf16.msra.mxu1 %v5245_v15  ;;  %v2412_v43 = vmax.f32 %v2346_v25, 0.0  ;;  %v5288_v25 = vld [vmem:[#allocation4 + $0x80] sm:$0xff]   ;;  %v7459_v8 = vsub.s32 0, %v7457_v7 }
 0x21f   :  { %3601 = vmatprep.subr.bf16.mxu1 %v5250_v6  ;;  %4643 = vmatpush3.bf16.msra.mxu0 %v5264_v0 }
 0x220   :  { %v2413_v45 = vmax.f32 %v2348_v62, 0.0  ;;  %v7055_v27 = vpack.c.bf16 %v2412_v43, %v2408_v32  ;;  %4644 = vmatprep.subr.bf16.mxu0 %v5265_v47 }
 0x222   :  { %v7053_v29 = vpack.c.bf16 %v2413_v45, %v2409_v56  ;;  %3602 = vmatpush2.bf16.msra.mxu1 %v5248_v53 }
 0x223   :  { %3603 = vmatprep.subr.bf16.mxu1 %v5253_v20  ;;  %4645 = vmatpush3.bf16.msra.mxu0 %v5266_v46 }
 0x224   :  { %3451 = vmatprep.mubr.bf16.mxu1 %v7053_v29  ;;  %4646 = vmatprep.subr.bf16.mxu0 %v5267_v49 }
 0x225   :  { %3452 = vmatmul.mubr.bf16.gmra.mxu1 %v7055_v27 }
 0x226   :  { %3604 = vmatpush2.bf16.msra.mxu1 %v5251_v13  ;;  %3607 = vmatprep.mubr.bf16.mxu1 %v6963_v57  ;;  %v5269_v57 = vld [vmem:[#allocation4 + $0x48] sm:$0xff]  }
 0x227   :  { %3605 = vmatprep.subr.bf16.mxu1 %v5256_v14  ;;  %4647 = vmatpush3.bf16.msra.mxu0 %v5268_v10 }
 0x228   :  { %4648 = vmatprep.subr.bf16.mxu0 %v5269_v57 }
 0x22a   :  { %3606 = vmatpush2.bf16.msra.mxu1 %v5254_v34 }
 0x22b   :  { %4649 = vmatpush3.bf16.msra.mxu0 %v5270_v52  ;;  %4700 = vmatprep.subr.bf16.mxu1 %v5273_v30 }
 0x22c   :  { %4650 = vmatprep.subr.bf16.mxu0 %v5271_v1 }
 0x22d   :  { %v7060_v48 = vpop.f32.mrf.mxu0  ;;  %3608 = vmatmul.mubr.bf16.vlgmr.msra.gmra.mxu1 %v6965_v41  ;;  %v5272_v41 = vld [vmem:[#allocation4] sm:$0xff]  }
 0x22e   :  { %3617 = vmatprep.mubr.bf16.mxu1 %v6977_v36  ;;  %4701 = vmatpush3.bf16.msra.mxu1 %v5274_v12 }
 0x22f   :  { %v7064_v38 = vpop.f32.mrf.mxu0  ;;  %4651 = vmatpush3.bf16.msra.mxu0 %v5272_v41  ;;  %4702 = vmatprep.subr.bf16.mxu1 %v5275_v59 }
 0x231   :  { %v7066_v40 = vpop.f32.mrf.mxu0 }
 0x232   :  { %4703 = vmatpush3.bf16.msra.mxu1 %v5276_v37 }
 0x233   :  { %v7070_v55 = vpop.f32.mrf.mxu0  ;;  %4704 = vmatprep.subr.bf16.mxu1 %v5277_v16 }
 0x235   :  { %3618 = vmatmul.mubr.bf16.gmra.mxu1 %v6979_v28  ;;  %v7072_v36 = vpop.f32.mrf.mxu0 }
 0x236   :  { %3627 = vmatprep.mubr.bf16.mxu1 %v6991_v50  ;;  %4705 = vmatpush3.bf16.msra.mxu1 %v5278_v2 }
 0x237   :  { %v7076_v61 = vpop.f32.mrf.mxu0  ;;  %4706 = vmatprep.subr.bf16.mxu1 %v5279_v22 }
 0x239   :  { %v7078_v28 = vpop.f32.mrf.mxu0 }
 0x23a   :  { %4707 = vmatpush3.bf16.msra.mxu1 %v5280_v21 }
 0x23b   :  { %v7082_v50 = vpop.f32.mrf.mxu0  ;;  %4708 = vmatprep.subr.bf16.mxu1 %v5281_v39 }
 0x23d   :  { %3628 = vmatmul.mubr.bf16.gmra.mxu1 %v6993_v11  ;;  %v7084_v11 = vpop.f32.mrf.mxu0 }
 0x23e   :  { %3637 = vmatprep.mubr.bf16.mxu1 %v7005_v24  ;;  %4709 = vmatpush3.bf16.msra.mxu1 %v5282_v4 }
 0x23f   :  { %v7088_v24 = vpop.f32.mrf.mxu0 }
 0x245   :  { %3638 = vmatmul.mubr.bf16.gmra.mxu1 %v7007_v9  ;;  %v7090_v9 = vpop.f32.mrf.mxu0 }
 0x246   :  { %3647 = vmatprep.mubr.bf16.mxu1 %v7019_v17 }
 0x247   :  { %v7094_v17 = vpop.f32.mrf.mxu0 }
 0x24d   :  { %3648 = vmatmul.mubr.bf16.gmra.mxu1 %v7021_v51  ;;  %v7096_v51 = vpop.f32.mrf.mxu0 }
 0x24e   :  { %3657 = vmatprep.mubr.bf16.mxu1 %v7033_v54 }
 0x24f   :  { %v7100_v54 = vpop.f32.mrf.mxu0 }
 0x255   :  { %3658 = vmatmul.mubr.bf16.gmra.mxu1 %v7035_v63  ;;  %v7102_v63 = vpop.f32.mrf.mxu0 }
 0x256   :  { %3667 = vmatprep.mubr.bf16.mxu1 %v7047_v42  ;;  %v5283_v42 = vld [vmem:[#allocation4 + $0xd0] sm:$0xff]  }
 0x257   :  { %v7105_v26 = vpop.f32.mrf.mxu0  ;;  %4710 = vmatprep.subr.bf16.mxu1 %v5283_v42 }
 0x258   :  { %4711 = vmatpush3.bf16.msra.mxu1 %v5284_v58 }
 0x259   :  { %v7107_v15 = vpop.f32.mrf.mxu0 }
 0x25b   :  { %v7109_v3 = vpop.f32.mrf.mxu0 }
 0x25d   :  { %3668 = vmatmul.mubr.bf16.gmra.mxu1 %v7049_v35  ;;  %v5285_v35 = vld [vmem:[#allocation4 + $0xc8] sm:$0xff]   ;;  %v7111_v6 = vpop.f32.mrf.mxu0 }
 0x25e   :  { %3677 = vmatprep.mubr.bf16.mxu1 %v7053_v29  ;;  %4712 = vmatprep.subr.bf16.mxu1 %v5285_v35  ;;  %v7142_v29 = vld [vmem:[%s7399_s4] sm:$0xf] }
 0x25f   :  { %4713 = vmatpush3.bf16.msra.mxu1 %v5286_v31  ;;  %v7113_v18 = vpop.f32.mrf.mxu0  ;;  %v7154_v34 = vrot.slane %v7142_v29, %v7459_v8 }
 0x260   :  { %4714 = vmatprep.subr.bf16.mxu1 %v5287_v23 }
 0x261   :  { %v7115_v33 = vpop.f32.mrf.mxu0  ;;  %v3275_v10 = vadd.f32 %v7066_v40, %v7154_v34  ;;  %v3271_v57 = vadd.f32 %v7060_v48, %v7154_v34  ;;  %v3281_v58 = vadd.f32 %v7072_v36, %v7154_v34 }
 0x263   :  { %4715 = vmatpush3.bf16.msra.mxu1 %v5288_v25  ;;  %v7117_v44 = vpop.f32.mrf.mxu0 }
 0x265   :  { %3678 = vmatmul.mubr.bf16.gmra.mxu1 %v7055_v27  ;;  %v7119_v5 = vpop.f32.mrf.mxu0  ;;  %v7458_v27 = vsub.s32 1, %v7457_v7 }
 0x267   :  { %v7121_v62 = vpop.f32.mrf.mxu0  ;;  %v7149_v14 = vrot.slane %v7142_v29, %v7458_v27 }
 0x269   :  { %v7123_v53 = vpop.f32.mrf.mxu0  ;;  %v3273_v49 = vadd.f32 %v7064_v38, %v7149_v14  ;;  %v3277_v1 = vadd.f32 %v7070_v55, %v7149_v14  ;;  %v3283_v48 = vadd.f32 %v7076_v61, %v7149_v14  ;;  %v3285_v55 = vadd.f32 %v7078_v28, %v7154_v34 }
 0x26a   :  { %v3287_v23 = vadd.f32 %v7082_v50, %v7149_v14  ;;  %v3293_v50 = vadd.f32 %v7088_v24, %v7149_v14 }
 0x26b   :  { %v7125_v19 = vpop.f32.mrf.mxu0 }
 0x26d   :  { %v7127_v43 = vpop.f32.mrf.mxu0 }
 0x26f   :  { %v7129_v20 = vpop.f32.mrf.mxu0 }
 0x271   :  { %v7131_v56 = vpop.f32.mrf.mxu0 }
 0x273   :  { %v7133_v45 = vpop.f32.mrf.mxu0 }
 0x275   :  { %v7135_v32 = vpop.f32.mrf.mxu0 }
 0x277   :  { %v7137_v60 = vpop.f32.mrf.mxu0 }
 0x279   :  { %v7144_v13 = vpop.f32.mrf.mxu0 }
 0x27b   :  { %v7156_v47 = vpop.f32.mrf.mxu0 }
 0x27d   :  { %v7166_v12 = vpop.f32.mrf.mxu0 }
 0x27f   :  { %v7168_v39 = vpop.f32.mrf.mxu0 }
 0x281   :  { %v7178_v8 = vpop.f32.mrf.mxu0 }
 0x2ad   :  { %v3383_v0 = vpop.f32.mrf.mxu1 }
 0x2ae   :  { %v3384_v59 = vadd.f32 %v3383_v0, %v3271_v57 }
 0x2af   :  { %v3385_v46 = vpop.f32.mrf.mxu1 }
 0x2b0   :  { %v3386_v41 = vadd.f32 %v3385_v46, %v3273_v49  ;;  %v3688_v40 = vmax.f32 %v3384_v59, 0.0  ;;  %v3291_v59 = vadd.f32 %v7084_v11, %v7154_v34 }
 0x2b1   :  { %v3387_v52 = vpop.f32.mrf.mxu1 }
 0x2b2   :  { %v3388_v30 = vadd.f32 %v3387_v52, %v3275_v10  ;;  %v3689_v38 = vmax.f32 %v3386_v41, 0.0  ;;  %v7180_v52 = vpop.f32.mrf.mxu0  ;;  %v3295_v41 = vadd.f32 %v7090_v9, %v7154_v34 }
 0x2b3   :  { %v3389_v37 = vpop.f32.mrf.mxu1 }
 0x2b4   :  { %v3390_v16 = vadd.f32 %v3389_v37, %v3277_v1  ;;  %v3692_v2 = vmax.f32 %v3388_v30, 0.0 }
 0x2b5   :  { %v3393_v22 = vpop.f32.mrf.mxu1 }
 0x2b6   :  { %v3693_v21 = vmax.f32 %v3390_v16, 0.0  ;;  %v3752_v35 = vpack.c.bf16 %v3692_v2, %v3688_v40  ;;  %v3394_v0 = vadd.f32 %v3393_v22, %v3281_v58  ;;  %v3297_v2 = vadd.f32 %v7094_v17, %v7149_v14 }
 0x2b7   :  { %v3395_v4 = vpop.f32.mrf.mxu1  ;;  %v3303_v17 = vadd.f32 %v7100_v54, %v7149_v14 }
 0x2b8   :  { %v3753_v42 = vpack.c.bf16 %v3693_v21, %v3689_v38  ;;  %v3396_v25 = vadd.f32 %v3395_v4, %v3283_v48  ;;  %v3696_v36 = vmax.f32 %v3394_v0, 0.0  ;;  %v7190_v21 = vpop.f32.mrf.mxu0 }
 0x2b9   :  { %v3397_v31 = vpop.f32.mrf.mxu1 }
 0x2ba   :  { %v3398_v27 = vadd.f32 %v3397_v31, %v3285_v55  ;;  %4079 = vmatprep.mubr.bf16.mxu0 %v3753_v42  ;;  %v3697_v10 = vmax.f32 %v3396_v25, 0.0  ;;  %v7192_v58 = vpop.f32.mrf.mxu0  ;;  %v3305_v31 = vadd.f32 %v7102_v63, %v7154_v34  ;;  %v3301_v25 = vadd.f32 %v7096_v51, %v7154_v34 }
 0x2bb   :  { %v3399_v46 = vpop.f32.mrf.mxu1  ;;  %4080 = vmatmul.mubr.bf16.vlgmr.msra.gmra.mxu0 %v3752_v35 }
 0x2bc   :  { %v3400_v61 = vadd.f32 %v3399_v46, %v3287_v23  ;;  %v3700_v49 = vmax.f32 %v3398_v27, 0.0  ;;  %v3307_v46 = vadd.f32 %v7105_v26, %v7149_v14  ;;  %v3313_v26 = vadd.f32 %v7109_v3, %v7149_v14 }
 0x2bd   :  { %v3403_v28 = vpop.f32.mrf.mxu1 }
 0x2be   :  { %v3701_v57 = vmax.f32 %v3400_v61, 0.0  ;;  %v3756_v37 = vpack.c.bf16 %v3700_v49, %v3696_v36  ;;  %v3404_v40 = vadd.f32 %v3403_v28, %v3291_v59  ;;  %v7202_v28 = vpop.f32.mrf.mxu0  ;;  %v3315_v59 = vadd.f32 %v7111_v6, %v7154_v34 }
 0x2bf   :  { %v3405_v1 = vpop.f32.mrf.mxu1 }
 0x2c0   :  { %v3757_v30 = vpack.c.bf16 %v3701_v57, %v3697_v10  ;;  %v3406_v22 = vadd.f32 %v3405_v1, %v3293_v50  ;;  %v3704_v11 = vmax.f32 %v3404_v40, 0.0 }
 0x2c1   :  { %v3407_v16 = vpop.f32.mrf.mxu1 }
 0x2c2   :  { %v3408_v38 = vadd.f32 %v3407_v16, %v3295_v41  ;;  %4087 = vmatprep.mubr.bf16.mxu0 %v3757_v30  ;;  %v3705_v55 = vmax.f32 %v3406_v22, 0.0  ;;  %v7204_v41 = vpop.f32.mrf.mxu0  ;;  %v3311_v16 = vadd.f32 %v7107_v15, %v7154_v34 }
 0x2c3   :  { %v3409_v4 = vpop.f32.mrf.mxu1  ;;  %4088 = vmatmul.mubr.bf16.gmra.mxu0 %v3756_v37 }
 0x2c4   :  { %v3410_v24 = vadd.f32 %v3409_v4, %v3297_v2  ;;  %v3708_v48 = vmax.f32 %v3408_v38, 0.0  ;;  %v3317_v38 = vadd.f32 %v7113_v18, %v7149_v14  ;;  %v3323_v18 = vadd.f32 %v7117_v44, %v7149_v14 }
 0x2c5   :  { %v3413_v9 = vpop.f32.mrf.mxu1 }
 0x2c6   :  { %v3709_v42 = vmax.f32 %v3410_v24, 0.0  ;;  %v3760_v27 = vpack.c.bf16 %v3708_v48, %v3704_v11  ;;  %v3414_v10 = vadd.f32 %v3413_v9, %v3301_v25  ;;  %v7214_v24 = vpop.f32.mrf.mxu0  ;;  %v3321_v25 = vadd.f32 %v7115_v33, %v7154_v34 }
 0x2c7   :  { %v3415_v35 = vpop.f32.mrf.mxu1 }
 0x2c8   :  { %v3761_v23 = vpack.c.bf16 %v3709_v42, %v3705_v55  ;;  %v3416_v61 = vadd.f32 %v3415_v35, %v3303_v17  ;;  %v3712_v51 = vmax.f32 %v3414_v10, 0.0  ;;  %v7216_v35 = vpop.f32.mrf.mxu0 }
 0x2c9   :  { %v3417_v0 = vpop.f32.mrf.mxu1 }
 0x2ca   :  { %v3418_v49 = vadd.f32 %v3417_v0, %v3305_v31  ;;  %4095 = vmatprep.mubr.bf16.mxu0 %v3761_v23  ;;  %v3713_v1 = vmax.f32 %v3416_v61, 0.0  ;;  %v3325_v31 = vadd.f32 %v7119_v5, %v7154_v34  ;;  %v7226_v10 = vpop.f32.mrf.mxu0 }
 0x2cb   :  { %v3419_v57 = vpop.f32.mrf.mxu1  ;;  %4096 = vmatmul.mubr.bf16.gmra.mxu0 %v3760_v27 }
 0x2cc   :  { %v3420_v54 = vadd.f32 %v3419_v57, %v3307_v46  ;;  %v3716_v36 = vmax.f32 %v3418_v49, 0.0  ;;  %v3327_v46 = vadd.f32 %v7121_v62, %v7149_v14  ;;  %v3333_v62 = vadd.f32 %v7125_v19, %v7149_v14 }
 0x2cd   :  { %v3423_v63 = vpop.f32.mrf.mxu1 }
 0x2ce   :  { %v3717_v50 = vmax.f32 %v3420_v54, 0.0  ;;  %v3764_v2 = vpack.c.bf16 %v3716_v36, %v3712_v51  ;;  %v3424_v48 = vadd.f32 %v3423_v63, %v3311_v16 }
 0x2cf   :  { %v3425_v30 = vpop.f32.mrf.mxu1 }
 0x2d0   :  { %v3765_v37 = vpack.c.bf16 %v3717_v50, %v3713_v1  ;;  %v3426_v40 = vadd.f32 %v3425_v30, %v3313_v26  ;;  %v3720_v15 = vmax.f32 %v3424_v48, 0.0  ;;  %v7228_v50 = vpop.f32.mrf.mxu0  ;;  %v3335_v30 = vadd.f32 %v7127_v43, %v7154_v34 }
 0x2d1   :  { %v3427_v22 = vpop.f32.mrf.mxu1 }
 0x2d2   :  { %v3428_v4 = vadd.f32 %v3427_v22, %v3315_v59  ;;  %4103 = vmatprep.mubr.bf16.mxu0 %v3765_v37  ;;  %v3721_v42 = vmax.f32 %v3426_v40, 0.0  ;;  %v3331_v59 = vadd.f32 %v7123_v53, %v7154_v34  ;;  %v7238_v40 = vpop.f32.mrf.mxu0 }
 0x2d3   :  { %v3429_v9 = vpop.f32.mrf.mxu1  ;;  %4104 = vmatmul.mubr.bf16.gmra.mxu0 %v3764_v2  ;;  %v3337_v2 = vadd.f32 %v7129_v20, %v7149_v14  ;;  %v3343_v20 = vadd.f32 %v7133_v45, %v7149_v14  ;;  %v7460_v45 = vsub.s32 3, %v7457_v7 }
 0x2d4   :  { %v3430_v3 = vadd.f32 %v3429_v9, %v3317_v38  ;;  %v3724_v55 = vmax.f32 %v3428_v4, 0.0 }
 0x2d5   :  { %v3433_v6 = vpop.f32.mrf.mxu1 }
 0x2d6   :  { %v3725_v11 = vmax.f32 %v3430_v3, 0.0  ;;  %v3768_v27 = vpack.c.bf16 %v3724_v55, %v3720_v15  ;;  %v3434_v57 = vadd.f32 %v3433_v6, %v3321_v25  ;;  %v7240_v6 = vpop.f32.mrf.mxu0 }
 0x2d7   :  { %v3435_v17 = vpop.f32.mrf.mxu1 }
 0x2d8   :  { %v3769_v23 = vpack.c.bf16 %v3725_v11, %v3721_v42  ;;  %v3436_v61 = vadd.f32 %v3435_v17, %v3323_v18  ;;  %v3728_v33 = vmax.f32 %v3434_v57, 0.0  ;;  %v3345_v11 = vadd.f32 %v7135_v32, %v7154_v34 }
 0x2d9   :  { %v3437_v0 = vpop.f32.mrf.mxu1  ;;  %v3341_v17 = vadd.f32 %v7131_v56, %v7154_v34  ;;  %v7255_v32 = vrot.slane %v7142_v29, %v7460_v45  ;;  %v7461_v56 = vsub.s32 2, %v7457_v7 }
 0x2da   :  { %v3438_v49 = vadd.f32 %v3437_v0, %v3325_v31  ;;  %4111 = vmatprep.mubr.bf16.mxu0 %v3769_v23  ;;  %v3729_v63 = vmax.f32 %v3436_v61, 0.0  ;;  %v3347_v23 = vadd.f32 %v7137_v60, %v7149_v14  ;;  %v7250_v0 = vpop.f32.mrf.mxu0 }
 0x2db   :  { %v3439_v54 = vpop.f32.mrf.mxu1  ;;  %4112 = vmatmul.mubr.bf16.gmra.mxu0 %v3768_v27  ;;  %v7260_v34 = vrot.slane %v7142_v29, %v7461_v56 }
 0x2dc   :  { %v3440_v44 = vadd.f32 %v3439_v54, %v3327_v46  ;;  %v3732_v36 = vmax.f32 %v3438_v49, 0.0 }
 0x2dd   :  { %v3443_v5 = vpop.f32.mrf.mxu1  ;;  %v3497_v7 = vadd.f32 %v7144_v13, %v7260_v34  ;;  %v3517_v45 = vadd.f32 %v7202_v28, %v7260_v34 }
 0x2de   :  { %v3733_v1 = vmax.f32 %v3440_v44, 0.0  ;;  %v3772_v37 = vpack.c.bf16 %v3732_v36, %v3728_v33  ;;  %v3444_v4 = vadd.f32 %v3443_v5, %v3331_v59  ;;  %v7262_v44 = vpop.f32.mrf.mxu0 }
 0x2df   :  { %v3445_v51 = vpop.f32.mrf.mxu1 }
 0x2e0   :  { %v3773_v26 = vpack.c.bf16 %v3733_v1, %v3729_v63  ;;  %v3446_v22 = vadd.f32 %v3445_v51, %v3333_v62  ;;  %v3736_v53 = vmax.f32 %v3444_v4, 0.0  ;;  %v3499_v63 = vadd.f32 %v7156_v47, %v7255_v32  ;;  %v7272_v59 = vpop.f32.mrf.mxu0 }
 0x2e1   :  { %v3447_v16 = vpop.f32.mrf.mxu1  ;;  %v3501_v1 = vadd.f32 %v7166_v12, %v7260_v34  ;;  %v3503_v62 = vadd.f32 %v7168_v39, %v7255_v32  ;;  %v3509_v39 = vadd.f32 %v7180_v52, %v7255_v32 }
 0x2e2   :  { %v3448_v38 = vadd.f32 %v3447_v16, %v3335_v30  ;;  %4119 = vmatprep.mubr.bf16.mxu0 %v3773_v26  ;;  %v3737_v3 = vmax.f32 %v3446_v22, 0.0  ;;  %v7274_v4 = vpop.f32.mrf.mxu0 }
 0x2e3   :  { %v3449_v48 = vpop.f32.mrf.mxu1  ;;  %4120 = vmatmul.mubr.bf16.gmra.mxu0 %v3772_v37 }
 0x2e4   :  { %v3450_v19 = vadd.f32 %v3449_v48, %v3337_v2  ;;  %v3740_v9 = vmax.f32 %v3448_v38, 0.0 }
 0x2e5   :  { %v3453_v43 = vpop.f32.mrf.mxu1 }
 0x2e6   :  { %v3741_v55 = vmax.f32 %v3450_v19, 0.0  ;;  %v3776_v18 = vpack.c.bf16 %v3740_v9, %v3736_v53  ;;  %v3454_v46 = vadd.f32 %v3453_v43, %v3341_v17  ;;  %v3511_v19 = vadd.f32 %v7190_v21, %v7260_v34 }
 0x2e7   :  { %v3455_v42 = vpop.f32.mrf.mxu1  ;;  %v3507_v43 = vadd.f32 %v7178_v8, %v7260_v34  ;;  %v3513_v53 = vadd.f32 %v7192_v58, %v7255_v32  ;;  %v3519_v58 = vadd.f32 %v7204_v41, %v7255_v32 }
 0x2e8   :  { %v3777_v15 = vpack.c.bf16 %v3741_v55, %v3737_v3  ;;  %v3456_v25 = vadd.f32 %v3455_v42, %v3343_v20  ;;  %v3744_v36 = vmax.f32 %v3454_v46, 0.0  ;;  %v3521_v46 = vadd.f32 %v7214_v24, %v7260_v34 }
 0x2e9   :  { %v3457_v31 = vpop.f32.mrf.mxu1 }
 0x2ea   :  { %v3458_v27 = vadd.f32 %v3457_v31, %v3345_v11  ;;  %4127 = vmatprep.mubr.bf16.mxu0 %v3777_v15  ;;  %v3745_v57 = vmax.f32 %v3456_v25, 0.0  ;;  %v7284_v11 = vpop.f32.mrf.mxu0 }
 0x2eb   :  { %v3459_v61 = vpop.f32.mrf.mxu1  ;;  %4128 = vmatmul.mubr.bf16.gmra.mxu0 %v3776_v18 }
 0x2ec   :  { %v3460_v49 = vadd.f32 %v3459_v61, %v3347_v23  ;;  %v3748_v60 = vmax.f32 %v3458_v27, 0.0  ;;  %v7286_v25 = vpop.f32.mrf.mxu0 }
 0x2ed   :  { %v3609_v14 = vpop.f32.mrf.mxu1 }
 0x2ee   :  { %v3749_v54 = vmax.f32 %v3460_v49, 0.0  ;;  %v3780_v29 = vpack.c.bf16 %v3748_v60, %v3744_v36  ;;  %v3610_v37 = vadd.f32 %v3609_v14, %v3497_v7  ;;  %v3523_v60 = vadd.f32 %v7216_v35, %v7255_v32 }
 0x2ef   :  { %v3611_v5 = vpop.f32.mrf.mxu1  ;;  %v3531_v35 = vadd.f32 %v7238_v40, %v7260_v34 }
 0x2f0   :  { %v3781_v33 = vpack.c.bf16 %v3749_v54, %v3745_v57  ;;  %v3612_v30 = vadd.f32 %v3611_v5, %v3499_v63  ;;  %v3690_v13 = vmax.f32 %v3610_v37, 0.0  ;;  %v3550_v54 = vpop.f32.mrf.mxu0 }
 0x2f1   :  { %v3613_v51 = vpop.f32.mrf.mxu1 }
 0x2f2   :  { %v3614_v26 = vadd.f32 %v3613_v51, %v3501_v1  ;;  %4135 = vmatprep.mubr.bf16.mxu0 %v3781_v33  ;;  %v3691_v22 = vmax.f32 %v3612_v30, 0.0  ;;  %v3552_v7 = vpop.f32.mrf.mxu0  ;;  %v3529_v51 = vadd.f32 %v7228_v50, %v7255_v32  ;;  %v3527_v30 = vadd.f32 %v7226_v10, %v7260_v34 }
 0x2f3   :  { %v3615_v16 = vpop.f32.mrf.mxu1  ;;  %4136 = vmatmul.mubr.bf16.gmra.mxu0 %v3780_v29 }
 0x2f4   :  { %v3616_v47 = vadd.f32 %v3615_v16, %v3503_v62  ;;  %v3694_v2 = vmax.f32 %v3614_v26, 0.0  ;;  %v3533_v16 = vadd.f32 %v7240_v6, %v7255_v32  ;;  %v3541_v6 = vadd.f32 %v7272_v59, %v7260_v34 }
 0x2f5   :  { %v3619_v12 = vpop.f32.mrf.mxu1 }
 0x2f6   :  { %v3695_v38 = vmax.f32 %v3616_v47, 0.0  ;;  %v3754_v3 = vpack.c.bf16 %v3694_v2, %v3690_v13  ;;  %v3620_v15 = vadd.f32 %v3619_v12, %v3507_v43  ;;  %v3556_v12 = vpop.f32.mrf.mxu0  ;;  %v3539_v43 = vadd.f32 %v7262_v44, %v7255_v32 }
 0x2f7   :  { %v3621_v48 = vpop.f32.mrf.mxu1 }
 0x2f8   :  { %v3755_v9 = vpack.c.bf16 %v3695_v38, %v3691_v22  ;;  %v3622_v42 = vadd.f32 %v3621_v48, %v3509_v39  ;;  %v3698_v8 = vmax.f32 %v3620_v15, 0.0 }
 0x2f9   :  { %v3623_v55 = vpop.f32.mrf.mxu1 }
 0x2fa   :  { %v3624_v20 = vadd.f32 %v3623_v55, %v3511_v19  ;;  %4176 = vmatprep.mubr.bf16.mxu1 %v3755_v9  ;;  %v3699_v31 = vmax.f32 %v3622_v42, 0.0  ;;  %v3558_v19 = vpop.f32.mrf.mxu0  ;;  %v3537_v55 = vadd.f32 %v7250_v0, %v7260_v34 }
 0x2fb   :  { %v3625_v17 = vpop.f32.mrf.mxu1  ;;  %4177 = vmatmul.mubr.bf16.vlgmr.msra.gmra.mxu1 %v3754_v3 }
 0x2fc   :  { %v3626_v52 = vadd.f32 %v3625_v17, %v3513_v53  ;;  %v3702_v18 = vmax.f32 %v3624_v20, 0.0  ;;  %v3543_v20 = vadd.f32 %v7274_v4, %v7255_v32  ;;  %v3551_v4 = vadd.f32 %v3550_v54, %v7260_v34 }
 0x2fd   :  { %v3629_v21 = vpop.f32.mrf.mxu1 }
 0x2fe   :  { %v3703_v23 = vmax.f32 %v3626_v52, 0.0  ;;  %v3758_v49 = vpack.c.bf16 %v3702_v18, %v3698_v8  ;;  %v3630_v36 = vadd.f32 %v3629_v21, %v3517_v45  ;;  %v3560_v52 = vpop.f32.mrf.mxu0  ;;  %v3547_v45 = vadd.f32 %v7284_v11, %v7260_v34 }
 0x2ff   :  { %v3631_v27 = vpop.f32.mrf.mxu1  ;;  %v3559_v11 = vadd.f32 %v3558_v19, %v7255_v32 }
 0x300   :  { %v3759_v61 = vpack.c.bf16 %v3703_v23, %v3699_v31  ;;  %v3632_v14 = vadd.f32 %v3631_v27, %v3519_v58  ;;  %v3706_v29 = vmax.f32 %v3630_v36, 0.0  ;;  %v3562_v27 = vpop.f32.mrf.mxu0 }
 0x301   :  { %v3633_v56 = vpop.f32.mrf.mxu1 }
 0x302   :  { %v3634_v57 = vadd.f32 %v3633_v56, %v3521_v46  ;;  %4184 = vmatprep.mubr.bf16.mxu1 %v3759_v61  ;;  %v3707_v24 = vmax.f32 %v3632_v14, 0.0  ;;  %v3549_v46 = vadd.f32 %v7286_v25, %v7255_v32  ;;  %v3566_v36 = vpop.f32.mrf.mxu0 }
 0x303   :  { %v3635_v5 = vpop.f32.mrf.mxu1  ;;  %4185 = vmatmul.mubr.bf16.gmra.mxu1 %v3758_v49 }
 0x304   :  { %v3636_v41 = vadd.f32 %v3635_v5, %v3523_v60  ;;  %v3710_v63 = vmax.f32 %v3634_v57, 0.0  ;;  %v3553_v60 = vadd.f32 %v3552_v7, %v7255_v32 }
 0x305   :  { %v3639_v1 = vpop.f32.mrf.mxu1 }
 0x306   :  { %v3711_v33 = vmax.f32 %v3636_v41, 0.0  ;;  %v3762_v26 = vpack.c.bf16 %v3710_v63, %v3706_v29  ;;  %v3640_v22 = vadd.f32 %v3639_v1, %v3527_v30 }
 0x307   :  { %v3641_v28 = vpop.f32.mrf.mxu1 }
 0x308   :  { %v3763_v62 = vpack.c.bf16 %v3711_v33, %v3707_v24  ;;  %v3642_v47 = vadd.f32 %v3641_v28, %v3529_v51  ;;  %v3714_v9 = vmax.f32 %v3640_v22, 0.0  ;;  %v3568_v33 = vpop.f32.mrf.mxu0  ;;  %v3561_v51 = vadd.f32 %v3560_v52, %v7260_v34 }
 0x309   :  { %v3643_v37 = vpop.f32.mrf.mxu1 }
 0x30a   :  { %v3644_v2 = vadd.f32 %v3643_v37, %v3531_v35  ;;  %4192 = vmatprep.mubr.bf16.mxu1 %v3763_v62  ;;  %v3715_v40 = vmax.f32 %v3642_v47, 0.0  ;;  %v3557_v35 = vadd.f32 %v3556_v12, %v7260_v34  ;;  %v3570_v47 = vpop.f32.mrf.mxu0  ;;  %v3569_v12 = vadd.f32 %v3568_v33, %v7255_v32 }
 0x30b   :  { %v3645_v38 = vpop.f32.mrf.mxu1  ;;  %4193 = vmatmul.mubr.bf16.gmra.mxu1 %v3762_v26  ;;  %v3563_v26 = vadd.f32 %v3562_v27, %v7255_v32 }
 0x30c   :  { %v3646_v50 = vadd.f32 %v3645_v38, %v3533_v16  ;;  %v3718_v13 = vmax.f32 %v3644_v2, 0.0 }
 0x30d   :  { %v3649_v48 = vpop.f32.mrf.mxu1 }
 0x30e   :  { %v3719_v39 = vmax.f32 %v3646_v50, 0.0  ;;  %v3766_v53 = vpack.c.bf16 %v3718_v13, %v3714_v9  ;;  %v3650_v18 = vadd.f32 %v3649_v48, %v3537_v55 }
 0x30f   :  { %v3651_v10 = vpop.f32.mrf.mxu1 }
 0x310   :  { %v3767_v3 = vpack.c.bf16 %v3719_v39, %v3715_v40  ;;  %v3652_v15 = vadd.f32 %v3651_v10, %v3539_v43  ;;  %v3722_v58 = vmax.f32 %v3650_v18, 0.0  ;;  %v3572_v39 = vpop.f32.mrf.mxu0  ;;  %v3571_v10 = vadd.f32 %v3570_v47, %v7260_v34 }
 0x311   :  { %v3653_v42 = vpop.f32.mrf.mxu1 }
 0x312   :  { %v3654_v17 = vadd.f32 %v3653_v42, %v3541_v6  ;;  %4200 = vmatprep.mubr.bf16.mxu1 %v3767_v3  ;;  %v3723_v59 = vmax.f32 %v3652_v15, 0.0  ;;  %v3567_v6 = vadd.f32 %v3566_v36, %v7260_v34 }
 0x313   :  { %v3655_v21 = vpop.f32.mrf.mxu1  ;;  %4201 = vmatmul.mubr.bf16.gmra.mxu1 %v3766_v53  ;;  %v3573_v53 = vadd.f32 %v3572_v39, %v7255_v32 }
 0x314   :  { %v3656_v44 = vadd.f32 %v3655_v21, %v3543_v20  ;;  %v3726_v31 = vmax.f32 %v3654_v17, 0.0 }
 0x315   :  { %v3659_v23 = vpop.f32.mrf.mxu1 }
 0x316   :  { %v3727_v8 = vmax.f32 %v3656_v44, 0.0  ;;  %v3770_v49 = vpack.c.bf16 %v3726_v31, %v3722_v58  ;;  %v3660_v5 = vadd.f32 %v3659_v23, %v3547_v45 }
 0x317   :  { %v3661_v0 = vpop.f32.mrf.mxu1 }
 0x318   :  { %v3771_v61 = vpack.c.bf16 %v3727_v8, %v3723_v59  ;;  %v3662_v14 = vadd.f32 %v3661_v0, %v3549_v46  ;;  %v3730_v29 = vmax.f32 %v3660_v5, 0.0 }
 0x319   :  { %v3663_v56 = vpop.f32.mrf.mxu1 }
 0x31a   :  { %v3664_v57 = vadd.f32 %v3663_v56, %v3551_v4  ;;  %4208 = vmatprep.mubr.bf16.mxu1 %v3771_v61  ;;  %v3731_v24 = vmax.f32 %v3662_v14, 0.0 }
 0x31b   :  { %v3665_v41 = vpop.f32.mrf.mxu1  ;;  %4209 = vmatmul.mubr.bf16.gmra.mxu1 %v3770_v49 }
 0x31c   :  { %v3666_v63 = vadd.f32 %v3665_v41, %v3553_v60  ;;  %v3734_v1 = vmax.f32 %v3664_v57, 0.0 }
 0x31d   :  { %v3669_v25 = vpop.f32.mrf.mxu1 }
 0x31e   :  { %v3735_v54 = vmax.f32 %v3666_v63, 0.0  ;;  %v3774_v62 = vpack.c.bf16 %v3734_v1, %v3730_v29  ;;  %v3670_v2 = vadd.f32 %v3669_v25, %v3557_v35  ;;  %v7329_v63 = vld [vmem:[%s7401_s6] ss:$0 sm:$0xff] }
 0x31f   :  { %v3671_v28 = vpop.f32.mrf.mxu1 }
 0x320   :  { %v3775_v7 = vpack.c.bf16 %v3735_v54, %v3731_v24  ;;  %v3672_v37 = vadd.f32 %v3671_v28, %v3559_v11  ;;  %v3738_v19 = vmax.f32 %v3670_v2, 0.0 }
 0x321   :  { %v3673_v30 = vpop.f32.mrf.mxu1 }
 0x322   :  { %v3674_v16 = vadd.f32 %v3673_v30, %v3561_v51  ;;  %4216 = vmatprep.mubr.bf16.mxu1 %v3775_v7  ;;  %v3739_v48 = vmax.f32 %v3672_v37, 0.0 }
 0x323   :  { %v3675_v22 = vpop.f32.mrf.mxu1  ;;  %4217 = vmatmul.mubr.bf16.gmra.mxu1 %v3774_v62 }
 0x324   :  { %v3676_v38 = vadd.f32 %v3675_v22, %v3563_v26  ;;  %v3742_v50 = vmax.f32 %v3674_v16, 0.0 }
 0x325   :  { %v3679_v13 = vpop.f32.mrf.mxu1 }
 0x326   :  { %v3743_v40 = vmax.f32 %v3676_v38, 0.0  ;;  %v3778_v3 = vpack.c.bf16 %v3742_v50, %v3738_v19  ;;  %v3680_v15 = vadd.f32 %v3679_v13, %v3567_v6 }
 0x327   :  { %v3681_v9 = vpop.f32.mrf.mxu1 }
 0x328   :  { %v3779_v43 = vpack.c.bf16 %v3743_v40, %v3739_v48  ;;  %v3682_v42 = vadd.f32 %v3681_v9, %v3569_v12  ;;  %v3746_v31 = vmax.f32 %v3680_v15, 0.0 }
 0x329   :  { %v3683_v55 = vpop.f32.mrf.mxu1 }
 0x32a   :  { %v3684_v20 = vadd.f32 %v3683_v55, %v3571_v10  ;;  %4224 = vmatprep.mubr.bf16.mxu1 %v3779_v43  ;;  %v3747_v21 = vmax.f32 %v3682_v42, 0.0 }
 0x32b   :  { %v3685_v17 = vpop.f32.mrf.mxu1  ;;  %4225 = vmatmul.mubr.bf16.gmra.mxu1 %v3778_v3 }
 0x32c   :  { %v3686_v52 = vadd.f32 %v3685_v17, %v3573_v53  ;;  %v3750_v18 = vmax.f32 %v3684_v20, 0.0 }
 0x32e   :  { %v3751_v44 = vmax.f32 %v3686_v52, 0.0  ;;  %v3782_v59 = vpack.c.bf16 %v3750_v18, %v3746_v31 }
 0x330   :  { %v3783_v23 = vpack.c.bf16 %v3751_v44, %v3747_v21 }
 0x332   :  { %4232 = vmatprep.mubr.bf16.mxu1 %v3783_v23 }
 0x333   :  { %4233 = vmatmul.mubr.bf16.gmra.mxu1 %v3782_v59 }
 0x37b   :  { %v4652_v34 = vpop.f32.mrf.mxu0 }
 0x37d   :  { %v4653_v8 = vpop.f32.mrf.mxu0 }
 0x37e   :  { %v4654_v41 = vadd.f32 %v4653_v8, %v4652_v34 }
 0x37f   :  { %v4655_v27 = vpop.f32.mrf.mxu0 }
 0x380   :  { %v4082_v54 = vadd.f32 %v4654_v41, %v7329_v63 }
 0x381   :  { %v4656_v58 = vpop.f32.mrf.mxu0 }
 0x382   :  { %v4657_v33 = vadd.f32 %v4656_v58, %v4655_v27 }
 0x383   :  { %v4658_v32 = vpop.f32.mrf.mxu0 }
 0x384   :  { %v4085_v35 = vadd.f32 %v4657_v33, %v7329_v63 }
 0x385   :  { %v4659_v0 = vpop.f32.mrf.mxu0 }
 0x386   :  { %v4660_v62 = vadd.f32 %v4659_v0, %v4658_v32 }
 0x387   :  { %v4661_v46 = vpop.f32.mrf.mxu0 }
 0x388   :  { %v4090_v2 = vadd.f32 %v4660_v62, %v7329_v63 }
 0x389   :  { %v4662_v4 = vpop.f32.mrf.mxu0 }
 0x38a   :  { %v4663_v22 = vadd.f32 %v4662_v4, %v4661_v46 }
 0x38b   :  { %v4664_v61 = vpop.f32.mrf.mxu0 }
 0x38c   :  { %v4093_v39 = vadd.f32 %v4663_v22, %v7329_v63 }
 0x38d   :  { %v4665_v45 = vpop.f32.mrf.mxu0 }
 0x38e   :  { %v4666_v19 = vadd.f32 %v4665_v45, %v4664_v61 }
 0x38f   :  { %v4667_v49 = vpop.f32.mrf.mxu0 }
 0x390   :  { %v4098_v3 = vadd.f32 %v4666_v19, %v7329_v63 }
 0x391   :  { %v4668_v56 = vpop.f32.mrf.mxu0 }
 0x392   :  { %v4669_v55 = vadd.f32 %v4668_v56, %v4667_v49 }
 0x393   :  { %v4670_v60 = vpop.f32.mrf.mxu0 }
 0x394   :  { %v4101_v52 = vadd.f32 %v4669_v55, %v7329_v63 }
 0x395   :  { %v4671_v14 = vpop.f32.mrf.mxu0 }
 0x396   :  { %v4672_v18 = vadd.f32 %v4671_v14, %v4670_v60 }
 0x397   :  { %v4673_v57 = vpop.f32.mrf.mxu0 }
 0x398   :  { %v4106_v34 = vadd.f32 %v4672_v18, %v7329_v63 }
 0x399   :  { %v4674_v36 = vpop.f32.mrf.mxu0 }
 0x39a   :  { %v4675_v8 = vadd.f32 %v4674_v36, %v4673_v57 }
 0x39b   :  { %v4676_v5 = vpop.f32.mrf.mxu0 }
 0x39c   :  { %v4109_v4 = vadd.f32 %v4675_v8, %v7329_v63 }
 0x39d   :  { %v4677_v1 = vpop.f32.mrf.mxu0 }
 0x39e   :  { %v4678_v61 = vadd.f32 %v4677_v1, %v4676_v5 }
 0x39f   :  { %v4679_v28 = vpop.f32.mrf.mxu0 }
 0x3a0   :  { %v4114_v57 = vadd.f32 %v4678_v61, %v7329_v63 }
 0x3a1   :  { %v4680_v26 = vpop.f32.mrf.mxu0 }
 0x3a2   :  { %v4681_v36 = vadd.f32 %v4680_v26, %v4679_v28 }
 0x3a3   :  { %v4682_v50 = vpop.f32.mrf.mxu0 }
 0x3a5   :  { %v4683_v12 = vpop.f32.mrf.mxu0 }
 0x3a6   :  { %v4684_v33 = vadd.f32 %v4683_v12, %v4682_v50 }
 0x3a7   :  { %v4685_v42 = vpop.f32.mrf.mxu0 }
 0x3a9   :  { %v4686_v44 = vpop.f32.mrf.mxu0 }
 0x3aa   :  { %v4687_v62 = vadd.f32 %v4686_v44, %v4685_v42 }
 0x3ab   :  { %v4688_v58 = vpop.f32.mrf.mxu0 }
 0x3ad   :  { %v4689_v49 = vpop.f32.mrf.mxu0 }
 0x3ae   :  { %v4690_v22 = vadd.f32 %v4689_v49, %v4688_v58 }
 0x3bb   :  { %v4716_v25 = vpop.f32.mrf.mxu1 }
 0x3bd   :  { %v4717_v24 = vpop.f32.mrf.mxu1 }
 0x3be   :  { %v4718_v29 = vadd.f32 %v4717_v24, %v4716_v25  ;;  %v4691_v25 = vpop.f32.mrf.mxu0 }
 0x3bf   :  { %v4719_v11 = vpop.f32.mrf.mxu1 }
 0x3c0   :  { %v4179_v51 = vadd.f32 %v4718_v29, %v4082_v54  ;;  %v4117_v54 = vadd.f32 %v4681_v36, %v7329_v63 }
 0x3c1   :  { %v4720_v7 = vpop.f32.mrf.mxu1 }
 0x3c2   :  { %4241 = vst [vmem:[%s7402_s7] sm:$0xff] %v4179_v51  ;;  %v4721_v30 = vadd.f32 %v4720_v7, %v4719_v11  ;;  %v4692_v11 = vpop.f32.mrf.mxu0 }
 0x3c3   :  { %v4722_v37 = vpop.f32.mrf.mxu1  ;;  %v4693_v19 = vadd.f32 %v4692_v11, %v4691_v25 }
 0x3c4   :  { %v4182_v16 = vadd.f32 %v4721_v30, %v4085_v35  ;;  %v4122_v35 = vadd.f32 %v4684_v33, %v7329_v63  ;;  %v4694_v26 = vpop.f32.mrf.mxu0 }
 0x3c5   :  { %v4723_v47 = vpop.f32.mrf.mxu1 }
 0x3c6   :  { %4242 = vst [vmem:[%s7402_s7 + $0x8] sm:$0xff] %v4182_v16  ;;  %v4724_v38 = vadd.f32 %v4723_v47, %v4722_v37  ;;  %v4695_v50 = vpop.f32.mrf.mxu0 }
 0x3c7   :  { %v4725_v13 = vpop.f32.mrf.mxu1  ;;  %v4696_v55 = vadd.f32 %v4695_v50, %v4694_v26 }
 0x3c8   :  { %v4187_v48 = vadd.f32 %v4724_v38, %v4090_v2  ;;  %v4125_v2 = vadd.f32 %v4687_v62, %v7329_v63  ;;  %v4697_v12 = vpop.f32.mrf.mxu0 }
 0x3c9   :  { %v4726_v40 = vpop.f32.mrf.mxu1 }
 0x3ca   :  { %4243 = vst [vmem:[%s7402_s7 + $0x10] sm:$0xff] %v4187_v48  ;;  %v4727_v9 = vadd.f32 %v4726_v40, %v4725_v13  ;;  %v4698_v42 = vpop.f32.mrf.mxu0 }
 0x3cb   :  { %v4728_v10 = vpop.f32.mrf.mxu1  ;;  %v4699_v18 = vadd.f32 %v4698_v42, %v4697_v12 }
 0x3cc   :  { %v4190_v43 = vadd.f32 %v4727_v9, %v4093_v39  ;;  %v4130_v39 = vadd.f32 %v4690_v22, %v7329_v63 }
 0x3cd   :  { %v4729_v6 = vpop.f32.mrf.mxu1 }
 0x3ce   :  { %4244 = vst [vmem:[%s7402_s7 + $0x18] sm:$0xff] %v4190_v43  ;;  %v4730_v53 = vadd.f32 %v4729_v6, %v4728_v10 }
 0x3cf   :  { %v4731_v20 = vpop.f32.mrf.mxu1 }
 0x3d0   :  { %v4195_v15 = vadd.f32 %v4730_v53, %v4098_v3  ;;  %v4133_v3 = vadd.f32 %v4693_v19, %v7329_v63 }
 0x3d1   :  { %v4732_v17 = vpop.f32.mrf.mxu1 }
 0x3d2   :  { %4245 = vst [vmem:[%s7402_s7 + $0x20] sm:$0xff] %v4195_v15  ;;  %v4733_v21 = vadd.f32 %v4732_v17, %v4731_v20 }
 0x3d3   :  { %v4734_v31 = vpop.f32.mrf.mxu1 }
 0x3d4   :  { %v4198_v23 = vadd.f32 %v4733_v21, %v4101_v52  ;;  %v4138_v52 = vadd.f32 %v4696_v55, %v7329_v63 }
 0x3d5   :  { %v4735_v59 = vpop.f32.mrf.mxu1 }
 0x3d6   :  { %4246 = vst [vmem:[%s7402_s7 + $0x28] sm:$0xff] %v4198_v23  ;;  %v4736_v27 = vadd.f32 %v4735_v59, %v4734_v31  ;;  %v4141_v59 = vadd.f32 %v4699_v18, %v7329_v63 }
 0x3d7   :  { %v4737_v32 = vpop.f32.mrf.mxu1 }
 0x3d8   :  { %v4203_v0 = vadd.f32 %v4736_v27, %v4106_v34 }
 0x3d9   :  { %v4738_v46 = vpop.f32.mrf.mxu1 }
 0x3da   :  { %4247 = vst [vmem:[%s7402_s7 + $0x30] sm:$0xff] %v4203_v0  ;;  %v4739_v45 = vadd.f32 %v4738_v46, %v4737_v32 }
 0x3db   :  { %v4740_v56 = vpop.f32.mrf.mxu1 }
 0x3dc   :  { %v4206_v60 = vadd.f32 %v4739_v45, %v4109_v4 }
 0x3dd   :  { %v4741_v14 = vpop.f32.mrf.mxu1 }
 0x3de   :  { %4248 = vst [vmem:[%s7402_s7 + $0x38] sm:$0xff] %v4206_v60  ;;  %v4742_v41 = vadd.f32 %v4741_v14, %v4740_v56 }
 0x3df   :  { %v4743_v24 = vpop.f32.mrf.mxu1 }
 0x3e0   :  { %v4211_v5 = vadd.f32 %v4742_v41, %v4114_v57 }
 0x3e1   :  { %v4744_v1 = vpop.f32.mrf.mxu1 }
 0x3e2   :  { %4249 = vst [vmem:[%s7402_s7 + $0x40] sm:$0xff] %v4211_v5  ;;  %v4745_v29 = vadd.f32 %v4744_v1, %v4743_v24 }
 0x3e3   :  { %v4746_v51 = vpop.f32.mrf.mxu1 }
 0x3e4   :  { %v4214_v28 = vadd.f32 %v4745_v29, %v4117_v54 }
 0x3e5   :  { %v4747_v7 = vpop.f32.mrf.mxu1 }
 0x3e6   :  { %4250 = vst [vmem:[%s7402_s7 + $0x48] sm:$0xff] %v4214_v28  ;;  %v4748_v30 = vadd.f32 %v4747_v7, %v4746_v51 }
 0x3e7   :  { %v4749_v37 = vpop.f32.mrf.mxu1 }
 0x3e8   :  { %v4219_v16 = vadd.f32 %v4748_v30, %v4122_v35 }
 0x3e9   :  { %v4750_v47 = vpop.f32.mrf.mxu1 }
 0x3ea   :  { %4251 = vst [vmem:[%s7402_s7 + $0x50] sm:$0xff] %v4219_v16  ;;  %v4751_v38 = vadd.f32 %v4750_v47, %v4749_v37 }
 0x3eb   :  { %v4752_v13 = vpop.f32.mrf.mxu1 }
 0x3ec   :  { %v4222_v48 = vadd.f32 %v4751_v38, %v4125_v2 }
 0x3ed   :  { %v4753_v40 = vpop.f32.mrf.mxu1 }
 0x3ee   :  { %4252 = vst [vmem:[%s7402_s7 + $0x58] sm:$0xff] %v4222_v48  ;;  %v4754_v9 = vadd.f32 %v4753_v40, %v4752_v13 }
 0x3ef   :  { %v4755_v10 = vpop.f32.mrf.mxu1 }
 0x3f0   :  { %v4227_v43 = vadd.f32 %v4754_v9, %v4130_v39 }
 0x3f1   :  { %v4756_v6 = vpop.f32.mrf.mxu1 }
 0x3f2   :  { %4253 = vst [vmem:[%s7402_s7 + $0x60] sm:$0xff] %v4227_v43  ;;  %v4757_v53 = vadd.f32 %v4756_v6, %v4755_v10 }
 0x3f3   :  { %v4758_v20 = vpop.f32.mrf.mxu1 }
 0x3f4   :  { %v4230_v15 = vadd.f32 %v4757_v53, %v4133_v3 }
 0x3f5   :  { %v4759_v17 = vpop.f32.mrf.mxu1 }
 0x3f6   :  { %4254 = vst [vmem:[%s7402_s7 + $0x68] sm:$0xff] %v4230_v15  ;;  %v4760_v21 = vadd.f32 %v4759_v17, %v4758_v20 }
 0x3f7   :  { %v4761_v44 = vpop.f32.mrf.mxu1 }
 0x3f8   :  { %v4235_v31 = vadd.f32 %v4760_v21, %v4138_v52 }
 0x3f9   :  { %v4762_v23 = vpop.f32.mrf.mxu1 }
 0x3fa   :  { %4255 = vst [vmem:[%s7402_s7 + $0x70] sm:$0xff] %v4235_v31  ;;  %v4763_v34 = vadd.f32 %v4762_v23, %v4761_v44 }
 0x3fc   :  { %v4238_v8 = vadd.f32 %v4763_v34, %v4141_v59 }
 0x3fe   :  { %4256 = vst [vmem:[%s7402_s7 + $0x78] sm:$0xff] %v4238_v8 }
 0x3ff   :  { %4261 = vsyncpa [#allocation3], 1 }
 0x400   :  { %4262 = vsyncpa [#allocation5], 1 }

</bundles_post_ra>
